<compile_context>
chip_gen: v5e
topology: v5e:2x2
jax: 0.10.0
libtpu: 0.0.40
codegen_flags: <defaults>
</compile_context>

<pallas_src>
import math

import jax
import jax.numpy as jnp
from jax.experimental import pallas as pl
from jax.experimental.pallas import tpu as pltpu

HIDDEN_DIMS = [32, 64, 128, 256, 128, 64, 32]
INPUT_DIM = 1
OUTPUT_DIM = 1
LEAK = 0.0          # ElectronOpticsModel constructor default: leak=0.0
BN_EPS = 1e-5       # nn.BatchNorm1d default eps


def _round_up(x, m):
    return ((x + m - 1) // m) * m


def _leaky(z):
    if LEAK == 0.0:
        return jnp.maximum(z, 0.0)          # plain ReLU, single VALU op
    return jnp.where(z >= 0, z, LEAK * z)   # general LeakyReLU


def mlp_kernel(x_ref, *refs):
    """Whole MLP forward on one batch tile, everything resident in VMEM.

    Layout: activations are (features, TB) with batch on the LANE axis; weights are
    stored (out_features, in_features).
    refs = (w0, b0, w1, b1, ..., w6, b6, w_out_col, b_out, out_ref)
      w0        : (H0, 1)        first layer weight (VPU outer product, K=1)
      w_i       : (H_i, H_{i-1}) hidden weights with previous BN folded in
      b_i       : (H_i, 1)       f32 biases (BN shift folded in)
      w_out_col : (H_last, 1)    final weight stored as a column (VPU mul + reduce)
      b_out     : (1, 1)
    """
    out_ref = refs[-1]
    params = refs[:-1]
    n_hidden = (len(params) - 2) // 2        # = 7
    act_dtype = params[2].dtype              # dtype of the MXU weights (f32 or bf16)

    x = x_ref[...].astype(jnp.float32)                       # (1, TB)

    # Layer 0: K=1 "matmul" == broadcast outer product -> keep it on the VPU.
    w0 = params[0][...].astype(jnp.float32)                  # (H0, 1)
    b0 = params[1][...]                                      # (H0, 1) f32
    h = _leaky(w0 * x + b0).astype(act_dtype)                # (H0, TB)

    # Hidden layers 1..6: MXU matmuls, N = TB lane-dense, f32 accumulation.
    # Bias-add + ReLU stay in f32 (no bf16 VPU on v5e); one cast per layer.
    for i in range(1, n_hidden):
        w = params[2 * i][...]                               # (H_i, H_{i-1})
        b = params[2 * i + 1][...]                           # (H_i, 1) f32
        z = jnp.dot(w, h, preferred_element_type=jnp.float32) + b   # (H_i, TB) f32
        h = _leaky(z).astype(act_dtype)

    # Final layer: M=1 matmul == per-column dot -> VPU mul + XLU sublane reduce.
    w_out = params[-2][...].astype(jnp.float32)              # (H_last, 1)
    b_out = params[-1][...]                                  # (1, 1) f32
    out = jnp.sum(w_out * h.astype(jnp.float32), axis=0, keepdims=True) + b_out
    out_ref[...] = out.astype(out_ref.dtype)                 # (1, TB) lane-dense store


def init_params(key, param_dtype=jnp.float32):
    """PyTorch-default-style init; returns folded kernel params + raw reference params.

    Fold (eval-mode BN of hidden layer i folded into linear i+1):
        scale_i = gamma_i / sqrt(var_i + eps)
        shift_i = beta_i - mean_i * scale_i
        W'_{i+1} = W_{i+1} @ diag(scale_i)
        b'_{i+1} = W_{i+1} @ shift_i + b_{i+1}
    """
    dims_in = [INPUT_DIM] + HIDDEN_DIMS
    dims_out = HIDDEN_DIMS + [OUTPUT_DIM]

    linears = []
    for d_in, d_out in zip(dims_in, dims_out):
        key, kw, kb = jax.random.split(key, 3)
        bound = 1.0 / math.sqrt(d_in)
        w = jax.random.uniform(kw, (d_out, d_in), jnp.float32, -bound, bound)
        b = jax.random.uniform(kb, (d_out,), jnp.float32, -bound, bound)
        linears.append((w, b))

    bn = []
    for d in HIDDEN_DIMS:
        gamma = jnp.ones((d,), jnp.float32)
        beta = jnp.zeros((d,), jnp.float32)
        r_mean = jnp.zeros((d,), jnp.float32)
        r_var = jnp.ones((d,), jnp.float32)
        bn.append((gamma, beta, r_mean, r_var))

    folded = []
    w0, b0 = linears[0]
    folded.append((w0, b0.reshape(-1, 1)))                   # no BN before layer 0
    for i in range(1, len(HIDDEN_DIMS)):
        gamma, beta, r_mean, r_var = bn[i - 1]
        scale = gamma / jnp.sqrt(r_var + BN_EPS)
        shift = beta - r_mean * scale
        w, b = linears[i]
        folded.append((w * scale[None, :], (w @ shift + b).reshape(-1, 1)))
    # Final linear: fold the last hidden layer's BN in.
    gamma, beta, r_mean, r_var = bn[-1]
    scale = gamma / jnp.sqrt(r_var + BN_EPS)
    shift = beta - r_mean * scale
    w_out, b_out = linears[-1]
    w_out_f = (w_out * scale[None, :]).T                     # stored as (H_last, 1)
    b_out_f = (w_out @ shift + b_out).reshape(1, 1)
    folded.append((w_out_f, b_out_f))

    flat = []
    for w, b in folded:
        flat.append(w.astype(param_dtype))   # bf16 here targets v6e/v7x MXUs
        flat.append(b.astype(jnp.float32))   # biases / elementwise stay f32
    return flat, (linears, bn)


def electron_optics_forward(x, flat_params, *, tb=512):
    """Pallas wrapper. x: (B, INPUT_DIM) -> (B, OUTPUT_DIM)."""
    B, in_dim = x.shape
    assert in_dim == INPUT_DIM

    # Tile selection (perf feedback):
    #   * tb is a multiple of 256 (fills the 256-wide MXU streaming dim, v6e/v7x),
    #   * capped so the grid keeps >=2 steps when B allows it (v7x megacore split),
    #   * >=256 so per-grid-step pipeline overhead is amortized.
    tb = _round_up(max(tb, 256), 256)
    tb = min(tb, _round_up(pl.cdiv(B, 2), 256))

    # Pad the batch to a multiple of tb: no ragged last block -> lane-dense
    # unmasked output stores, and no compute on uninitialized lanes.
    B_pad = _round_up(B, tb)
    if B_pad != B:
        x = jnp.pad(x, ((0, B_pad - B), (0, 0)))

    grid = (B_pad // tb,)
    xT = x.T                                                 # (INPUT_DIM, B_pad)

    # Parameters: full-array blocks with a constant index_map -> DMA'd once,
    # VMEM-resident across all grid steps.
    param_specs = [pl.BlockSpec(p.shape, lambda i: (0, 0)) for p in flat_params]

    flops = 2 * B_pad * sum(d_in * d_out for d_in, d_out in
                            zip([INPUT_DIM] + HIDDEN_DIMS, HIDDEN_DIMS + [OUTPUT_DIM]))
    bytes_accessed = (4 * B_pad * (INPUT_DIM + OUTPUT_DIM)
                      + sum(int(p.size) * p.dtype.itemsize for p in flat_params))

    outT = pl.pallas_call(
        mlp_kernel,
        out_shape=jax.ShapeDtypeStruct((OUTPUT_DIM, B_pad), jnp.float32),
        grid=grid,
        in_specs=[pl.BlockSpec((INPUT_DIM, tb), lambda i: (0, i))] + param_specs,
        out_specs=pl.BlockSpec((OUTPUT_DIM, tb), lambda i: (0, i)),
        compiler_params=pltpu.CompilerParams(
            dimension_semantics=("parallel",),   # megacore split on v7x
            vmem_limit_bytes=16 * 1024 * 1024,   # actual footprint is only a few MiB
        ),
        cost_estimate=pl.CostEstimate(
            flops=flops, transcendentals=0, bytes_accessed=bytes_accessed),
    )(xT, *flat_params)
    return outT.T[:B]                                        # (B, OUTPUT_DIM)


def reference_forward(x, packed):
    """Pure-JAX reference matching PyTorch eval-mode semantics (unfolded BN)."""
    linears, bn = packed
    h = x
    for i in range(len(HIDDEN_DIMS)):
        w, b = linears[i]
        gamma, beta, r_mean, r_var = bn[i]
        z = h @ w.T + b
        z = jnp.where(z >= 0, z, LEAK * z)                   # LeakyReLU(leak=0.0)
        h = (z - r_mean) / jnp.sqrt(r_var + BN_EPS) * gamma + beta  # BN (eval)
        # Dropout(p=0.2): identity in eval mode.
    w_out, b_out = linears[-1]
    return h @ w_out.T + b_out


if __name__ == "__main__":
    key = jax.random.PRNGKey(0)
    key, kx = jax.random.split(key)
    B = 1000                                 # not a multiple of tb -> exercises host padding
    x = jax.random.normal(kx, (B, INPUT_DIM), jnp.float32)

    # f32 params: exact eval-mode semantics, tight tolerance (default tb=512 -> 2 grid steps).
    flat_params, packed = init_params(key)
    out = jax.block_until_ready(electron_optics_forward(x, flat_params))
    ref = reference_forward(x, packed)
    assert out.shape == (B, OUTPUT_DIM), out.shape
    assert jnp.allclose(out, ref, atol=1e-4, rtol=1e-4)

    # bf16 weight/activation path (full-rate MXU on v6e/v7x); looser tolerance expected.
    flat_params_bf16, _ = init_params(key, param_dtype=jnp.bfloat16)
    out_bf16 = jax.block_until_ready(electron_optics_forward(x, flat_params_bf16))
    assert out_bf16.shape == (B, OUTPUT_DIM), out_bf16.shape
    assert jnp.allclose(out_bf16, ref, atol=5e-2, rtol=5e-2)

    print("KERNEL_OK")
</pallas_src>

<mosaic_0001>
module attributes {stable_mosaic.version = 11 : i64} {
  func.func @mlp_kernel(%arg0: i32, %arg1: memref<1x512xf32, #tpu.memory_space<vmem>>, %arg2: memref<32x1xf32, #tpu.memory_space<vmem>>, %arg3: memref<32x1xf32, #tpu.memory_space<vmem>>, %arg4: memref<64x32xf32, #tpu.memory_space<vmem>>, %arg5: memref<64x1xf32, #tpu.memory_space<vmem>>, %arg6: memref<128x64xf32, #tpu.memory_space<vmem>>, %arg7: memref<128x1xf32, #tpu.memory_space<vmem>>, %arg8: memref<256x128xf32, #tpu.memory_space<vmem>>, %arg9: memref<256x1xf32, #tpu.memory_space<vmem>>, %arg10: memref<128x256xf32, #tpu.memory_space<vmem>>, %arg11: memref<128x1xf32, #tpu.memory_space<vmem>>, %arg12: memref<64x128xf32, #tpu.memory_space<vmem>>, %arg13: memref<64x1xf32, #tpu.memory_space<vmem>>, %arg14: memref<32x64xf32, #tpu.memory_space<vmem>>, %arg15: memref<32x1xf32, #tpu.memory_space<vmem>>, %arg16: memref<32x1xf32, #tpu.memory_space<vmem>>, %arg17: memref<1x1xf32, #tpu.memory_space<vmem>>, %arg18: memref<1x512xf32, #tpu.memory_space<vmem>>) attributes {dimension_semantics = [#tpu.dimension_semantics<parallel>], iteration_bounds = array<i64: 2>, scalar_prefetch = 0 : i64, scratch_operands = 0 : i64, tpu.core_type = #tpu.core_type<tc>, window_params = [{transform_indices = @transform_0, window_bounds = array<i64: 1, 512>}, {pipeline_mode = #tpu.pipeline_mode<synchronous>, transform_indices = @transform_1, window_bounds = array<i64: 32, 1>}, {pipeline_mode = #tpu.pipeline_mode<synchronous>, transform_indices = @transform_2, window_bounds = array<i64: 32, 1>}, {pipeline_mode = #tpu.pipeline_mode<synchronous>, transform_indices = @transform_3, window_bounds = array<i64: 64, 32>}, {pipeline_mode = #tpu.pipeline_mode<synchronous>, transform_indices = @transform_4, window_bounds = array<i64: 64, 1>}, {pipeline_mode = #tpu.pipeline_mode<synchronous>, transform_indices = @transform_5, window_bounds = array<i64: 128, 64>}, {pipeline_mode = #tpu.pipeline_mode<synchronous>, transform_indices = @transform_6, window_bounds = array<i64: 128, 1>}, {pipeline_mode = #tpu.pipeline_mode<synchronous>, transform_indices = @transform_7, window_bounds = array<i64: 256, 128>}, {pipeline_mode = #tpu.pipeline_mode<synchronous>, transform_indices = @transform_8, window_bounds = array<i64: 256, 1>}, {pipeline_mode = #tpu.pipeline_mode<synchronous>, transform_indices = @transform_9, window_bounds = array<i64: 128, 256>}, {pipeline_mode = #tpu.pipeline_mode<synchronous>, transform_indices = @transform_10, window_bounds = array<i64: 128, 1>}, {pipeline_mode = #tpu.pipeline_mode<synchronous>, transform_indices = @transform_11, window_bounds = array<i64: 64, 128>}, {pipeline_mode = #tpu.pipeline_mode<synchronous>, transform_indices = @transform_12, window_bounds = array<i64: 64, 1>}, {pipeline_mode = #tpu.pipeline_mode<synchronous>, transform_indices = @transform_13, window_bounds = array<i64: 32, 64>}, {pipeline_mode = #tpu.pipeline_mode<synchronous>, transform_indices = @transform_14, window_bounds = array<i64: 32, 1>}, {pipeline_mode = #tpu.pipeline_mode<synchronous>, transform_indices = @transform_15, window_bounds = array<i64: 32, 1>}, {pipeline_mode = #tpu.pipeline_mode<synchronous>, transform_indices = @transform_16, window_bounds = array<i64: 1, 1>}, {transform_indices = @transform_17, window_bounds = array<i64: 1, 512>}]} {
    %c0 = arith.constant 0 : index
    %c0_0 = arith.constant 0 : index
    %0 = vector.load %arg1[%c0, %c0_0] : memref<1x512xf32, #tpu.memory_space<vmem>>, vector<1x512xf32>
    %c0_1 = arith.constant 0 : index
    %c0_2 = arith.constant 0 : index
    %1 = vector.load %arg2[%c0_1, %c0_2] : memref<32x1xf32, #tpu.memory_space<vmem>>, vector<32x1xf32>
    %c0_3 = arith.constant 0 : index
    %c0_4 = arith.constant 0 : index
    %2 = vector.load %arg3[%c0_3, %c0_4] : memref<32x1xf32, #tpu.memory_space<vmem>>, vector<32x1xf32>
    %3 = vector.broadcast %1 : vector<32x1xf32> to vector<32x512xf32>
    %4 = vector.broadcast %0 : vector<1x512xf32> to vector<32x512xf32>
    %5 = arith.mulf %3, %4 : vector<32x512xf32>
    %6 = vector.broadcast %2 : vector<32x1xf32> to vector<32x512xf32>
    %7 = arith.addf %5, %6 : vector<32x512xf32>
    %cst = arith.constant 0.000000e+00 : f32
    %8 = vector.broadcast %cst : f32 to vector<32x512xf32>
    %9 = arith.maximumf %7, %8 : vector<32x512xf32>
    %c0_5 = arith.constant 0 : index
    %c0_6 = arith.constant 0 : index
    %10 = vector.load %arg4[%c0_5, %c0_6] : memref<64x32xf32, #tpu.memory_space<vmem>>, vector<64x32xf32>
    %c0_7 = arith.constant 0 : index
    %c0_8 = arith.constant 0 : index
    %11 = vector.load %arg5[%c0_7, %c0_8] : memref<64x1xf32, #tpu.memory_space<vmem>>, vector<64x1xf32>
    %cst_9 = arith.constant dense<0.000000e+00> : vector<64x512xf32>
    %12 = tpu.matmul %10, %9, %cst_9 {dimension_numbers = #tpu.dot_dimension_numbers<[1], [0], [0], [1], [0, 0, 1, 1], [], []>} : vector<64x32xf32>, vector<32x512xf32>, vector<64x512xf32> -> vector<64x512xf32>
    %13 = vector.broadcast %11 : vector<64x1xf32> to vector<64x512xf32>
    %14 = arith.addf %12, %13 : vector<64x512xf32>
    %cst_10 = arith.constant 0.000000e+00 : f32
    %15 = vector.broadcast %cst_10 : f32 to vector<64x512xf32>
    %16 = arith.maximumf %14, %15 : vector<64x512xf32>
    %c0_11 = arith.constant 0 : index
    %c0_12 = arith.constant 0 : index
    %17 = vector.load %arg6[%c0_11, %c0_12] : memref<128x64xf32, #tpu.memory_space<vmem>>, vector<128x64xf32>
    %c0_13 = arith.constant 0 : index
    %c0_14 = arith.constant 0 : index
    %18 = vector.load %arg7[%c0_13, %c0_14] : memref<128x1xf32, #tpu.memory_space<vmem>>, vector<128x1xf32>
    %cst_15 = arith.constant dense<0.000000e+00> : vector<128x512xf32>
    %19 = tpu.matmul %17, %16, %cst_15 {dimension_numbers = #tpu.dot_dimension_numbers<[1], [0], [0], [1], [0, 0, 1, 1], [], []>} : vector<128x64xf32>, vector<64x512xf32>, vector<128x512xf32> -> vector<128x512xf32>
    %20 = vector.broadcast %18 : vector<128x1xf32> to vector<128x512xf32>
    %21 = arith.addf %19, %20 : vector<128x512xf32>
    %cst_16 = arith.constant 0.000000e+00 : f32
    %22 = vector.broadcast %cst_16 : f32 to vector<128x512xf32>
    %23 = arith.maximumf %21, %22 : vector<128x512xf32>
    %c0_17 = arith.constant 0 : index
    %c0_18 = arith.constant 0 : index
    %24 = vector.load %arg8[%c0_17, %c0_18] : memref<256x128xf32, #tpu.memory_space<vmem>>, vector<256x128xf32>
    %c0_19 = arith.constant 0 : index
    %c0_20 = arith.constant 0 : index
    %25 = vector.load %arg9[%c0_19, %c0_20] : memref<256x1xf32, #tpu.memory_space<vmem>>, vector<256x1xf32>
    %cst_21 = arith.constant dense<0.000000e+00> : vector<256x512xf32>
    %26 = tpu.matmul %24, %23, %cst_21 {dimension_numbers = #tpu.dot_dimension_numbers<[1], [0], [0], [1], [0, 0, 1, 1], [], []>} : vector<256x128xf32>, vector<128x512xf32>, vector<256x512xf32> -> vector<256x512xf32>
    %27 = vector.broadcast %25 : vector<256x1xf32> to vector<256x512xf32>
    %28 = arith.addf %26, %27 : vector<256x512xf32>
    %cst_22 = arith.constant 0.000000e+00 : f32
    %29 = vector.broadcast %cst_22 : f32 to vector<256x512xf32>
    %30 = arith.maximumf %28, %29 : vector<256x512xf32>
    %c0_23 = arith.constant 0 : index
    %c0_24 = arith.constant 0 : index
    %31 = vector.load %arg10[%c0_23, %c0_24] : memref<128x256xf32, #tpu.memory_space<vmem>>, vector<128x256xf32>
    %c0_25 = arith.constant 0 : index
    %c0_26 = arith.constant 0 : index
    %32 = vector.load %arg11[%c0_25, %c0_26] : memref<128x1xf32, #tpu.memory_space<vmem>>, vector<128x1xf32>
    %cst_27 = arith.constant dense<0.000000e+00> : vector<128x512xf32>
    %33 = tpu.matmul %31, %30, %cst_27 {dimension_numbers = #tpu.dot_dimension_numbers<[1], [0], [0], [1], [0, 0, 1, 1], [], []>} : vector<128x256xf32>, vector<256x512xf32>, vector<128x512xf32> -> vector<128x512xf32>
    %34 = vector.broadcast %32 : vector<128x1xf32> to vector<128x512xf32>
    %35 = arith.addf %33, %34 : vector<128x512xf32>
    %cst_28 = arith.constant 0.000000e+00 : f32
    %36 = vector.broadcast %cst_28 : f32 to vector<128x512xf32>
    %37 = arith.maximumf %35, %36 : vector<128x512xf32>
    %c0_29 = arith.constant 0 : index
    %c0_30 = arith.constant 0 : index
    %38 = vector.load %arg12[%c0_29, %c0_30] : memref<64x128xf32, #tpu.memory_space<vmem>>, vector<64x128xf32>
    %c0_31 = arith.constant 0 : index
    %c0_32 = arith.constant 0 : index
    %39 = vector.load %arg13[%c0_31, %c0_32] : memref<64x1xf32, #tpu.memory_space<vmem>>, vector<64x1xf32>
    %cst_33 = arith.constant dense<0.000000e+00> : vector<64x512xf32>
    %40 = tpu.matmul %38, %37, %cst_33 {dimension_numbers = #tpu.dot_dimension_numbers<[1], [0], [0], [1], [0, 0, 1, 1], [], []>} : vector<64x128xf32>, vector<128x512xf32>, vector<64x512xf32> -> vector<64x512xf32>
    %41 = vector.broadcast %39 : vector<64x1xf32> to vector<64x512xf32>
    %42 = arith.addf %40, %41 : vector<64x512xf32>
    %cst_34 = arith.constant 0.000000e+00 : f32
    %43 = vector.broadcast %cst_34 : f32 to vector<64x512xf32>
    %44 = arith.maximumf %42, %43 : vector<64x512xf32>
    %c0_35 = arith.constant 0 : index
    %c0_36 = arith.constant 0 : index
    %45 = vector.load %arg14[%c0_35, %c0_36] : memref<32x64xf32, #tpu.memory_space<vmem>>, vector<32x64xf32>
    %c0_37 = arith.constant 0 : index
    %c0_38 = arith.constant 0 : index
    %46 = vector.load %arg15[%c0_37, %c0_38] : memref<32x1xf32, #tpu.memory_space<vmem>>, vector<32x1xf32>
    %cst_39 = arith.constant dense<0.000000e+00> : vector<32x512xf32>
    %47 = tpu.matmul %45, %44, %cst_39 {dimension_numbers = #tpu.dot_dimension_numbers<[1], [0], [0], [1], [0, 0, 1, 1], [], []>} : vector<32x64xf32>, vector<64x512xf32>, vector<32x512xf32> -> vector<32x512xf32>
    %48 = vector.broadcast %46 : vector<32x1xf32> to vector<32x512xf32>
    %49 = arith.addf %47, %48 : vector<32x512xf32>
    %cst_40 = arith.constant 0.000000e+00 : f32
    %50 = vector.broadcast %cst_40 : f32 to vector<32x512xf32>
    %51 = arith.maximumf %49, %50 : vector<32x512xf32>
    %c0_41 = arith.constant 0 : index
    %c0_42 = arith.constant 0 : index
    %52 = vector.load %arg16[%c0_41, %c0_42] : memref<32x1xf32, #tpu.memory_space<vmem>>, vector<32x1xf32>
    %c0_43 = arith.constant 0 : index
    %c0_44 = arith.constant 0 : index
    %53 = vector.load %arg17[%c0_43, %c0_44] : memref<1x1xf32, #tpu.memory_space<vmem>>, vector<1x1xf32>
    %54 = vector.broadcast %52 : vector<32x1xf32> to vector<32x512xf32>
    %55 = arith.mulf %54, %51 : vector<32x512xf32>
    %cst_45 = arith.constant dense<0.000000e+00> : vector<512xf32>
    %56 = vector.multi_reduction <add>, %55, %cst_45 [0] : vector<32x512xf32> to vector<512xf32>
    %57 = vector.shape_cast %56 : vector<512xf32> to vector<1x512xf32>
    %58 = vector.broadcast %53 : vector<1x1xf32> to vector<1x512xf32>
    %59 = arith.addf %57, %58 : vector<1x512xf32>
    %c0_46 = arith.constant 0 : index
    %c0_47 = arith.constant 0 : index
    %60 = vector.load %arg18[%c0_46, %c0_47] : memref<1x512xf32, #tpu.memory_space<vmem>>, vector<1x512xf32>
    tpu.vector_store %arg18[%c0_46, %c0_47], %59 {strides = array<i32>} : memref<1x512xf32, #tpu.memory_space<vmem>>, vector<1x512xf32>,
    return
  }
  func.func @transform_0(%arg0: i32) -> (i32, i32) {
    %c0_i32 = arith.constant 0 : i32
    %c0_i32_0 = arith.constant 0 : i32
    return %c0_i32, %arg0 : i32, i32
  }
  func.func @transform_1(%arg0: i32) -> (i32, i32) {
    %c0_i32 = arith.constant 0 : i32
    %c0_i32_0 = arith.constant 0 : i32
    %c0_i32_1 = arith.constant 0 : i32
    return %c0_i32, %c0_i32_0 : i32, i32
  }
  func.func @transform_2(%arg0: i32) -> (i32, i32) {
    %c0_i32 = arith.constant 0 : i32
    %c0_i32_0 = arith.constant 0 : i32
    %c0_i32_1 = arith.constant 0 : i32
    return %c0_i32, %c0_i32_0 : i32, i32
  }
  func.func @transform_3(%arg0: i32) -> (i32, i32) {
    %c0_i32 = arith.constant 0 : i32
    %c0_i32_0 = arith.constant 0 : i32
    %c0_i32_1 = arith.constant 0 : i32
    return %c0_i32, %c0_i32_0 : i32, i32
  }
  func.func @transform_4(%arg0: i32) -> (i32, i32) {
    %c0_i32 = arith.constant 0 : i32
    %c0_i32_0 = arith.constant 0 : i32
    %c0_i32_1 = arith.constant 0 : i32
    return %c0_i32, %c0_i32_0 : i32, i32
  }
  func.func @transform_5(%arg0: i32) -> (i32, i32) {
    %c0_i32 = arith.constant 0 : i32
    %c0_i32_0 = arith.constant 0 : i32
    %c0_i32_1 = arith.constant 0 : i32
    return %c0_i32, %c0_i32_0 : i32, i32
  }
  func.func @transform_6(%arg0: i32) -> (i32, i32) {
    %c0_i32 = arith.constant 0 : i32
    %c0_i32_0 = arith.constant 0 : i32
    %c0_i32_1 = arith.constant 0 : i32
    return %c0_i32, %c0_i32_0 : i32, i32
  }
  func.func @transform_7(%arg0: i32) -> (i32, i32) {
    %c0_i32 = arith.constant 0 : i32
    %c0_i32_0 = arith.constant 0 : i32
    %c0_i32_1 = arith.constant 0 : i32
    return %c0_i32, %c0_i32_0 : i32, i32
  }
  func.func @transform_8(%arg0: i32) -> (i32, i32) {
    %c0_i32 = arith.constant 0 : i32
    %c0_i32_0 = arith.constant 0 : i32
    %c0_i32_1 = arith.constant 0 : i32
    return %c0_i32, %c0_i32_0 : i32, i32
  }
  func.func @transform_9(%arg0: i32) -> (i32, i32) {
    %c0_i32 = arith.constant 0 : i32
    %c0_i32_0 = arith.constant 0 : i32
    %c0_i32_1 = arith.constant 0 : i32
    return %c0_i32, %c0_i32_0 : i32, i32
  }
  func.func @transform_10(%arg0: i32) -> (i32, i32) {
    %c0_i32 = arith.constant 0 : i32
    %c0_i32_0 = arith.constant 0 : i32
    %c0_i32_1 = arith.constant 0 : i32
    return %c0_i32, %c0_i32_0 : i32, i32
  }
  func.func @transform_11(%arg0: i32) -> (i32, i32) {
    %c0_i32 = arith.constant 0 : i32
    %c0_i32_0 = arith.constant 0 : i32
    %c0_i32_1 = arith.constant 0 : i32
    return %c0_i32, %c0_i32_0 : i32, i32
  }
  func.func @transform_12(%arg0: i32) -> (i32, i32) {
    %c0_i32 = arith.constant 0 : i32
    %c0_i32_0 = arith.constant 0 : i32
    %c0_i32_1 = arith.constant 0 : i32
    return %c0_i32, %c0_i32_0 : i32, i32
  }
  func.func @transform_13(%arg0: i32) -> (i32, i32) {
    %c0_i32 = arith.constant 0 : i32
    %c0_i32_0 = arith.constant 0 : i32
    %c0_i32_1 = arith.constant 0 : i32
    return %c0_i32, %c0_i32_0 : i32, i32
  }
  func.func @transform_14(%arg0: i32) -> (i32, i32) {
    %c0_i32 = arith.constant 0 : i32
    %c0_i32_0 = arith.constant 0 : i32
    %c0_i32_1 = arith.constant 0 : i32
    return %c0_i32, %c0_i32_0 : i32, i32
  }
  func.func @transform_15(%arg0: i32) -> (i32, i32) {
    %c0_i32 = arith.constant 0 : i32
    %c0_i32_0 = arith.constant 0 : i32
    %c0_i32_1 = arith.constant 0 : i32
    return %c0_i32, %c0_i32_0 : i32, i32
  }
  func.func @transform_16(%arg0: i32) -> (i32, i32) {
    %c0_i32 = arith.constant 0 : i32
    %c0_i32_0 = arith.constant 0 : i32
    %c0_i32_1 = arith.constant 0 : i32
    return %c0_i32, %c0_i32_0 : i32, i32
  }
  func.func @transform_17(%arg0: i32) -> (i32, i32) {
    %c0_i32 = arith.constant 0 : i32
    %c0_i32_0 = arith.constant 0 : i32
    return %c0_i32, %arg0 : i32, i32
  }
}

</mosaic_0001>

<bundles_post_ra>
// kernel: tpu_custom_call.1
= control target key start
LH: loop header
LB: loop body
LE: loop exit
PB: predicated region body
PF: predicated region fallthrough
CT: control target
= control target key end

     0   :  { %s6105_s0 = inlined_call_operand.vmem [shape: f32[1,1024], index: 0, kind: input, shape index: {}]   ;;  %s6106_s1 = inlined_call_operand.vmem [shape: f32[32,1], index: 1, kind: input, shape index: {}]   ;;  %s6107_s2 = inlined_call_operand.vmem [shape: f32[32,1], index: 2, kind: input, shape index: {}]   ;;  %s6108_s3 = inlined_call_operand.vmem [shape: f32[64,32], index: 3, kind: input, shape index: {}]   ;;  %s6109_s4 = inlined_call_operand.vmem [shape: f32[64,1], index: 4, kind: input, shape index: {}]   ;;  %s6110_s5 = inlined_call_operand.vmem [shape: f32[128,64], index: 5, kind: input, shape index: {}]   ;;  %s6111_s6 = inlined_call_operand.vmem [shape: f32[128,1], index: 6, kind: input, shape index: {}]   ;;  %s6112_s7 = inlined_call_operand.vmem [shape: f32[256,128], index: 7, kind: input, shape index: {}]   ;;  %s6113_s8 = inlined_call_operand.vmem [shape: f32[256,1], index: 8, kind: input, shape index: {}]   ;;  %s6114_s9 = inlined_call_operand.vmem [shape: f32[128,256], index: 9, kind: input, shape index: {}]   ;;  %s6115_s10 = inlined_call_operand.vmem [shape: f32[128,1], index: 10, kind: input, shape index: {}]   ;;  %s6116_s11 = inlined_call_operand.vmem [shape: f32[64,128], index: 11, kind: input, shape index: {}]   ;;  %s6117_s12 = inlined_call_operand.vmem [shape: f32[64,1], index: 12, kind: input, shape index: {}]   ;;  %s6118_s13 = inlined_call_operand.vmem [shape: f32[32,64], index: 13, kind: input, shape index: {}]   ;;  %s6119_s14 = inlined_call_operand.vmem [shape: f32[32,1], index: 14, kind: input, shape index: {}]   ;;  %s6120_s15 = inlined_call_operand.vmem [shape: f32[32,1], index: 15, kind: input, shape index: {}]   ;;  %s6121_s16 = inlined_call_operand.<no memory space> [shape: f32[1,1], index: 16, kind: input, shape index: {}]   ;;  %s6122_s17 = inlined_call_operand.hbm [shape: f32[1,1024], index: 17, kind: output, shape index: {}]  }
   0x1   :  { %6177 = sst [smem:[#allocation45_spill]] %s6105_s0  ;;  %v22_v0 = vstv %s6121_s16 }
   0x2   :  { %6178 = sst [smem:[#allocation46_spill]] %s6106_s1  ;;  %23 = vst [vmem:[#allocation2] sm:$0x1] %v22_v0 }
   0x3   :  { %6179 = sst [smem:[#allocation47_spill]] %s6107_s2 }
   0x4   :  { %6180 = sst [smem:[#allocation48_spill]] %s6109_s4 }
   0x5   :  { %6181 = sst [smem:[#allocation49_spill]] %s6111_s6 }
   0x6   :  { %24 = vsyncpa [#allocation4], 0 }
   0x7   :  { %26 = vsyncpa [#allocation4 + $0x1], 0  ;;  %s3858_s26 = smov 0   ;;  %s3860_s27 = smov 0  }
   0x8   :  { %s3862_s28 = smov 0   ;;  %s3864_s29 = smov 0  }
   0x9 LB: > { %6182 = sst [smem:[#allocation6_spill]] %s3758_s28  ;;  %s6124_s16 = sadd.s32 4294967295, %s3762_s29   ;;  %s3762_s29 = sphi %s3864_s29, %s6415_s29   ;;  %s3758_s28 = sphi %s3862_s28, %s6417_s28   ;;  %s3754_s27 = sphi %s3860_s27, %s6419_s27   ;;  %s3750_s26 = sphi %s3858_s26, %s6418_s26  }
   0xa   : > { %s3535_s0 = sadd.s32 4294967294, %s3762_s29   ;;  %s3881_s30 = sadd.s32 1, %s3762_s29  }
   0xb   : > { %6183 = sst [smem:[#allocation7_spill]] %s3881_s30  ;;  %s401_s18 = sadd.s32 1, %s3758_s28 }
   0xc   : > { %s398_s19 = ssub.s32 %s3762_s29, %s3881_s30  ;;  %p411_p0 = scmp.ne.s32.totalorder %s3758_s28, %s3754_s27 }
   0xd   : > { %p399_p1 = scmp.eq.s32.totalorder %s398_s19, 0  ;;  %p412_p2 = scmp.eq.s32.totalorder %s6124_s16, 1 }
   0xe   : > { %p417_p3 = scmp.ne.s32.totalorder %s3754_s27, %s3750_s26  ;;  %p418_p4 = scmp.eq.s32.totalorder %s3535_s0, 1 }
   0xf   : > { %s3893_s1 = scalar_select %p399_p1, %s3758_s28, %s401_s18  }
  0x10   : > { %p3895_p5 = por %p412_p2, %p411_p0  ;;  %p3899_p6 = por %p418_p4, %p417_p3 }
  0x11   : > { %6184 = sst [smem:[#allocation8_spill]] %s3893_s1  ;;  %p3538_p7 = scmp.ge.s32.totalorder %s3762_s29, 1 }
  0x12   : > { %p492_p8 = scmp.lt.s32.totalorder %s3762_s29, 3 }
  0x14   : > { %p493_p9 = pnand %p3538_p7, %p492_p8 }
  0x16   : > { %496 = sbr.rel (%p493_p9) target bundleno = 1880 (0x758), region = 88 }
  0x1b   : > { %s6187_s2 = sld [smem:[#allocation47_spill]]  ;;  %v3764_v4 = vmov 0   ;;  %v1464_v34 = vld [vmem:[%s6113_s8 + $0x78] sm:$0xff]  ;;  %v1463_v36 = vld [vmem:[%s6113_s8 + $0x70] sm:$0xff]  ;;  %v1462_v37 = vld [vmem:[%s6113_s8 + $0x68] sm:$0xff]  ;;  %s6191_s22 = sadd.s32 4294967295, %s3762_s29  }
  0x1c   : > { %s6188_s19 = sld [smem:[#allocation46_spill]]  ;;  %3699 = vset.pattern.permute.xlu2 %v3764_v4  ;;  %3698 = vset.pattern.permute.xlu1 %v3764_v4  ;;  %v1480_v35 = vld [vmem:[%s6113_s8 + $0xf8] sm:$0xff]  ;;  %v1461_v38 = vld [vmem:[%s6113_s8 + $0x60] sm:$0xff]  ;;  %v1479_v39 = vld [vmem:[%s6113_s8 + $0xf0] sm:$0xff]  ;;  %s4024_s23 = sshll.u32 %s6191_s22, 2  ;;  %vm711_vm0 = vcmask 261120  }
  0x1d   : > { %3697 = vset.pattern.permute.xlu0 %v3764_v4  ;;  %s6189_s4 = sld [smem:[#allocation48_spill]]  ;;  %v1478_v40 = vld [vmem:[%s6113_s8 + $0xe8] sm:$0xff]  ;;  %p544_p10 = scmp.lt.s32.totalorder %s4024_s23, 7  ;;  %v1477_v41 = vld [vmem:[%s6113_s8 + $0xe0] sm:$0xff]  ;;  %v1460_v42 = vld [vmem:[%s6113_s8 + $0x58] sm:$0xff]  ;;  %vm1044_vm1 = vcmask 523264  }
  0x1e   : > { %s6190_s6 = sld [smem:[#allocation49_spill]]  ;;  %v1459_v43 = vld [vmem:[%s6113_s8 + $0x50] sm:$0xff]  ;;  %v1458_v44 = vld [vmem:[%s6113_s8 + $0x48] sm:$0xff]  ;;  %v1476_v46 = vld [vmem:[%s6113_s8 + $0xd8] sm:$0xff]  ;;  %s3474_s1 = scalar_lea.hbm %s6122_s17, %s4024_s23  ;;  %vm3451_vm2 = vcmask 1040384   ;;  %vm3453_vm3 = vcmask 1042434  }
  0x1f   : > { %s545_s16 = scalar_select %p544_p10, %s4024_s23, 7  ;;  %v1475_v47 = vld [vmem:[%s6113_s8 + $0xd0] sm:$0xff]  ;;  %v1474_v58 = vld [vmem:[%s6113_s8 + $0xc8] sm:$0xff]  ;;  %v1457_v59 = vld [vmem:[%s6113_s8 + $0x40] sm:$0xff]  ;;  %vm3455_vm4 = vcmask 1041408  }
  0x20   : > { %v1456_v60 = vld [vmem:[%s6113_s8 + $0x38] sm:$0xff]  ;;  %s3478_s25 = sshll.u32 %s3474_s1, 4  ;;  %s3479_s25 = int_to_ptr.hbm [resolvable:$true] %s3478_s25 }
  0x21   : > { %v557_v1 = vld [vmem:[%s6187_s2 + $0x18] sm:$0xff]  ;;  %v556_v2 = vld [vmem:[%s6187_s2 + $0x10] sm:$0xff]  ;;  %v554_v8 = vld [vmem:[%s6187_s2] sm:$0xff]  ;;  %s3714_s0 = sshra.s32 %s3479_s25, 4  ;;  %s3715_s0 = int_to_ptr.hbm [resolvable:$true] %s3714_s0 }
  0x22   : > { %v553_v3 = vld [vmem:[%s6188_s19 + $0x18] sm:$0xff]  ;;  %620 = vperm.xlu1 %3698, %v557_v1   ;;  %615 = vperm.xlu2 %3699, %v556_v2   ;;  %v551_v5 = vld [vmem:[%s6188_s19 + $0x8] sm:$0xff]  ;;  %v552_v6 = vld [vmem:[%s6188_s19 + $0x10] sm:$0xff]  ;;  %s3716_s18 = scalar_lea.hbm %s3715_s0, 4  ;;  %p3721_p0 = scmp.lt.s32.totalorder %s3715_s0, %s6122_s17 }
  0x23   : > { %575 = vperm.xlu0 %3697, %v553_v3   ;;  %v550_v7 = vld [vmem:[%s6188_s19] sm:$0xff]  ;;  %v555_v9 = vld [vmem:[%s6187_s2 + $0x8] sm:$0xff]  ;;  %v670_v10 = vld [vmem:[%s6189_s4 + $0x38] sm:$0xff]  ;;  %s6192_s2 = sld [smem:[#allocation45_spill]]  ;;  %s540_s19 = sand.u32 1, %s3754_s27  }
  0x24   : > { %v668_v11 = vld [vmem:[%s6189_s4 + $0x28] sm:$0xff]  ;;  %v669_v12 = vld [vmem:[%s6189_s4 + $0x30] sm:$0xff]  ;;  %v667_v13 = vld [vmem:[%s6189_s4 + $0x20] sm:$0xff]  ;;  %s3539_s28 = sshll.u32 %s540_s19, 2  ;;  %s3464_s23 = scalar_lea.sflag [#allocation4], %s540_s19 }
  0x25   : > { %v665_v14 = vld [vmem:[%s6189_s4 + $0x10] sm:$0xff]  ;;  %v666_v15 = vld [vmem:[%s6189_s4 + $0x18] sm:$0xff]  ;;  %v664_v16 = vld [vmem:[%s6189_s4 + $0x8] sm:$0xff]  ;;  %s542_s22 = scalar_lea.vmem [#allocation3], %s3539_s28  ;;  %p3717_p11 = scmp.ne.s32.totalorder %s3715_s0, %s3716_s18 }
  0x26   : > { %v963_v17 = vld [vmem:[%s6190_s6 + $0x78] sm:$0xff]  ;;  %v663_v18 = vld [vmem:[%s6189_s4] sm:$0xff]  ;;  %v962_v19 = vld [vmem:[%s6190_s6 + $0x70] sm:$0xff]  ;;  %s3476_s24 = sshll.u32 %s542_s22, 4  ;;  %s3477_s24 = int_to_ptr.vmem [resolvable:$true] %s3476_s24 }
  0x27   : > { %v960_v20 = vld [vmem:[%s6190_s6 + $0x60] sm:$0xff]  ;;  %v961_v21 = vld [vmem:[%s6190_s6 + $0x68] sm:$0xff]  ;;  %v959_v22 = vld [vmem:[%s6190_s6 + $0x58] sm:$0xff]  ;;  %p3718_p12 = pnand %p3717_p11, %p3895_p5 }
  0x28   : > { %v957_v23 = vld [vmem:[%s6190_s6 + $0x48] sm:$0xff]  ;;  %v958_v24 = vld [vmem:[%s6190_s6 + $0x50] sm:$0xff]  ;;  %v956_v25 = vld [vmem:[%s6190_s6 + $0x40] sm:$0xff] }
  0x29   : > { %v954_v26 = vld [vmem:[%s6190_s6 + $0x30] sm:$0xff]  ;;  %v955_v27 = vld [vmem:[%s6190_s6 + $0x38] sm:$0xff]  ;;  %v953_v28 = vld [vmem:[%s6190_s6 + $0x28] sm:$0xff]  ;;  %s546_s4 = scalar_lea.vmem %s6192_s2, %s545_s16  ;;  %p3719_p13 = pneg %p3718_p12 }
  0x2a   : > { %565 = vperm.xlu1 %3698, %v551_v5   ;;  %560 = vperm.xlu2 %3699, %v550_v7   ;;  %v951_v29 = vld [vmem:[%s6190_s6 + $0x18] sm:$0xff]  ;;  %v952_v30 = vld [vmem:[%s6190_s6 + $0x20] sm:$0xff]  ;;  %v950_v31 = vld [vmem:[%s6190_s6 + $0x10] sm:$0xff] }
  0x2b   : > { %570 = vperm.xlu0 %3697, %v552_v6   ;;  %v948_v32 = vld [vmem:[%s6190_s6] sm:$0xff]  ;;  %v949_v33 = vld [vmem:[%s6190_s6 + $0x8] sm:$0xff]  ;;  %s3720_s6 = scalar_lea.hbm %s6122_s17, 8 }
  0x2c   : > { %v549_v45 = vld [vmem:[%s546_s4] sm:$0xf]  ;;  %p3722_p1 = scmp.lt.s32.totalorder %s3720_s6, %s3716_s18 }
  0x2d   : > { %v579_v48 = vperm.slane %v549_v45, 0  ;;  %v580_v49 = vperm.slane %v549_v45, 1  ;;  %v581_v50 = vperm.slane %v549_v45, 2  ;;  %v4049_v51 = vperm.slane %v549_v45, 3  ;;  %v1454_v45 = vld [vmem:[%s6113_s8 + $0x28] sm:$0xff] }
  0x2e   : > { %p3723_p2 = por %p3722_p1, %p3721_p0 }
  0x30   : > { %p3724_p3 = pnand %p3723_p2, %p3719_p13 }
  0x32   : > { %605 = vperm.xlu1 %3698, %v554_v8   ;;  %708 = vperm.xlu2 %3699, %v670_v10  }
  0x33   : > { %610 = vperm.xlu0 %3697, %v555_v9  }
  0x3a   : > { %698 = vperm.xlu1 %3698, %v668_v11   ;;  %693 = vperm.xlu2 %3699, %v667_v13   ;;  %v1473_v13 = vld [vmem:[%s6113_s8 + $0xc0] sm:$0xff] }
  0x3b   : > { %703 = vperm.xlu0 %3697, %v669_v12   ;;  %v1455_v12 = vld [vmem:[%s6113_s8 + $0x30] sm:$0xff] }
  0x42   : > { %683 = vperm.xlu1 %3698, %v665_v14   ;;  %678 = vperm.xlu2 %3699, %v664_v16   ;;  %v1472_v14 = vld [vmem:[%s6113_s8 + $0xb8] sm:$0xff] }
  0x43   : > { %688 = vperm.xlu0 %3697, %v666_v15  }
  0x4a   : > { %1041 = vperm.xlu1 %3698, %v963_v17   ;;  %1036 = vperm.xlu2 %3699, %v962_v19  }
  0x4b   : > { %673 = vperm.xlu0 %3697, %v663_v18  }
  0x52   : > { %1026 = vperm.xlu1 %3698, %v960_v20   ;;  %1021 = vperm.xlu2 %3699, %v959_v22  }
  0x53   : > { %1031 = vperm.xlu0 %3697, %v961_v21  }
  0x5a   : > { %1011 = vperm.xlu1 %3698, %v957_v23   ;;  %1006 = vperm.xlu2 %3699, %v956_v25  }
  0x5b   : > { %1016 = vperm.xlu0 %3697, %v958_v24  }
  0x62   : > { %996 = vperm.xlu1 %3698, %v954_v26   ;;  %991 = vperm.xlu2 %3699, %v953_v28  }
  0x63   : > { %1001 = vperm.xlu0 %3697, %v955_v27  }
  0x6a   : > { %981 = vperm.xlu1 %3698, %v951_v29   ;;  %976 = vperm.xlu2 %3699, %v950_v31  }
  0x6b   : > { %986 = vperm.xlu0 %3697, %v952_v30  }
  0x72   : > { %966 = vperm.xlu1 %3698, %v948_v32   ;;  %1558 = vperm.xlu2 %3699, %v1464_v34  }
  0x73   : > { %971 = vperm.xlu0 %3697, %v949_v33  }
  0x7a   : > { %1638 = vperm.xlu1 %3698, %v1480_v35   ;;  %1548 = vperm.xlu2 %3699, %v1462_v37  }
  0x7b   : > { %1553 = vperm.xlu0 %3697, %v1463_v36  }
  0x7c   : > { %v616_v1 = vpop.permute.xlu2 %615 }
  0x82   : > { %1543 = vperm.xlu1 %3698, %v1461_v38   ;;  %1628 = vperm.xlu2 %3699, %v1478_v40  }
  0x83   : > { %1633 = vperm.xlu0 %3697, %v1479_v39  }
  0x84   : > { %v561_v24 = vpop.permute.xlu2 %560 }
  0x85   : > { %v587_v30 = vmul.f32 %v579_v48, %v561_v24  ;;  %v588_v31 = vmul.f32 %v580_v49, %v561_v24  ;;  %v589_v32 = vmul.f32 %v581_v50, %v561_v24  ;;  %v590_v40 = vmul.f32 %v4049_v51, %v561_v24  ;;  %v2947_v24 = vld [vmem:[%s6117_s12 + $0x30] sm:$0xff] }
  0x8a   : > { %1623 = vperm.xlu1 %3698, %v1477_v41   ;;  %1533 = vperm.xlu2 %3699, %v1459_v43  }
  0x8b   : > { %1538 = vperm.xlu0 %3697, %v1460_v42  }
  0x92   : > { %1528 = vperm.xlu1 %3698, %v1458_v44   ;;  %1613 = vperm.xlu2 %3699, %v1475_v47  }
  0x93   : > { %1618 = vperm.xlu0 %3697, %v1476_v46   ;;  %v1471_v46 = vld [vmem:[%s6113_s8 + $0xb0] sm:$0xff] }
  0x94   : > { %v621_v52 = vpop.permute.xlu1 %620 }
  0x95   : > { %v576_v53 = vpop.permute.xlu0 %575 }
  0x96   : > { %v599_v54 = vmul.f32 %v579_v48, %v576_v53  ;;  %v600_v55 = vmul.f32 %v580_v49, %v576_v53  ;;  %v601_v56 = vmul.f32 %v581_v50, %v576_v53  ;;  %v602_v57 = vmul.f32 %v4049_v51, %v576_v53 }
  0x98   : > { %v635_v61 = vadd.f32 %v621_v52, %v599_v54  ;;  %v636_v62 = vadd.f32 %v621_v52, %v600_v55  ;;  %v637_v63 = vadd.f32 %v621_v52, %v601_v56  ;;  %v638_v0 = vadd.f32 %v621_v52, %v602_v57  ;;  %v655_v52 = vld [vmem:[%s6108_s3] sm:$0xff]  ;;  %v1470_v54 = vld [vmem:[%s6113_s8 + $0xa8] sm:$0xff]  ;;  %v1452_v55 = vld [vmem:[%s6113_s8 + $0x18] sm:$0xff] }
  0x99   : > { %v1469_v56 = vld [vmem:[%s6113_s8 + $0xa0] sm:$0xff]  ;;  %v656_v57 = vld [vmem:[%s6108_s3 + $0x8] sm:$0xff] }
  0x9a   : > { %1608 = vperm.xlu1 %3698, %v1474_v58   ;;  %v651_v2 = vmax.f32 %v635_v61, 0.0  ;;  %v652_v3 = vmax.f32 %v636_v62, 0.0  ;;  %v653_v4 = vmax.f32 %v637_v63, 0.0  ;;  %v654_v5 = vmax.f32 %v638_v0, 0.0  ;;  %1518 = vperm.xlu2 %3699, %v1456_v60   ;;  %v1451_v58 = vld [vmem:[%s6113_s8 + $0x10] sm:$0xff]  ;;  %v1450_v60 = vld [vmem:[%s6113_s8 + $0x8] sm:$0xff] }
  0x9b   : > { %1523 = vperm.xlu0 %3697, %v1457_v59   ;;  %v1468_v59 = vld [vmem:[%s6113_s8 + $0x98] sm:$0xff]  ;;  %v657_v61 = vld [vmem:[%s6108_s3 + $0x10] sm:$0xff]  ;;  %v1449_v63 = vld [vmem:[%s6113_s8] sm:$0xff] }
  0x9c   : > { %748 = vmatpush.msra.mxu0 %v651_v2  ;;  %789 = vmatpush.msra.mxu1 %v652_v3  ;;  %v566_v6 = vpop.permute.xlu1 %565  ;;  %v1467_v62 = vld [vmem:[%s6113_s8 + $0x90] sm:$0xff]  ;;  %v1466_v0 = vld [vmem:[%s6113_s8 + $0x88] sm:$0xff]  ;;  %v1465_v2 = vld [vmem:[%s6113_s8 + $0x80] sm:$0xff] }
  0x9d   : > { %830 = vmatpush.msra.mxu2 %v653_v4  ;;  %871 = vmatpush.msra.mxu3 %v654_v5  ;;  %v571_v7 = vpop.permute.xlu0 %570  ;;  %v591_v23 = vmul.f32 %v579_v48, %v566_v6  ;;  %v592_v26 = vmul.f32 %v580_v49, %v566_v6  ;;  %v593_v27 = vmul.f32 %v581_v50, %v566_v6  ;;  %v2268_v3 = vld [vmem:[%s6115_s10 + $0x78] sm:$0xff]  ;;  %v2267_v4 = vld [vmem:[%s6115_s10 + $0x70] sm:$0xff]  ;;  %v659_v5 = vld [vmem:[%s6108_s3 + $0x20] sm:$0xff] }
  0x9e   : > { %v595_v8 = vmul.f32 %v579_v48, %v571_v7  ;;  %v596_v9 = vmul.f32 %v580_v49, %v571_v7  ;;  %v597_v10 = vmul.f32 %v581_v50, %v571_v7  ;;  %v598_v11 = vmul.f32 %v4049_v51, %v571_v7  ;;  %v1453_v48 = vld [vmem:[%s6113_s8 + $0x20] sm:$0xff] }
  0x9f   : > { %v594_v28 = vmul.f32 %v4049_v51, %v566_v6  ;;  %v2266_v6 = vld [vmem:[%s6115_s10 + $0x68] sm:$0xff]  ;;  %v2265_v7 = vld [vmem:[%s6115_s10 + $0x60] sm:$0xff] }
  0xa0   : > { %v631_v15 = vadd.f32 %v616_v1, %v595_v8  ;;  %v632_v16 = vadd.f32 %v616_v1, %v596_v9  ;;  %v633_v17 = vadd.f32 %v616_v1, %v597_v10  ;;  %v634_v18 = vadd.f32 %v616_v1, %v598_v11  ;;  %v658_v1 = vld [vmem:[%s6108_s3 + $0x18] sm:$0xff]  ;;  %v660_v9 = vld [vmem:[%s6108_s3 + $0x28] sm:$0xff]  ;;  %v2263_v10 = vld [vmem:[%s6115_s10 + $0x50] sm:$0xff] }
  0xa1   : > { %v2264_v8 = vld [vmem:[%s6115_s10 + $0x58] sm:$0xff]  ;;  %v2262_v11 = vld [vmem:[%s6115_s10 + $0x48] sm:$0xff] }
  0xa2   : > { %1513 = vperm.xlu1 %3698, %v1455_v12   ;;  %v647_v19 = vmax.f32 %v631_v15, 0.0  ;;  %v648_v20 = vmax.f32 %v632_v16, 0.0  ;;  %v649_v21 = vmax.f32 %v633_v17, 0.0  ;;  %v650_v22 = vmax.f32 %v634_v18, 0.0  ;;  %1598 = vperm.xlu2 %3699, %v1472_v14   ;;  %v2261_v12 = vld [vmem:[%s6115_s10 + $0x40] sm:$0xff]  ;;  %v2260_v14 = vld [vmem:[%s6115_s10 + $0x38] sm:$0xff] }
  0xa3   : > { %1603 = vperm.xlu0 %3697, %v1473_v13   ;;  %v661_v13 = vld [vmem:[%s6108_s3 + $0x30] sm:$0xff]  ;;  %v2258_v16 = vld [vmem:[%s6115_s10 + $0x28] sm:$0xff]  ;;  %v662_v17 = vld [vmem:[%s6108_s3 + $0x38] sm:$0xff] }
  0xa4   : > { %749 = vmatpush.msra.mxu0 %v647_v19  ;;  %790 = vmatpush.msra.mxu1 %v648_v20  ;;  %v606_v25 = vpop.permute.xlu1 %605  ;;  %v2259_v15 = vld [vmem:[%s6115_s10 + $0x30] sm:$0xff]  ;;  %v2257_v18 = vld [vmem:[%s6115_s10 + $0x20] sm:$0xff]  ;;  %v2256_v19 = vld [vmem:[%s6115_s10 + $0x18] sm:$0xff] }
  0xa5   : > { %831 = vmatpush.msra.mxu2 %v649_v21  ;;  %872 = vmatpush.msra.mxu3 %v650_v22  ;;  %v611_v29 = vpop.permute.xlu0 %610  ;;  %v623_v37 = vadd.f32 %v606_v25, %v587_v30  ;;  %v624_v38 = vadd.f32 %v606_v25, %v588_v31  ;;  %v625_v39 = vadd.f32 %v606_v25, %v589_v32  ;;  %v2255_v20 = vld [vmem:[%s6115_s10 + $0x10] sm:$0xff]  ;;  %v2254_v21 = vld [vmem:[%s6115_s10 + $0x8] sm:$0xff]  ;;  %v2253_v22 = vld [vmem:[%s6115_s10] sm:$0xff] }
  0xa6   : > { %v627_v33 = vadd.f32 %v611_v29, %v591_v23  ;;  %v628_v34 = vadd.f32 %v611_v29, %v592_v26  ;;  %v629_v35 = vadd.f32 %v611_v29, %v593_v27  ;;  %v630_v36 = vadd.f32 %v611_v29, %v594_v28  ;;  %v2948_v23 = vld [vmem:[%s6117_s12 + $0x38] sm:$0xff]  ;;  %v2945_v26 = vld [vmem:[%s6117_s12 + $0x20] sm:$0xff]  ;;  %v2943_v28 = vld [vmem:[%s6117_s12 + $0x10] sm:$0xff] }
  0xa7   : > { %v626_v47 = vadd.f32 %v606_v25, %v590_v40  ;;  %v639_v49 = vmax.f32 %v623_v37, 0.0  ;;  %v640_v50 = vmax.f32 %v624_v38, 0.0  ;;  %v641_v51 = vmax.f32 %v625_v39, 0.0  ;;  %v2946_v25 = vld [vmem:[%s6117_s12 + $0x28] sm:$0xff]  ;;  %v2944_v27 = vld [vmem:[%s6117_s12 + $0x18] sm:$0xff]  ;;  %v2941_v30 = vld [vmem:[%s6117_s12] sm:$0xff] }
  0xa8   : > { %v643_v41 = vmax.f32 %v627_v33, 0.0  ;;  %v644_v42 = vmax.f32 %v628_v34, 0.0  ;;  %v645_v43 = vmax.f32 %v629_v35, 0.0  ;;  %v646_v44 = vmax.f32 %v630_v36, 0.0  ;;  %v2942_v29 = vld [vmem:[%s6117_s12 + $0x8] sm:$0xff]  ;;  %v3189_v31 = vld [vmem:[%s6119_s14] sm:$0xff] }
  0xa9   : > { %v642_v53 = vmax.f32 %v626_v47, 0.0  ;;  %v3190_v32 = vld [vmem:[%s6119_s14 + $0x8] sm:$0xff]  ;;  %v3191_v33 = vld [vmem:[%s6119_s14 + $0x10] sm:$0xff]  ;;  %v3192_v34 = vld [vmem:[%s6119_s14 + $0x18] sm:$0xff] }
  0xaa   : > { %750 = vmatpush.msra.mxu0 %v643_v41  ;;  %791 = vmatpush.msra.mxu1 %v644_v42  ;;  %v3357_v35 = vld [vmem:[%s6120_s15] sm:$0xff]  ;;  %v3358_v36 = vld [vmem:[%s6120_s15 + $0x8] sm:$0xff]  ;;  %v3359_v37 = vld [vmem:[%s6120_s15 + $0x10] sm:$0xff] }
  0xab   : > { %832 = vmatpush.msra.mxu2 %v645_v43  ;;  %873 = vmatpush.msra.mxu3 %v646_v44  ;;  %v3360_v38 = vld [vmem:[%s6120_s15 + $0x18] sm:$0xff]  ;;  %v3361_v39 = vld [vmem:[#allocation2] sm:$0x1] }
  0xac   : > { %1508 = vperm.xlu0 %3697, %v1454_v45   ;;  %1593 = vperm.xlu1 %3698, %v1471_v46  }
  0xad   : > { %1503 = vperm.xlu2 %3699, %v1453_v48   ;;  %751 = vmatpush.msra.mxu0 %v639_v49 }
  0xae   : > { %792 = vmatpush.msra.mxu1 %v640_v50  ;;  %833 = vmatpush.msra.mxu2 %v641_v51 }
  0xaf   : > { %874 = vmatpush.msra.mxu3 %v642_v53  ;;  %3541 = vmatmul.msk.f32.vlgmr.msra.gmra.mxu0 %vm711_vm0, %v655_v52 }
  0xb0   : > { %3549 = vmatmul.msk.f32.vlgmr.msra.gmra.mxu1 %vm711_vm0, %v655_v52  ;;  %3557 = vmatmul.msk.f32.vlgmr.msra.gmra.mxu2 %vm711_vm0, %v655_v52 }
  0xb1   : > { %3565 = vmatmul.msk.f32.vlgmr.msra.gmra.mxu3 %vm711_vm0, %v655_v52 }
  0xb4   : > { %1588 = vperm.xlu0 %3697, %v1470_v54   ;;  %1498 = vperm.xlu1 %3698, %v1452_v55  }
  0xb5   : > { %1583 = vperm.xlu2 %3699, %v1469_v56  }
  0xb7   : > { %3542 = vmatmul.msk.f32.gmra.mxu0 %vm711_vm0, %v656_v57 }
  0xb8   : > { %3550 = vmatmul.msk.f32.gmra.mxu1 %vm711_vm0, %v656_v57  ;;  %3558 = vmatmul.msk.f32.gmra.mxu2 %vm711_vm0, %v656_v57 }
  0xb9   : > { %3566 = vmatmul.msk.f32.gmra.mxu3 %vm711_vm0, %v656_v57 }
  0xbc   : > { %1493 = vperm.xlu0 %3697, %v1451_v58   ;;  %1578 = vperm.xlu1 %3698, %v1468_v59  }
  0xbd   : > { %1488 = vperm.xlu2 %3699, %v1450_v60  }
  0xbf   : > { %3543 = vmatmul.msk.f32.gmra.mxu0 %vm711_vm0, %v657_v61 }
  0xc0   : > { %3551 = vmatmul.msk.f32.gmra.mxu1 %vm711_vm0, %v657_v61  ;;  %3559 = vmatmul.msk.f32.gmra.mxu2 %vm711_vm0, %v657_v61 }
  0xc1   : > { %3567 = vmatmul.msk.f32.gmra.mxu3 %vm711_vm0, %v657_v61 }
  0xc4   : > { %1573 = vperm.xlu0 %3697, %v1467_v62   ;;  %1483 = vperm.xlu1 %3698, %v1449_v63   ;;  %v709_v62 = vpop.permute.xlu2 %708  ;;  %v704_v63 = vpop.permute.xlu0 %703 }
  0xc5   : > { %1568 = vperm.xlu2 %3699, %v1466_v0  }
  0xc7   : > { %3544 = vmatmul.msk.f32.gmra.mxu0 %vm711_vm0, %v658_v1 }
  0xc8   : > { %3552 = vmatmul.msk.f32.gmra.mxu1 %vm711_vm0, %v658_v1  ;;  %3560 = vmatmul.msk.f32.gmra.mxu2 %vm711_vm0, %v658_v1 }
  0xc9   : > { %3568 = vmatmul.msk.f32.gmra.mxu3 %vm711_vm0, %v658_v1 }
  0xcc   : > { %1563 = vperm.xlu0 %3697, %v1465_v2   ;;  %2346 = vperm.xlu1 %3698, %v2268_v3  }
  0xcd   : > { %2341 = vperm.xlu2 %3699, %v2267_v4   ;;  %v699_v4 = vpop.permute.xlu1 %698 }
  0xcf   : > { %3545 = vmatmul.msk.f32.gmra.mxu0 %vm711_vm0, %v659_v5 }
  0xd0   : > { %3553 = vmatmul.msk.f32.gmra.mxu1 %vm711_vm0, %v659_v5  ;;  %3561 = vmatmul.msk.f32.gmra.mxu2 %vm711_vm0, %v659_v5 }
  0xd1   : > { %3569 = vmatmul.msk.f32.gmra.mxu3 %vm711_vm0, %v659_v5  ;;  %v694_v5 = vpop.permute.xlu2 %693 }
  0xd4   : > { %2336 = vperm.xlu0 %3697, %v2266_v6   ;;  %2331 = vperm.xlu1 %3698, %v2265_v7  }
  0xd5   : > { %2326 = vperm.xlu2 %3699, %v2264_v8  }
  0xd7   : > { %3546 = vmatmul.msk.f32.gmra.mxu0 %vm711_vm0, %v660_v9 }
  0xd8   : > { %3554 = vmatmul.msk.f32.gmra.mxu1 %vm711_vm0, %v660_v9  ;;  %3562 = vmatmul.msk.f32.gmra.mxu2 %vm711_vm0, %v660_v9 }
  0xd9   : > { %3570 = vmatmul.msk.f32.gmra.mxu3 %vm711_vm0, %v660_v9 }
  0xdc   : > { %2321 = vperm.xlu0 %3697, %v2263_v10   ;;  %2316 = vperm.xlu1 %3698, %v2262_v11  }
  0xdd   : > { %2311 = vperm.xlu2 %3699, %v2261_v12   ;;  %v689_v12 = vpop.permute.xlu0 %688 }
  0xdf   : > { %3547 = vmatmul.msk.f32.gmra.mxu0 %vm711_vm0, %v661_v13 }
  0xe0   : > { %3555 = vmatmul.msk.f32.gmra.mxu1 %vm711_vm0, %v661_v13  ;;  %3563 = vmatmul.msk.f32.gmra.mxu2 %vm711_vm0, %v661_v13 }
  0xe1   : > { %3571 = vmatmul.msk.f32.gmra.mxu3 %vm711_vm0, %v661_v13 }
  0xe4   : > { %2306 = vperm.xlu0 %3697, %v2260_v14   ;;  %2301 = vperm.xlu1 %3698, %v2259_v15  }
  0xe5   : > { %2296 = vperm.xlu2 %3699, %v2258_v16  }
  0xe7   : > { %3548 = vmatmul.msk.f32.gmra.mxu0 %vm711_vm0, %v662_v17 }
  0xe8   : > { %3556 = vmatmul.msk.f32.gmra.mxu1 %vm711_vm0, %v662_v17  ;;  %3564 = vmatmul.msk.f32.gmra.mxu2 %vm711_vm0, %v662_v17 }
  0xe9   : > { %3572 = vmatmul.msk.f32.gmra.mxu3 %vm711_vm0, %v662_v17 }
  0xec   : > { %2291 = vperm.xlu0 %3697, %v2257_v18   ;;  %2286 = vperm.xlu1 %3698, %v2256_v19  }
  0xed   : > { %2281 = vperm.xlu2 %3699, %v2255_v20  }
  0xf4   : > { %2276 = vperm.xlu0 %3697, %v2254_v21   ;;  %2271 = vperm.xlu1 %3698, %v2253_v22  }
  0xf5   : > { %2986 = vperm.xlu2 %3699, %v2948_v23  }
  0xfc   : > { %2981 = vperm.xlu0 %3697, %v2947_v24   ;;  %2976 = vperm.xlu1 %3698, %v2946_v25  }
  0xfd   : > { %2971 = vperm.xlu2 %3699, %v2945_v26   ;;  %v684_v26 = vpop.permute.xlu1 %683 }
 0x104   : > { %2966 = vperm.xlu0 %3697, %v2944_v27   ;;  %2961 = vperm.xlu1 %3698, %v2943_v28  }
 0x105   : > { %2956 = vperm.xlu2 %3699, %v2942_v29  }
 0x10c   : > { %2951 = vperm.xlu0 %3697, %v2941_v30   ;;  %3195 = vperm.xlu1 %3698, %v3189_v31  }
 0x10d   : > { %3200 = vperm.xlu2 %3699, %v3190_v32  }
 0x114   : > { %3205 = vperm.xlu0 %3697, %v3191_v33   ;;  %3210 = vperm.xlu1 %3698, %v3192_v34  }
 0x115   : > { %3364 = vperm.xlu2 %3699, %v3357_v35  }
 0x11c   : > { %3369 = vperm.xlu0 %3697, %v3358_v36   ;;  %3374 = vperm.xlu1 %3698, %v3359_v37   ;;  %v679_v36 = vpop.permute.xlu2 %678 }
 0x11d   : > { %3379 = vperm.xlu2 %3699, %v3360_v38  }
 0x124   : > { %3436 = vperm.xlu0 %3697, %v3361_v39  }
 0x12c   : > { %v4264_v40 = vpop.f32.mrf.mxu0 }
 0x12d   : > { %v4266_v41 = vpop.f32.mrf.mxu1 }
 0x133   : > { %v4268_v42 = vpop.f32.mrf.mxu2 }
 0x134   : > { %v4270_v43 = vpop.f32.mrf.mxu3  ;;  %v4272_v44 = vpop.f32.mrf.mxu0 }
 0x135   : > { %v4274_v45 = vpop.f32.mrf.mxu1 }
 0x13b   : > { %v4276_v46 = vpop.f32.mrf.mxu2 }
 0x13c   : > { %v4278_v47 = vpop.f32.mrf.mxu3  ;;  %v759_v48 = vpop.f32.mrf.mxu0 }
 0x13d   : > { %v800_v49 = vpop.f32.mrf.mxu1  ;;  %v760_v32 = vadd.f32 %v759_v48, %v684_v26 }
 0x13e   : > { %v801_v37 = vadd.f32 %v800_v49, %v684_v26 }
 0x143   : > { %v4280_v50 = vpop.f32.mrf.mxu2 }
 0x144   : > { %v4282_v51 = vpop.f32.mrf.mxu3  ;;  %v762_v52 = vpop.f32.mrf.mxu0 }
 0x145   : > { %v803_v53 = vpop.f32.mrf.mxu1  ;;  %v763_v23 = vadd.f32 %v762_v52, %v689_v12 }
 0x146   : > { %v804_v27 = vadd.f32 %v803_v53, %v689_v12 }
 0x14b   : > { %v4284_v54 = vpop.f32.mrf.mxu2 }
 0x14c   : > { %v4286_v55 = vpop.f32.mrf.mxu3  ;;  %v765_v56 = vpop.f32.mrf.mxu0 }
 0x14d   : > { %v806_v57 = vpop.f32.mrf.mxu1  ;;  %v766_v19 = vadd.f32 %v765_v56, %v694_v5  ;;  %v757_v56 = vadd.f32 %v4272_v44, %v679_v36  ;;  %v908_v44 = vmax.f32 %v760_v32, 0.0 }
 0x14e   : > { %v807_v21 = vadd.f32 %v806_v57, %v694_v5 }
 0x14f   : > { %v916_v35 = vmax.f32 %v766_v19, 0.0  ;;  %v935_v19 = vld [vmem:[%s6110_s5 + $0x18] sm:$0xff] }
 0x150   : > { %v917_v39 = vmax.f32 %v807_v21, 0.0  ;;  %v937_v21 = vld [vmem:[%s6110_s5 + $0x28] sm:$0xff] }
 0x153   : > { %v847_v58 = vpop.f32.mrf.mxu2 }
 0x154   : > { %v4288_v59 = vpop.f32.mrf.mxu3  ;;  %v768_v60 = vpop.f32.mrf.mxu0  ;;  %v848_v48 = vadd.f32 %v847_v58, %v694_v5 }
 0x155   : > { %v809_v61 = vpop.f32.mrf.mxu1  ;;  %v769_v15 = vadd.f32 %v768_v60, %v699_v4  ;;  %v912_v60 = vmax.f32 %v763_v23, 0.0  ;;  %v939_v23 = vld [vmem:[%s6110_s5 + $0x38] sm:$0xff] }
 0x156   : > { %v810_v17 = vadd.f32 %v809_v61, %v699_v4  ;;  %v674_v61 = vpop.permute.xlu0 %673 }
 0x157   : > { %v920_v25 = vmax.f32 %v769_v15, 0.0  ;;  %v754_v49 = vadd.f32 %v4264_v40, %v674_v61  ;;  %v904_v40 = vmax.f32 %v757_v56, 0.0 }
 0x158   : > { %v921_v31 = vmax.f32 %v810_v17, 0.0 }
 0x15b   : > { %v850_v0 = vpop.f32.mrf.mxu2 }
 0x15c   : > { %v891_v1 = vpop.f32.mrf.mxu3  ;;  %v771_v2 = vpop.f32.mrf.mxu0  ;;  %v851_v38 = vadd.f32 %v850_v0, %v699_v4  ;;  %v889_v0 = vadd.f32 %v4288_v59, %v694_v5  ;;  %v842_v59 = vadd.f32 %v4280_v50, %v684_v26  ;;  %v932_v50 = vld [vmem:[%s6110_s5] sm:$0xff] }
 0x15d   : > { %v812_v3 = vpop.f32.mrf.mxu1  ;;  %v772_v9 = vadd.f32 %v771_v2, %v704_v63  ;;  %v892_v57 = vadd.f32 %v891_v1, %v699_v4  ;;  %v798_v2 = vadd.f32 %v4274_v45, %v679_v36  ;;  %v795_v1 = vadd.f32 %v4266_v41, %v674_v61 }
 0x15e   : > { %v813_v13 = vadd.f32 %v812_v3, %v704_v63  ;;  %v845_v4 = vadd.f32 %v4284_v54, %v689_v12  ;;  %v909_v45 = vmax.f32 %v801_v37, 0.0  ;;  %v922_v58 = vmax.f32 %v851_v38, 0.0 }
 0x15f   : > { %v924_v20 = vmax.f32 %v772_v9, 0.0  ;;  %v905_v5 = vmax.f32 %v798_v2, 0.0  ;;  %v883_v41 = vadd.f32 %v4282_v51, %v684_v26  ;;  %v919_v54 = vmax.f32 %v889_v0, 0.0  ;;  %v942_v26 = vld [vmem:[%s6110_s5 + $0x50] sm:$0xff] }
 0x160   : > { %v925_v22 = vmax.f32 %v813_v13, 0.0  ;;  %v900_v9 = vmax.f32 %v754_v49, 0.0  ;;  %v836_v13 = vadd.f32 %v4268_v42, %v674_v61  ;;  %v933_v42 = vld [vmem:[%s6110_s5 + $0x8] sm:$0xff] }
 0x161   : > { %v911_v15 = vmax.f32 %v883_v41, 0.0 }
 0x162   : > { %v902_v17 = vmax.f32 %v836_v13, 0.0 }
 0x163   : > { %v853_v6 = vpop.f32.mrf.mxu2 }
 0x164   : > { %v894_v7 = vpop.f32.mrf.mxu3  ;;  %v774_v8 = vpop.f32.mrf.mxu0  ;;  %v854_v28 = vadd.f32 %v853_v6, %v704_v63  ;;  %v886_v6 = vadd.f32 %v4286_v55, %v689_v12  ;;  %v901_v55 = vmax.f32 %v795_v1, 0.0  ;;  %v880_v12 = vadd.f32 %v4278_v47, %v679_v36 }
 0x165   : > { %v775_v10 = vadd.f32 %v774_v8, %v709_v62  ;;  %v815_v11 = vpop.f32.mrf.mxu1  ;;  %v895_v33 = vadd.f32 %v894_v7, %v704_v63  ;;  %v923_v7 = vmax.f32 %v892_v57, 0.0  ;;  %v918_v8 = vmax.f32 %v848_v48, 0.0 }
 0x166   : > { %v816_v14 = vadd.f32 %v815_v11, %v709_v62  ;;  %v926_v63 = vmax.f32 %v854_v28, 0.0  ;;  %v914_v11 = vmax.f32 %v845_v4, 0.0  ;;  %v915_v51 = vmax.f32 %v886_v6, 0.0  ;;  %v944_v28 = vld [vmem:[%s6110_s5 + $0x60] sm:$0xff] }
 0x167   : > { %v928_v16 = vmax.f32 %v775_v10, 0.0  ;;  %v927_v3 = vmax.f32 %v895_v33, 0.0  ;;  %v839_v10 = vadd.f32 %v4276_v46, %v679_v36  ;;  %v877_v46 = vadd.f32 %v4270_v43, %v674_v61  ;;  %v934_v43 = vld [vmem:[%s6110_s5 + $0x10] sm:$0xff] }
 0x168   : > { %v929_v18 = vmax.f32 %v816_v14, 0.0  ;;  %v910_v14 = vmax.f32 %v842_v59, 0.0  ;;  %v907_v47 = vmax.f32 %v880_v12, 0.0 }
 0x169   : > { %1101 = vmatpush.msrb.mxu0 %v928_v16  ;;  %v906_v16 = vmax.f32 %v839_v10, 0.0 }
 0x16a   : > { %1166 = vmatpush.msrb.mxu1 %v929_v18  ;;  %v903_v18 = vmax.f32 %v877_v46, 0.0 }
 0x16b   : > { %v856_v24 = vpop.f32.mrf.mxu2  ;;  %1102 = vmatpush.msrb.mxu0 %v924_v20  ;;  %v936_v20 = vld [vmem:[%s6110_s5 + $0x20] sm:$0xff] }
 0x16c   : > { %v857_v29 = vadd.f32 %v856_v24, %v709_v62  ;;  %v897_v30 = vpop.f32.mrf.mxu3  ;;  %1167 = vmatpush.msrb.mxu1 %v925_v22  ;;  %v938_v22 = vld [vmem:[%s6110_s5 + $0x30] sm:$0xff]  ;;  %v940_v24 = vld [vmem:[%s6110_s5 + $0x40] sm:$0xff] }
 0x16d   : > { %v898_v34 = vadd.f32 %v897_v30, %v709_v62  ;;  %1103 = vmatpush.msrb.mxu0 %v920_v25  ;;  %v913_v62 = vmax.f32 %v804_v27, 0.0  ;;  %v941_v25 = vld [vmem:[%s6110_s5 + $0x48] sm:$0xff]  ;;  %v943_v27 = vld [vmem:[%s6110_s5 + $0x58] sm:$0xff]  ;;  %v946_v30 = vld [vmem:[%s6110_s5 + $0x70] sm:$0xff] }
 0x16e   : > { %1168 = vmatpush.msrb.mxu1 %v921_v31  ;;  %v930_v52 = vmax.f32 %v857_v29, 0.0  ;;  %v945_v29 = vld [vmem:[%s6110_s5 + $0x68] sm:$0xff]  ;;  %v947_v31 = vld [vmem:[%s6110_s5 + $0x78] sm:$0xff] }
 0x16f   : > { %1104 = vmatpush.msrb.mxu0 %v916_v35  ;;  %v931_v53 = vmax.f32 %v898_v34, 0.0 }
 0x170   : > { %1169 = vmatpush.msrb.mxu1 %v917_v39  ;;  %1231 = vmatpush.msrb.mxu2 %v930_v52 }
 0x171   : > { %1296 = vmatpush.msrb.mxu3 %v931_v53  ;;  %1105 = vmatpush.msrb.mxu0 %v912_v60 }
 0x172   : > { %1170 = vmatpush.msrb.mxu1 %v913_v62  ;;  %1232 = vmatpush.msrb.mxu2 %v926_v63 }
 0x173   : > { %1297 = vmatpush.msrb.mxu3 %v927_v3  ;;  %1106 = vmatpush.msrb.mxu0 %v908_v44 }
 0x174   : > { %1171 = vmatpush.msrb.mxu1 %v909_v45  ;;  %1233 = vmatpush.msrb.mxu2 %v922_v58 }
 0x175   : > { %1298 = vmatpush.msrb.mxu3 %v923_v7  ;;  %1107 = vmatpush.msrb.mxu0 %v904_v40 }
 0x176   : > { %1172 = vmatpush.msrb.mxu1 %v905_v5  ;;  %1234 = vmatpush.msrb.mxu2 %v918_v8 }
 0x177   : > { %1299 = vmatpush.msrb.mxu3 %v919_v54  ;;  %1108 = vmatpush.msrb.mxu0 %v900_v9 }
 0x178   : > { %1173 = vmatpush.msrb.mxu1 %v901_v55  ;;  %1235 = vmatpush.msrb.mxu2 %v914_v11 }
 0x179   : > { %1300 = vmatpush.msrb.mxu3 %v915_v51  ;;  %3573 = vmatmul.msk.f32.vlgmr.msrb.gmra.mxu0 %vm1044_vm1, %v932_v50 }
 0x17a   : > { %3589 = vmatmul.msk.f32.vlgmr.msrb.gmra.mxu1 %vm1044_vm1, %v932_v50  ;;  %1236 = vmatpush.msrb.mxu2 %v910_v14 }
 0x17b   : > { %1301 = vmatpush.msrb.mxu3 %v911_v15 }
 0x17c   : > { %1237 = vmatpush.msrb.mxu2 %v906_v16 }
 0x17d   : > { %1302 = vmatpush.msrb.mxu3 %v907_v47 }
 0x17e   : > { %1238 = vmatpush.msrb.mxu2 %v902_v17 }
 0x17f   : > { %1303 = vmatpush.msrb.mxu3 %v903_v18  ;;  %3605 = vmatmul.msk.f32.vlgmr.msrb.gmra.mxu2 %vm1044_vm1, %v932_v50  ;;  %v4499_v18 = vpop.permute.xlu1 %1041 }
 0x180   : > { %3621 = vmatmul.msk.f32.vlgmr.msrb.gmra.mxu3 %vm1044_vm1, %v932_v50 }
 0x181   : > { %3574 = vmatmul.msk.f32.gmra.mxu0 %vm1044_vm1, %v933_v42 }
 0x182   : > { %3590 = vmatmul.msk.f32.gmra.mxu1 %vm1044_vm1, %v933_v42 }
 0x187   : > { %3606 = vmatmul.msk.f32.gmra.mxu2 %vm1044_vm1, %v933_v42 }
 0x188   : > { %3622 = vmatmul.msk.f32.gmra.mxu3 %vm1044_vm1, %v933_v42 }
 0x189   : > { %3575 = vmatmul.msk.f32.gmra.mxu0 %vm1044_vm1, %v934_v43 }
 0x18a   : > { %3591 = vmatmul.msk.f32.gmra.mxu1 %vm1044_vm1, %v934_v43 }
 0x18f   : > { %3607 = vmatmul.msk.f32.gmra.mxu2 %vm1044_vm1, %v934_v43 }
 0x190   : > { %3623 = vmatmul.msk.f32.gmra.mxu3 %vm1044_vm1, %v934_v43 }
 0x191   : > { %3576 = vmatmul.msk.f32.gmra.mxu0 %vm1044_vm1, %v935_v19 }
 0x192   : > { %3592 = vmatmul.msk.f32.gmra.mxu1 %vm1044_vm1, %v935_v19 }
 0x197   : > { %3608 = vmatmul.msk.f32.gmra.mxu2 %vm1044_vm1, %v935_v19 }
 0x198   : > { %3624 = vmatmul.msk.f32.gmra.mxu3 %vm1044_vm1, %v935_v19  ;;  %v4505_v19 = vpop.permute.xlu2 %1036 }
 0x199   : > { %3577 = vmatmul.msk.f32.gmra.mxu0 %vm1044_vm1, %v936_v20 }
 0x19a   : > { %3593 = vmatmul.msk.f32.gmra.mxu1 %vm1044_vm1, %v936_v20 }
 0x19f   : > { %3609 = vmatmul.msk.f32.gmra.mxu2 %vm1044_vm1, %v936_v20 }
 0x1a0   : > { %3625 = vmatmul.msk.f32.gmra.mxu3 %vm1044_vm1, %v936_v20 }
 0x1a1   : > { %3578 = vmatmul.msk.f32.gmra.mxu0 %vm1044_vm1, %v937_v21 }
 0x1a2   : > { %3594 = vmatmul.msk.f32.gmra.mxu1 %vm1044_vm1, %v937_v21 }
 0x1a7   : > { %3610 = vmatmul.msk.f32.gmra.mxu2 %vm1044_vm1, %v937_v21 }
 0x1a8   : > { %3626 = vmatmul.msk.f32.gmra.mxu3 %vm1044_vm1, %v937_v21 }
 0x1a9   : > { %3579 = vmatmul.msk.f32.gmra.mxu0 %vm1044_vm1, %v938_v22 }
 0x1aa   : > { %3595 = vmatmul.msk.f32.gmra.mxu1 %vm1044_vm1, %v938_v22 }
 0x1af   : > { %3611 = vmatmul.msk.f32.gmra.mxu2 %vm1044_vm1, %v938_v22 }
 0x1b0   : > { %3627 = vmatmul.msk.f32.gmra.mxu3 %vm1044_vm1, %v938_v22  ;;  %v4507_v22 = vpop.permute.xlu0 %1031 }
 0x1b1   : > { %3580 = vmatmul.msk.f32.gmra.mxu0 %vm1044_vm1, %v939_v23 }
 0x1b2   : > { %3596 = vmatmul.msk.f32.gmra.mxu1 %vm1044_vm1, %v939_v23 }
 0x1b7   : > { %3612 = vmatmul.msk.f32.gmra.mxu2 %vm1044_vm1, %v939_v23 }
 0x1b8   : > { %3628 = vmatmul.msk.f32.gmra.mxu3 %vm1044_vm1, %v939_v23  ;;  %v4509_v23 = vpop.permute.xlu1 %1026 }
 0x1b9   : > { %3581 = vmatmul.msk.f32.gmra.mxu0 %vm1044_vm1, %v940_v24 }
 0x1ba   : > { %3597 = vmatmul.msk.f32.gmra.mxu1 %vm1044_vm1, %v940_v24 }
 0x1bf   : > { %3613 = vmatmul.msk.f32.gmra.mxu2 %vm1044_vm1, %v940_v24 }
 0x1c0   : > { %3629 = vmatmul.msk.f32.gmra.mxu3 %vm1044_vm1, %v940_v24 }
 0x1c1   : > { %3582 = vmatmul.msk.f32.gmra.mxu0 %vm1044_vm1, %v941_v25 }
 0x1c2   : > { %3598 = vmatmul.msk.f32.gmra.mxu1 %vm1044_vm1, %v941_v25 }
 0x1c7   : > { %3614 = vmatmul.msk.f32.gmra.mxu2 %vm1044_vm1, %v941_v25 }
 0x1c8   : > { %3630 = vmatmul.msk.f32.gmra.mxu3 %vm1044_vm1, %v941_v25 }
 0x1c9   : > { %3583 = vmatmul.msk.f32.gmra.mxu0 %vm1044_vm1, %v942_v26 }
 0x1ca   : > { %3599 = vmatmul.msk.f32.gmra.mxu1 %vm1044_vm1, %v942_v26 }
 0x1cf   : > { %3615 = vmatmul.msk.f32.gmra.mxu2 %vm1044_vm1, %v942_v26 }
 0x1d0   : > { %3631 = vmatmul.msk.f32.gmra.mxu3 %vm1044_vm1, %v942_v26 }
 0x1d1   : > { %3584 = vmatmul.msk.f32.gmra.mxu0 %vm1044_vm1, %v943_v27 }
 0x1d2   : > { %3600 = vmatmul.msk.f32.gmra.mxu1 %vm1044_vm1, %v943_v27 }
 0x1d7   : > { %3616 = vmatmul.msk.f32.gmra.mxu2 %vm1044_vm1, %v943_v27 }
 0x1d8   : > { %3632 = vmatmul.msk.f32.gmra.mxu3 %vm1044_vm1, %v943_v27 }
 0x1d9   : > { %3585 = vmatmul.msk.f32.gmra.mxu0 %vm1044_vm1, %v944_v28 }
 0x1da   : > { %3601 = vmatmul.msk.f32.gmra.mxu1 %vm1044_vm1, %v944_v28 }
 0x1df   : > { %3617 = vmatmul.msk.f32.gmra.mxu2 %vm1044_vm1, %v944_v28 }
 0x1e0   : > { %3633 = vmatmul.msk.f32.gmra.mxu3 %vm1044_vm1, %v944_v28  ;;  %v4515_v28 = vpop.permute.xlu2 %1021 }
 0x1e1   : > { %3586 = vmatmul.msk.f32.gmra.mxu0 %vm1044_vm1, %v945_v29 }
 0x1e2   : > { %3602 = vmatmul.msk.f32.gmra.mxu1 %vm1044_vm1, %v945_v29 }
 0x1e7   : > { %3618 = vmatmul.msk.f32.gmra.mxu2 %vm1044_vm1, %v945_v29 }
 0x1e8   : > { %3634 = vmatmul.msk.f32.gmra.mxu3 %vm1044_vm1, %v945_v29  ;;  %v4517_v29 = vpop.permute.xlu0 %1016 }
 0x1e9   : > { %3587 = vmatmul.msk.f32.gmra.mxu0 %vm1044_vm1, %v946_v30 }
 0x1ea   : > { %3603 = vmatmul.msk.f32.gmra.mxu1 %vm1044_vm1, %v946_v30 }
 0x1ef   : > { %3619 = vmatmul.msk.f32.gmra.mxu2 %vm1044_vm1, %v946_v30 }
 0x1f0   : > { %3635 = vmatmul.msk.f32.gmra.mxu3 %vm1044_vm1, %v946_v30 }
 0x1f1   : > { %3588 = vmatmul.msk.f32.gmra.mxu0 %vm1044_vm1, %v947_v31 }
 0x1f2   : > { %3604 = vmatmul.msk.f32.gmra.mxu1 %vm1044_vm1, %v947_v31 }
 0x1f6   : > { %v4413_v32 = vpop.f32.mrf.mxu0 }
 0x1f7   : > { %6193 = vst [vmem:[#allocation9_spill] sm:$0xff] %v4413_v32  ;;  %v4415_v33 = vpop.f32.mrf.mxu1  ;;  %3620 = vmatmul.msk.f32.gmra.mxu2 %vm1044_vm1, %v947_v31 }
 0x1f8   : > { %6194 = vst [vmem:[#allocation10_spill] sm:$0xff] %v4415_v33  ;;  %3636 = vmatmul.msk.f32.gmra.mxu3 %vm1044_vm1, %v947_v31 }
 0x1fe   : > { %v4419_v34 = vpop.f32.mrf.mxu0 }
 0x1ff   : > { %v4421_v35 = vpop.f32.mrf.mxu1 }
 0x202   : > { %v4423_v36 = vpop.f32.mrf.mxu2 }
 0x203   : > { %6195 = vst [vmem:[#allocation11_spill] sm:$0xff] %v4423_v36  ;;  %v4425_v37 = vpop.f32.mrf.mxu3 }
 0x204   : > { %6196 = vst [vmem:[#allocation12_spill] sm:$0xff] %v4425_v37  ;;  %v4519_v37 = vpop.permute.xlu1 %1011 }
 0x206   : > { %v4427_v38 = vpop.f32.mrf.mxu0 }
 0x207   : > { %v4429_v39 = vpop.f32.mrf.mxu1 }
 0x20a   : > { %v4431_v52 = vpop.f32.mrf.mxu2 }
 0x20b   : > { %6197 = vst [vmem:[#allocation13_spill] sm:$0xff] %v4431_v52  ;;  %v4433_v56 = vpop.f32.mrf.mxu3 }
 0x20c   : > { %6198 = vst [vmem:[#allocation14_spill] sm:$0xff] %v4433_v56 }
 0x20e   : > { %v4435_v57 = vpop.f32.mrf.mxu0 }
 0x20f   : > { %v4437_v53 = vpop.f32.mrf.mxu1 }
 0x212   : > { %v4439_v60 = vpop.f32.mrf.mxu2 }
 0x213   : > { %6199 = vst [vmem:[#allocation15_spill] sm:$0xff] %v4439_v60  ;;  %v4441_v61 = vpop.f32.mrf.mxu3 }
 0x214   : > { %6200 = vst [vmem:[#allocation16_spill] sm:$0xff] %v4441_v61 }
 0x216   : > { %v4443_v2 = vpop.f32.mrf.mxu0 }
 0x217   : > { %v4445_v48 = vpop.f32.mrf.mxu1 }
 0x21a   : > { %v4447_v62 = vpop.f32.mrf.mxu2 }
 0x21b   : > { %6201 = vst [vmem:[#allocation17_spill] sm:$0xff] %v4447_v62  ;;  %v4449_v63 = vpop.f32.mrf.mxu3 }
 0x21c   : > { %6202 = vst [vmem:[#allocation18_spill] sm:$0xff] %v4449_v63 }
 0x21e   : > { %v4451_v49 = vpop.f32.mrf.mxu0 }
 0x21f   : > { %v4453_v0 = vpop.f32.mrf.mxu1 }
 0x222   : > { %v4455_v3 = vpop.f32.mrf.mxu2 }
 0x223   : > { %6203 = vst [vmem:[#allocation19_spill] sm:$0xff] %v4455_v3  ;;  %v4457_v44 = vpop.f32.mrf.mxu3  ;;  %v4526_v3 = vpop.permute.xlu2 %1006 }
 0x224   : > { %6204 = vst [vmem:[#allocation20_spill] sm:$0xff] %v4457_v44 }
 0x226   : > { %v4459_v1 = vpop.f32.mrf.mxu0 }
 0x227   : > { %v4461_v4 = vpop.f32.mrf.mxu1 }
 0x22a   : > { %v4463_v45 = vpop.f32.mrf.mxu2 }
 0x22b   : > { %6205 = vst [vmem:[#allocation21_spill] sm:$0xff] %v4463_v45  ;;  %v4465_v58 = vpop.f32.mrf.mxu3 }
 0x22c   : > { %6206 = vst [vmem:[#allocation22_spill] sm:$0xff] %v4465_v58 }
 0x22e   : > { %v4467_v6 = vpop.f32.mrf.mxu0 }
 0x22f   : > { %v4469_v7 = vpop.f32.mrf.mxu1 }
 0x232   : > { %v4471_v40 = vpop.f32.mrf.mxu2 }
 0x233   : > { %6207 = vst [vmem:[#allocation23_spill] sm:$0xff] %v4471_v40  ;;  %v4473_v59 = vpop.f32.mrf.mxu3 }
 0x234   : > { %6208 = vst [vmem:[#allocation24_spill] sm:$0xff] %v4473_v59 }
 0x236   : > { %v4475_v5 = vpop.f32.mrf.mxu0 }
 0x237   : > { %v4477_v8 = vpop.f32.mrf.mxu1 }
 0x23a   : > { %v4479_v41 = vpop.f32.mrf.mxu2 }
 0x23b   : > { %v4481_v54 = vpop.f32.mrf.mxu3 }
 0x23c   : > { %6209 = vst [vmem:[#allocation25_spill] sm:$0xff] %v4481_v54 }
 0x23e   : > { %v4483_v9 = vpop.f32.mrf.mxu0 }
 0x23f   : > { %v4485_v10 = vpop.f32.mrf.mxu1 }
 0x242   : > { %v4487_v55 = vpop.f32.mrf.mxu2 }
 0x243   : > { %v4489_v11 = vpop.f32.mrf.mxu3 }
 0x246   : > { %v1140_v50 = vpop.f32.mrf.mxu0 }
 0x247   : > { %v1205_v12 = vpop.f32.mrf.mxu1 }
 0x24a   : > { %v4491_v51 = vpop.f32.mrf.mxu2 }
 0x24b   : > { %v4493_v13 = vpop.f32.mrf.mxu3 }
 0x24e   : > { %v1143_v14 = vpop.f32.mrf.mxu0 }
 0x24f   : > { %v1208_v46 = vpop.f32.mrf.mxu1 }
 0x252   : > { %v4495_v15 = vpop.f32.mrf.mxu2 }
 0x253   : > { %v4497_v16 = vpop.f32.mrf.mxu3 }
 0x256   : > { %v1146_v47 = vpop.f32.mrf.mxu0 }
 0x257   : > { %v1211_v17 = vpop.f32.mrf.mxu1  ;;  %v1147_v33 = vadd.f32 %v1146_v47, %v4509_v23 }
 0x259   : > { %v1401_v47 = vmax.f32 %v1147_v33, 0.0 }
 0x25a   : > { %v4501_v42 = vpop.f32.mrf.mxu2 }
 0x25b   : > { %v4503_v43 = vpop.f32.mrf.mxu3 }
 0x25e   : > { %v1149_v20 = vpop.f32.mrf.mxu0 }
 0x25f   : > { %v1214_v21 = vpop.f32.mrf.mxu1  ;;  %v1150_v62 = vadd.f32 %v1149_v20, %v4507_v22  ;;  %v4534_v20 = vpop.permute.xlu1 %996 }
 0x260   : > { %v1215_v58 = vadd.f32 %v1214_v21, %v4507_v22 }
 0x262   : > { %v4511_v24 = vpop.f32.mrf.mxu2  ;;  %v1406_v21 = vmax.f32 %v1215_v58, 0.0 }
 0x263   : > { %v4513_v25 = vpop.f32.mrf.mxu3 }
 0x266   : > { %v1152_v26 = vpop.f32.mrf.mxu0 }
 0x267   : > { %v1217_v27 = vpop.f32.mrf.mxu1  ;;  %v1153_v56 = vadd.f32 %v1152_v26, %v4505_v19 }
 0x268   : > { %v1218_v60 = vadd.f32 %v1217_v27, %v4505_v19  ;;  %v1212_v27 = vadd.f32 %v1211_v17, %v4509_v23 }
 0x269   : > { %v1409_v40 = vmax.f32 %v1153_v56, 0.0  ;;  %v1141_v56 = vadd.f32 %v1140_v50, %v4517_v29 }
 0x26a   : > { %v1279_v30 = vpop.f32.mrf.mxu2  ;;  %v1410_v32 = vmax.f32 %v1218_v60, 0.0  ;;  %v1402_v54 = vmax.f32 %v1212_v27, 0.0  ;;  %v1138_v60 = vadd.f32 %v4483_v9, %v4519_v37  ;;  %v1200_v9 = vadd.f32 %v4477_v8, %v4526_v3 }
 0x26b   : > { %v1344_v31 = vpop.f32.mrf.mxu3  ;;  %v1393_v33 = vmax.f32 %v1141_v56, 0.0  ;;  %v4565_v56 = vpop.permute.xlu1 %981 }
 0x26c   : > { %v1389_v27 = vmax.f32 %v1138_v60, 0.0 }
 0x26e   : > { %v1155_v36 = vpop.f32.mrf.mxu0 }
 0x26f   : > { %v1156_v52 = vadd.f32 %v1155_v36, %v4499_v18  ;;  %v1220_v61 = vpop.f32.mrf.mxu1  ;;  %v4530_v36 = vpop.permute.xlu0 %1001 }
 0x270   : > { %v1221_v63 = vadd.f32 %v1220_v61, %v4499_v18  ;;  %v1144_v61 = vadd.f32 %v1143_v14, %v4515_v28 }
 0x271   : > { %v1413_v44 = vmax.f32 %v1156_v52, 0.0  ;;  %v1405_v52 = vmax.f32 %v1150_v62, 0.0  ;;  %v1203_v62 = vadd.f32 %v4485_v10, %v4519_v37 }
 0x272   : > { %v1414_v45 = vmax.f32 %v1221_v63, 0.0  ;;  %v1282_v59 = vpop.f32.mrf.mxu2  ;;  %v1209_v63 = vadd.f32 %v1208_v46, %v4515_v28  ;;  %v4547_v46 = vpop.permute.xlu2 %991 }
 0x273   : > { %v1347_v26 = vpop.f32.mrf.mxu3  ;;  %1641 = vmatpush.msra.mxu0 %v1413_v44  ;;  %v1206_v44 = vadd.f32 %v1205_v12, %v4517_v29  ;;  %v1283_v50 = vadd.f32 %v1282_v59, %v4505_v19  ;;  %v1280_v59 = vadd.f32 %v1279_v30, %v4507_v22  ;;  %v1390_v8 = vmax.f32 %v1203_v62, 0.0 }
 0x274   : > { %1754 = vmatpush.msra.mxu1 %v1414_v45  ;;  %v1397_v45 = vmax.f32 %v1144_v61, 0.0  ;;  %v1348_v10 = vadd.f32 %v1347_v26, %v4505_v19 }
 0x275   : > { %1642 = vmatpush.msra.mxu0 %v1409_v40  ;;  %v1398_v40 = vmax.f32 %v1209_v63, 0.0  ;;  %v1394_v17 = vmax.f32 %v1206_v44, 0.0  ;;  %v1197_v63 = vadd.f32 %v4469_v7, %v4530_v36  ;;  %v1411_v30 = vmax.f32 %v1283_v50, 0.0 }
 0x276   : > { %1755 = vmatpush.msra.mxu1 %v1410_v32  ;;  %v1135_v32 = vadd.f32 %v4475_v5, %v4526_v3  ;;  %v1132_v5 = vadd.f32 %v4467_v6, %v4530_v36  ;;  %v1277_v6 = vadd.f32 %v4511_v24, %v4509_v23  ;;  %v1194_v7 = vadd.f32 %v4461_v4, %v4534_v20 }
 0x277   : > { %1643 = vmatpush.msra.mxu0 %v1405_v52  ;;  %v4556_v52 = vpop.permute.xlu0 %986  ;;  %v1274_v24 = vadd.f32 %v4501_v42, %v4515_v28  ;;  %v1407_v60 = vmax.f32 %v1280_v59, 0.0  ;;  %v1191_v4 = vadd.f32 %v4453_v0, %v4547_v46  ;;  %v1271_v42 = vadd.f32 %v4495_v15, %v4517_v29 }
 0x278   : > { %1756 = vmatpush.msra.mxu1 %v1406_v21  ;;  %v1345_v21 = vadd.f32 %v1344_v31, %v4507_v22  ;;  %v1385_v26 = vmax.f32 %v1135_v32, 0.0  ;;  %v1342_v22 = vadd.f32 %v4513_v25, %v4509_v23  ;;  %v1412_v31 = vmax.f32 %v1348_v10, 0.0 }
 0x279   : > { %1644 = vmatpush.msra.mxu0 %v1401_v47  ;;  %v1386_v47 = vmax.f32 %v1200_v9, 0.0  ;;  %v1381_v44 = vmax.f32 %v1132_v5, 0.0  ;;  %v1339_v23 = vadd.f32 %v4503_v43, %v4515_v28  ;;  %v1188_v0 = vadd.f32 %v4445_v48, %v4556_v52 }
 0x27a   : > { %1757 = vmatpush.msra.mxu1 %v1402_v54  ;;  %v1285_v58 = vpop.f32.mrf.mxu2  ;;  %v1408_v25 = vmax.f32 %v1345_v21, 0.0  ;;  %v1336_v43 = vadd.f32 %v4497_v16, %v4517_v29  ;;  %v1404_v28 = vmax.f32 %v1342_v22, 0.0  ;;  %v1268_v15 = vadd.f32 %v4491_v51, %v4519_v37  ;;  %v4591_v50 = vpop.permute.xlu2 %976 }
 0x27b   : > { %v1286_v12 = vadd.f32 %v1285_v58, %v4499_v18  ;;  %v1350_v14 = vpop.f32.mrf.mxu3  ;;  %1645 = vmatpush.msra.mxu0 %v1397_v45  ;;  %v1382_v45 = vmax.f32 %v1197_v63, 0.0  ;;  %v1378_v58 = vmax.f32 %v1194_v7, 0.0  ;;  %v1185_v48 = vadd.f32 %v4437_v53, %v4565_v56 }
 0x27c   : > { %v1351_v54 = vadd.f32 %v1350_v14, %v4499_v18  ;;  %1758 = vmatpush.msra.mxu1 %v1398_v40  ;;  %v1129_v18 = vadd.f32 %v4459_v1, %v4534_v20  ;;  %v1126_v1 = vadd.f32 %v4451_v49, %v4547_v46  ;;  %v1123_v49 = vadd.f32 %v4443_v2, %v4556_v52 }
 0x27d   : > { %v1415_v61 = vmax.f32 %v1286_v12, 0.0  ;;  %1646 = vmatpush.msra.mxu0 %v1393_v33  ;;  %v1403_v40 = vmax.f32 %v1277_v6, 0.0  ;;  %v1120_v2 = vadd.f32 %v4435_v57, %v4565_v56  ;;  %v1399_v33 = vmax.f32 %v1274_v24, 0.0  ;;  %v6214_v6 = vld [vmem:[#allocation24_spill] sm:$0xff] }
 0x27e   : > { %v1416_v19 = vmax.f32 %v1351_v54, 0.0  ;;  %1759 = vmatpush.msra.mxu1 %v1394_v17  ;;  %v1377_v62 = vmax.f32 %v1129_v18, 0.0  ;;  %v1373_v32 = vmax.f32 %v1126_v1, 0.0  ;;  %v1374_v12 = vmax.f32 %v1191_v4, 0.0  ;;  %v6213_v18 = vld [vmem:[#allocation10_spill] sm:$0xff] }
 0x27f   : > { %1647 = vmatpush.msra.mxu0 %v1389_v27  ;;  %1867 = vmatpush.msra.mxu2 %v1415_v61  ;;  %v1333_v16 = vadd.f32 %v4493_v13, %v4519_v37  ;;  %v1400_v29 = vmax.f32 %v1339_v23, 0.0  ;;  %v1117_v57 = vadd.f32 %v4427_v38, %v4591_v50  ;;  %v1369_v14 = vmax.f32 %v1123_v49, 0.0  ;;  %v4601_v17 = vpop.permute.xlu0 %971  ;;  %v4611_v27 = vpop.permute.xlu1 %966  ;;  %v6217_v23 = vld [vmem:[#allocation19_spill] sm:$0xff]  ;;  %v6218_v49 = vld [vmem:[#allocation20_spill] sm:$0xff] }
 0x280   : > { %1760 = vmatpush.msra.mxu1 %v1390_v8  ;;  %1980 = vmatpush.msra.mxu3 %v1416_v19  ;;  %v1265_v51 = vadd.f32 %v4487_v55, %v4526_v3  ;;  %v1395_v9 = vmax.f32 %v1271_v42, 0.0  ;;  %v1182_v53 = vadd.f32 %v4429_v39, %v4591_v50  ;;  %v1370_v10 = vmax.f32 %v1188_v0, 0.0 }
 0x281   : > { %1648 = vmatpush.msra.mxu0 %v1385_v26  ;;  %1868 = vmatpush.msra.mxu2 %v1411_v30  ;;  %v1330_v37 = vadd.f32 %v4489_v11, %v4526_v3  ;;  %v1396_v13 = vmax.f32 %v1336_v43, 0.0  ;;  %v1114_v38 = vadd.f32 %v4419_v34, %v4601_v17  ;;  %v1365_v54 = vmax.f32 %v1120_v2, 0.0  ;;  %v6210_v3 = vld [vmem:[#allocation25_spill] sm:$0xff] }
 0x282   : > { %1761 = vmatpush.msra.mxu1 %v1386_v47  ;;  %1981 = vmatpush.msra.mxu3 %v1412_v31  ;;  %v1262_v55 = vadd.f32 %v4479_v41, %v4530_v36  ;;  %v1391_v5 = vmax.f32 %v1268_v15, 0.0  ;;  %v1179_v39 = vadd.f32 %v4421_v35, %v4601_v17  ;;  %v1366_v59 = vmax.f32 %v1185_v48, 0.0  ;;  %v6211_v34 = vld [vmem:[#allocation9_spill] sm:$0xff]  ;;  %v6212_v41 = vld [vmem:[#allocation23_spill] sm:$0xff]  ;;  %v6222_v15 = vld [vmem:[#allocation16_spill] sm:$0xff] }
 0x283   : > { %1649 = vmatpush.msra.mxu0 %v1381_v44  ;;  %1869 = vmatpush.msra.mxu2 %v1407_v60  ;;  %v1327_v11 = vadd.f32 %v6210_v3, %v4530_v36  ;;  %v1392_v61 = vmax.f32 %v1333_v16, 0.0  ;;  %v1111_v63 = vadd.f32 %v6211_v34, %v4611_v27  ;;  %v1361_v8 = vmax.f32 %v1117_v57, 0.0  ;;  %v6215_v31 = vld [vmem:[#allocation21_spill] sm:$0xff]  ;;  %v6216_v44 = vld [vmem:[#allocation22_spill] sm:$0xff]  ;;  %v1425_v34 = vld [vmem:[%s6112_s7 + $0x40] sm:$0xff] }
 0x284   : > { %1762 = vmatpush.msra.mxu1 %v1382_v45  ;;  %1982 = vmatpush.msra.mxu3 %v1408_v25  ;;  %v1259_v21 = vadd.f32 %v6212_v41, %v4534_v20  ;;  %v1387_v19 = vmax.f32 %v1265_v51, 0.0  ;;  %v1176_v35 = vadd.f32 %v6213_v18, %v4611_v27  ;;  %v1362_v26 = vmax.f32 %v1182_v53, 0.0  ;;  %v6223_v16 = vld [vmem:[#allocation13_spill] sm:$0xff]  ;;  %v1428_v41 = vld [vmem:[%s6112_s7 + $0x58] sm:$0xff] }
 0x285   : > { %1650 = vmatpush.msra.mxu0 %v1377_v62  ;;  %1870 = vmatpush.msra.mxu2 %v1403_v40  ;;  %v1324_v36 = vadd.f32 %v6214_v6, %v4534_v20  ;;  %v1388_v30 = vmax.f32 %v1330_v37, 0.0  ;;  %v1357_v7 = vmax.f32 %v1114_v38, 0.0  ;;  %v1383_v47 = vmax.f32 %v1262_v55, 0.0  ;;  %v6219_v40 = vld [vmem:[#allocation17_spill] sm:$0xff] }
 0x286   : > { %1763 = vmatpush.msra.mxu1 %v1378_v58  ;;  %1983 = vmatpush.msra.mxu3 %v1404_v28  ;;  %v1358_v22 = vmax.f32 %v1179_v39, 0.0  ;;  %v1256_v1 = vadd.f32 %v6215_v31, %v4547_v46  ;;  %v1321_v24 = vadd.f32 %v6216_v44, %v4547_v46  ;;  %v1384_v60 = vmax.f32 %v1327_v11, 0.0  ;;  %v1417_v46 = vld [vmem:[%s6112_s7] sm:$0xff]  ;;  %v6220_v58 = vld [vmem:[#allocation18_spill] sm:$0xff]  ;;  %v1418_v38 = vld [vmem:[%s6112_s7 + $0x8] sm:$0xff] }
 0x287   : > { %1651 = vmatpush.msra.mxu0 %v1373_v32  ;;  %1871 = vmatpush.msra.mxu2 %v1399_v33  ;;  %v1353_v4 = vmax.f32 %v1111_v63, 0.0  ;;  %v1379_v45 = vmax.f32 %v1259_v21, 0.0  ;;  %v1354_v20 = vmax.f32 %v1176_v35, 0.0  ;;  %v1253_v25 = vadd.f32 %v6217_v23, %v4556_v52  ;;  %v1420_v39 = vld [vmem:[%s6112_s7 + $0x18] sm:$0xff]  ;;  %v1422_v3 = vld [vmem:[%s6112_s7 + $0x28] sm:$0xff]  ;;  %v1423_v11 = vld [vmem:[%s6112_s7 + $0x30] sm:$0xff] }
 0x288   : > { %1764 = vmatpush.msra.mxu1 %v1374_v12  ;;  %1984 = vmatpush.msra.mxu3 %v1400_v29  ;;  %v1318_v62 = vadd.f32 %v6218_v49, %v4556_v52  ;;  %v1380_v42 = vmax.f32 %v1324_v36, 0.0  ;;  %v1250_v0 = vadd.f32 %v6219_v40, %v4565_v56  ;;  %v1315_v43 = vadd.f32 %v6220_v58, %v4565_v56  ;;  %v6221_v52 = vld [vmem:[#allocation15_spill] sm:$0xff]  ;;  %v6224_v56 = vld [vmem:[#allocation14_spill] sm:$0xff]  ;;  %v1426_v63 = vld [vmem:[%s6112_s7 + $0x48] sm:$0xff] }
 0x289   : > { %1652 = vmatpush.msra.mxu0 %v1369_v14  ;;  %1872 = vmatpush.msra.mxu2 %v1395_v9  ;;  %v1375_v28 = vmax.f32 %v1256_v1, 0.0  ;;  %v1376_v2 = vmax.f32 %v1321_v24, 0.0  ;;  %v1247_v32 = vadd.f32 %v6221_v52, %v4591_v50  ;;  %v1312_v33 = vadd.f32 %v6222_v15, %v4591_v50  ;;  %v6225_v9 = vld [vmem:[#allocation11_spill] sm:$0xff]  ;;  %v1431_v18 = vld [vmem:[%s6112_s7 + $0x70] sm:$0xff]  ;;  %v1438_v58 = vld [vmem:[%s6112_s7 + $0xa8] sm:$0xff] }
 0x28a   : > { %1765 = vmatpush.msra.mxu1 %v1370_v10  ;;  %1985 = vmatpush.msra.mxu3 %v1396_v13  ;;  %v1371_v48 = vmax.f32 %v1253_v25, 0.0  ;;  %v1372_v12 = vmax.f32 %v1318_v62, 0.0  ;;  %v1244_v29 = vadd.f32 %v6223_v16, %v4601_v17  ;;  %v1309_v57 = vadd.f32 %v6224_v56, %v4601_v17  ;;  %v6226_v10 = vld [vmem:[#allocation12_spill] sm:$0xff]  ;;  %v1432_v35 = vld [vmem:[%s6112_s7 + $0x78] sm:$0xff]  ;;  %v1435_v1 = vld [vmem:[%s6112_s7 + $0x90] sm:$0xff] }
 0x28b   : > { %1653 = vmatpush.msra.mxu0 %v1365_v54  ;;  %1873 = vmatpush.msra.mxu2 %v1391_v5  ;;  %v1367_v14 = vmax.f32 %v1250_v0, 0.0  ;;  %v1368_v51 = vmax.f32 %v1315_v43, 0.0  ;;  %v1241_v53 = vadd.f32 %v6225_v9, %v4611_v27  ;;  %v1306_v50 = vadd.f32 %v6226_v10, %v4611_v27  ;;  %v1419_v27 = vld [vmem:[%s6112_s7 + $0x10] sm:$0xff]  ;;  %v1429_v21 = vld [vmem:[%s6112_s7 + $0x60] sm:$0xff]  ;;  %v1440_v16 = vld [vmem:[%s6112_s7 + $0xb8] sm:$0xff]  ;;  %v4788_v10 = vpop.permute.xlu0 %1553 }
 0x28c   : > { %1766 = vmatpush.msra.mxu1 %v1366_v59  ;;  %1986 = vmatpush.msra.mxu3 %v1392_v61  ;;  %v1363_v37 = vmax.f32 %v1247_v32, 0.0  ;;  %v1364_v13 = vmax.f32 %v1312_v33, 0.0  ;;  %v1359_v54 = vmax.f32 %v1244_v29, 0.0  ;;  %v1360_v17 = vmax.f32 %v1309_v57, 0.0  ;;  %v1421_v59 = vld [vmem:[%s6112_s7 + $0x20] sm:$0xff]  ;;  %v1424_v61 = vld [vmem:[%s6112_s7 + $0x38] sm:$0xff]  ;;  %v4773_v29 = vpop.permute.xlu2 %1558 }
 0x28d   : > { %1654 = vmatpush.msra.mxu0 %v1361_v8  ;;  %1874 = vmatpush.msra.mxu2 %v1387_v19  ;;  %v1355_v55 = vmax.f32 %v1241_v53, 0.0  ;;  %v1356_v5 = vmax.f32 %v1306_v50, 0.0  ;;  %v1427_v8 = vld [vmem:[%s6112_s7 + $0x50] sm:$0xff]  ;;  %v1430_v19 = vld [vmem:[%s6112_s7 + $0x68] sm:$0xff]  ;;  %v1433_v36 = vld [vmem:[%s6112_s7 + $0x80] sm:$0xff] }
 0x28e   : > { %1767 = vmatpush.msra.mxu1 %v1362_v26  ;;  %1987 = vmatpush.msra.mxu3 %v1388_v30  ;;  %v1437_v62 = vld [vmem:[%s6112_s7 + $0xa0] sm:$0xff]  ;;  %v1439_v32 = vld [vmem:[%s6112_s7 + $0xb0] sm:$0xff] }
 0x28f   : > { %1655 = vmatpush.msra.mxu0 %v1357_v7  ;;  %1875 = vmatpush.msra.mxu2 %v1383_v47  ;;  %v1434_v47 = vld [vmem:[%s6112_s7 + $0x88] sm:$0xff]  ;;  %v1441_v53 = vld [vmem:[%s6112_s7 + $0xc0] sm:$0xff] }
 0x290   : > { %1768 = vmatpush.msra.mxu1 %v1358_v22  ;;  %1988 = vmatpush.msra.mxu3 %v1384_v60 }
 0x291   : > { %1656 = vmatpush.msra.mxu0 %v1353_v4  ;;  %1876 = vmatpush.msra.mxu2 %v1379_v45  ;;  %v1436_v45 = vld [vmem:[%s6112_s7 + $0x98] sm:$0xff] }
 0x292   : > { %1769 = vmatpush.msra.mxu1 %v1354_v20  ;;  %1989 = vmatpush.msra.mxu3 %v1380_v42 }
 0x293   : > { %1657 = vmatmul.f32.vlgmr.msra.gmra.mxu0 %v1417_v46  ;;  %1770 = vmatmul.f32.vlgmr.msra.gmra.mxu1 %v1417_v46 }
 0x294   : > { %1877 = vmatpush.msra.mxu2 %v1375_v28  ;;  %1990 = vmatpush.msra.mxu3 %v1376_v2 }
 0x296   : > { %1878 = vmatpush.msra.mxu2 %v1371_v48  ;;  %1991 = vmatpush.msra.mxu3 %v1372_v12 }
 0x298   : > { %1879 = vmatpush.msra.mxu2 %v1367_v14  ;;  %1992 = vmatpush.msra.mxu3 %v1368_v51  ;;  %v4779_v14 = vpop.permute.xlu1 %1638 }
 0x299   : > { %6239 = vst [vmem:[#allocation16_spill] sm:$0xff] %v4779_v14 }
 0x29a   : > { %1880 = vmatpush.msra.mxu2 %v1363_v37  ;;  %1993 = vmatpush.msra.mxu3 %v1364_v13  ;;  %v4794_v13 = vpop.permute.xlu2 %1548 }
 0x29b   : > { %1660 = vmatmul.f32.gmra.mxu0 %v1418_v38  ;;  %1773 = vmatmul.f32.gmra.mxu1 %v1418_v38 }
 0x29c   : > { %1881 = vmatpush.msra.mxu2 %v1359_v54  ;;  %1994 = vmatpush.msra.mxu3 %v1360_v17 }
 0x29e   : > { %1882 = vmatpush.msra.mxu2 %v1355_v55  ;;  %1995 = vmatpush.msra.mxu3 %v1356_v5  ;;  %v1442_v55 = vld [vmem:[%s6112_s7 + $0xc8] sm:$0xff] }
 0x29f   : > { %1883 = vmatmul.f32.vlgmr.msra.gmra.mxu2 %v1417_v46  ;;  %1996 = vmatmul.f32.vlgmr.msra.gmra.mxu3 %v1417_v46 }
 0x2a3   : > { %1663 = vmatmul.f32.gmra.mxu0 %v1419_v27  ;;  %1776 = vmatmul.f32.gmra.mxu1 %v1419_v27 }
 0x2a7   : > { %1886 = vmatmul.f32.gmra.mxu2 %v1418_v38  ;;  %1999 = vmatmul.f32.gmra.mxu3 %v1418_v38  ;;  %v4796_v38 = vpop.permute.xlu1 %1543 }
 0x2ab   : > { %1666 = vmatmul.f32.gmra.mxu0 %v1420_v39  ;;  %1779 = vmatmul.f32.gmra.mxu1 %v1420_v39 }
 0x2af   : > { %1889 = vmatmul.f32.gmra.mxu2 %v1419_v27  ;;  %2002 = vmatmul.f32.gmra.mxu3 %v1419_v27 }
 0x2b3   : > { %1669 = vmatmul.f32.gmra.mxu0 %v1421_v59  ;;  %1782 = vmatmul.f32.gmra.mxu1 %v1421_v59 }
 0x2b7   : > { %1892 = vmatmul.f32.gmra.mxu2 %v1420_v39  ;;  %2005 = vmatmul.f32.gmra.mxu3 %v1420_v39  ;;  %v4809_v39 = vpop.permute.xlu0 %1633 }
 0x2b8   : > { %6244 = vst [vmem:[#allocation26_spill] sm:$0xff] %v4809_v39 }
 0x2bb   : > { %1672 = vmatmul.f32.gmra.mxu0 %v1422_v3  ;;  %1785 = vmatmul.f32.gmra.mxu1 %v1422_v3 }
 0x2bf   : > { %1895 = vmatmul.f32.gmra.mxu2 %v1421_v59  ;;  %2008 = vmatmul.f32.gmra.mxu3 %v1421_v59  ;;  %v4811_v59 = vpop.permute.xlu2 %1628 }
 0x2c0   : > { %6245 = vst [vmem:[#allocation27_spill] sm:$0xff] %v4811_v59  ;;  %v1446_v59 = vld [vmem:[%s6112_s7 + $0xe8] sm:$0xff] }
 0x2c3   : > { %1675 = vmatmul.f32.gmra.mxu0 %v1423_v11  ;;  %1788 = vmatmul.f32.gmra.mxu1 %v1423_v11 }
 0x2c7   : > { %1898 = vmatmul.f32.gmra.mxu2 %v1422_v3  ;;  %2011 = vmatmul.f32.gmra.mxu3 %v1422_v3  ;;  %v4813_v3 = vpop.permute.xlu1 %1623 }
 0x2c8   : > { %6246 = vst [vmem:[#allocation28_spill] sm:$0xff] %v4813_v3 }
 0x2cb   : > { %1678 = vmatmul.f32.gmra.mxu0 %v1424_v61  ;;  %1791 = vmatmul.f32.gmra.mxu1 %v1424_v61 }
 0x2cf   : > { %1901 = vmatmul.f32.gmra.mxu2 %v1423_v11  ;;  %2014 = vmatmul.f32.gmra.mxu3 %v1423_v11 }
 0x2d3   : > { %1681 = vmatmul.f32.gmra.mxu0 %v1425_v34  ;;  %1794 = vmatmul.f32.gmra.mxu1 %v1425_v34 }
 0x2d7   : > { %1904 = vmatmul.f32.gmra.mxu2 %v1424_v61  ;;  %2017 = vmatmul.f32.gmra.mxu3 %v1424_v61 }
 0x2db   : > { %1684 = vmatmul.f32.gmra.mxu0 %v1426_v63  ;;  %1797 = vmatmul.f32.gmra.mxu1 %v1426_v63 }
 0x2df   : > { %1907 = vmatmul.f32.gmra.mxu2 %v1425_v34  ;;  %2020 = vmatmul.f32.gmra.mxu3 %v1425_v34  ;;  %v1443_v34 = vld [vmem:[%s6112_s7 + $0xd0] sm:$0xff] }
 0x2e3   : > { %1687 = vmatmul.f32.gmra.mxu0 %v1427_v8  ;;  %1800 = vmatmul.f32.gmra.mxu1 %v1427_v8 }
 0x2e7   : > { %1910 = vmatmul.f32.gmra.mxu2 %v1426_v63  ;;  %2023 = vmatmul.f32.gmra.mxu3 %v1426_v63 }
 0x2eb   : > { %1690 = vmatmul.f32.gmra.mxu0 %v1428_v41  ;;  %1803 = vmatmul.f32.gmra.mxu1 %v1428_v41 }
 0x2ef   : > { %1913 = vmatmul.f32.gmra.mxu2 %v1427_v8  ;;  %2026 = vmatmul.f32.gmra.mxu3 %v1427_v8 }
 0x2f3   : > { %1693 = vmatmul.f32.gmra.mxu0 %v1429_v21  ;;  %1806 = vmatmul.f32.gmra.mxu1 %v1429_v21 }
 0x2f7   : > { %1916 = vmatmul.f32.gmra.mxu2 %v1428_v41  ;;  %2029 = vmatmul.f32.gmra.mxu3 %v1428_v41  ;;  %v4826_v41 = vpop.permute.xlu0 %1538 }
 0x2fb   : > { %1696 = vmatmul.f32.gmra.mxu0 %v1430_v19  ;;  %1809 = vmatmul.f32.gmra.mxu1 %v1430_v19 }
 0x2ff   : > { %1919 = vmatmul.f32.gmra.mxu2 %v1429_v21  ;;  %2032 = vmatmul.f32.gmra.mxu3 %v1429_v21  ;;  %v4828_v21 = vpop.permute.xlu2 %1533 }
 0x303   : > { %1699 = vmatmul.f32.gmra.mxu0 %v1431_v18  ;;  %1812 = vmatmul.f32.gmra.mxu1 %v1431_v18 }
 0x307   : > { %1922 = vmatmul.f32.gmra.mxu2 %v1430_v19  ;;  %2035 = vmatmul.f32.gmra.mxu3 %v1430_v19 }
 0x30b   : > { %1702 = vmatmul.f32.gmra.mxu0 %v1432_v35  ;;  %1815 = vmatmul.f32.gmra.mxu1 %v1432_v35 }
 0x30f   : > { %1925 = vmatmul.f32.gmra.mxu2 %v1431_v18  ;;  %2038 = vmatmul.f32.gmra.mxu3 %v1431_v18 }
 0x310   : > { %v4697_v26 = vpop.f32.mrf.mxu0  ;;  %v4699_v6 = vpop.f32.mrf.mxu1 }
 0x313   : > { %1705 = vmatmul.f32.gmra.mxu0 %v1433_v36  ;;  %1818 = vmatmul.f32.gmra.mxu1 %v1433_v36 }
 0x317   : > { %1928 = vmatmul.f32.gmra.mxu2 %v1432_v35  ;;  %2041 = vmatmul.f32.gmra.mxu3 %v1432_v35  ;;  %v1444_v35 = vld [vmem:[%s6112_s7 + $0xd8] sm:$0xff] }
 0x318   : > { %v4704_v30 = vpop.f32.mrf.mxu0  ;;  %v4706_v7 = vpop.f32.mrf.mxu1 }
 0x31b   : > { %1708 = vmatmul.f32.gmra.mxu0 %v1434_v47  ;;  %1821 = vmatmul.f32.gmra.mxu1 %v1434_v47 }
 0x31f   : > { %1931 = vmatmul.f32.gmra.mxu2 %v1433_v36  ;;  %2044 = vmatmul.f32.gmra.mxu3 %v1433_v36  ;;  %v4837_v36 = vpop.permute.xlu1 %1528 }
 0x320   : > { %v4711_v22 = vpop.f32.mrf.mxu0  ;;  %v4713_v31 = vpop.f32.mrf.mxu1 }
 0x322   : > { %v4718_v44 = vpop.f32.mrf.mxu2  ;;  %v4720_v24 = vpop.f32.mrf.mxu3 }
 0x323   : > { %6227 = vst [vmem:[#allocation25_spill] sm:$0xff] %v4718_v44  ;;  %1711 = vmatmul.f32.gmra.mxu0 %v1435_v1  ;;  %1824 = vmatmul.f32.gmra.mxu1 %v1435_v1 }
 0x324   : > { %6228 = vst [vmem:[#allocation9_spill] sm:$0xff] %v4720_v24 }
 0x327   : > { %1934 = vmatmul.f32.gmra.mxu2 %v1434_v47  ;;  %2047 = vmatmul.f32.gmra.mxu3 %v1434_v47  ;;  %v4854_v3 = vpop.permute.xlu1 %1608 }
 0x328   : > { %v4722_v60 = vpop.f32.mrf.mxu0  ;;  %v4724_v4 = vpop.f32.mrf.mxu1  ;;  %6251 = vst [vmem:[#allocation33_spill] sm:$0xff] %v4854_v3 }
 0x32a   : > { %v4729_v20 = vpop.f32.mrf.mxu2  ;;  %v4731_v23 = vpop.f32.mrf.mxu3 }
 0x32b   : > { %6229 = vst [vmem:[#allocation23_spill] sm:$0xff] %v4729_v20  ;;  %1714 = vmatmul.f32.gmra.mxu0 %v1436_v45  ;;  %1827 = vmatmul.f32.gmra.mxu1 %v1436_v45 }
 0x32c   : > { %6230 = vst [vmem:[#allocation10_spill] sm:$0xff] %v4731_v23  ;;  %v1447_v23 = vld [vmem:[%s6112_s7 + $0xf0] sm:$0xff] }
 0x32f   : > { %1937 = vmatmul.f32.gmra.mxu2 %v1435_v1  ;;  %2050 = vmatmul.f32.gmra.mxu3 %v1435_v1  ;;  %v4867_v3 = vpop.permute.xlu1 %1513 }
 0x330   : > { %v4733_v25 = vpop.f32.mrf.mxu0  ;;  %v4735_v49 = vpop.f32.mrf.mxu1 }
 0x332   : > { %v4740_v42 = vpop.f32.mrf.mxu2  ;;  %v4742_v46 = vpop.f32.mrf.mxu3 }
 0x333   : > { %6231 = vst [vmem:[#allocation24_spill] sm:$0xff] %v4740_v42  ;;  %1717 = vmatmul.f32.gmra.mxu0 %v1437_v62  ;;  %1830 = vmatmul.f32.gmra.mxu1 %v1437_v62 }
 0x334   : > { %6232 = vst [vmem:[#allocation21_spill] sm:$0xff] %v4742_v46 }
 0x337   : > { %1940 = vmatmul.f32.gmra.mxu2 %v1436_v45  ;;  %2053 = vmatmul.f32.gmra.mxu3 %v1436_v45  ;;  %v4843_v45 = vpop.permute.xlu0 %1618 }
 0x338   : > { %v4744_v40 = vpop.f32.mrf.mxu0  ;;  %v4746_v0 = vpop.f32.mrf.mxu1  ;;  %6249 = vst [vmem:[#allocation31_spill] sm:$0xff] %v4843_v45 }
 0x33a   : > { %v4751_v43 = vpop.f32.mrf.mxu2  ;;  %v4753_v28 = vpop.f32.mrf.mxu3 }
 0x33b   : > { %6233 = vst [vmem:[#allocation22_spill] sm:$0xff] %v4751_v43  ;;  %1720 = vmatmul.f32.gmra.mxu0 %v1438_v58  ;;  %1833 = vmatmul.f32.gmra.mxu1 %v1438_v58  ;;  %v4880_v43 = vpop.permute.xlu1 %1593 }
 0x33c   : > { %6234 = vst [vmem:[#allocation19_spill] sm:$0xff] %v4753_v28 }
 0x33d   : > { %6254 = vst [vmem:[#allocation36_spill] sm:$0xff] %v4880_v43 }
 0x33f   : > { %1943 = vmatmul.f32.gmra.mxu2 %v1437_v62  ;;  %2056 = vmatmul.f32.gmra.mxu3 %v1437_v62  ;;  %v4859_v39 = vpop.permute.xlu0 %1523 }
 0x340   : > { %v4755_v2 = vpop.f32.mrf.mxu0  ;;  %v4757_v52 = vpop.f32.mrf.mxu1 }
 0x342   : > { %v4762_v15 = vpop.f32.mrf.mxu2  ;;  %v4764_v33 = vpop.f32.mrf.mxu3 }
 0x343   : > { %6235 = vst [vmem:[#allocation20_spill] sm:$0xff] %v4762_v15  ;;  %1723 = vmatmul.f32.gmra.mxu0 %v1439_v32  ;;  %1836 = vmatmul.f32.gmra.mxu1 %v1439_v32  ;;  %v1448_v15 = vld [vmem:[%s6112_s7 + $0xf8] sm:$0xff] }
 0x344   : > { %6236 = vst [vmem:[#allocation17_spill] sm:$0xff] %v4764_v33 }
 0x347   : > { %1946 = vmatmul.f32.gmra.mxu2 %v1438_v58  ;;  %2059 = vmatmul.f32.gmra.mxu3 %v1438_v58  ;;  %v4876_v42 = vpop.permute.xlu0 %1603 }
 0x348   : > { %v4766_v48 = vpop.f32.mrf.mxu0  ;;  %v4768_v12 = vpop.f32.mrf.mxu1  ;;  %6252 = vst [vmem:[#allocation34_spill] sm:$0xff] %v4876_v42 }
 0x34a   : > { %v4775_v56 = vpop.f32.mrf.mxu2  ;;  %v4777_v57 = vpop.f32.mrf.mxu3 }
 0x34b   : > { %6237 = vst [vmem:[#allocation18_spill] sm:$0xff] %v4775_v56  ;;  %1726 = vmatmul.f32.gmra.mxu0 %v1440_v16  ;;  %1839 = vmatmul.f32.gmra.mxu1 %v1440_v16 }
 0x34c   : > { %6238 = vst [vmem:[#allocation15_spill] sm:$0xff] %v4777_v57 }
 0x34f   : > { %1949 = vmatmul.f32.gmra.mxu2 %v1439_v32  ;;  %2062 = vmatmul.f32.gmra.mxu3 %v1439_v32  ;;  %v1445_v32 = vld [vmem:[%s6112_s7 + $0xe0] sm:$0xff] }
 0x350   : > { %v4781_v51 = vpop.f32.mrf.mxu0  ;;  %v4783_v9 = vpop.f32.mrf.mxu1 }
 0x352   : > { %v4790_v50 = vpop.f32.mrf.mxu2  ;;  %v4792_v37 = vpop.f32.mrf.mxu3 }
 0x353   : > { %6240 = vst [vmem:[#allocation13_spill] sm:$0xff] %v4790_v50  ;;  %1729 = vmatmul.f32.gmra.mxu0 %v1441_v53  ;;  %1842 = vmatmul.f32.gmra.mxu1 %v1441_v53 }
 0x354   : > { %6241 = vst [vmem:[#allocation14_spill] sm:$0xff] %v4792_v37 }
 0x357   : > { %1952 = vmatmul.f32.gmra.mxu2 %v1440_v16  ;;  %2065 = vmatmul.f32.gmra.mxu3 %v1440_v16  ;;  %v4848_v16 = vpop.permute.xlu2 %1613 }
 0x358   : > { %v4798_v54 = vpop.f32.mrf.mxu0  ;;  %v4800_v17 = vpop.f32.mrf.mxu1  ;;  %6250 = vst [vmem:[#allocation32_spill] sm:$0xff] %v4848_v16 }
 0x35a   : > { %v4805_v5 = vpop.f32.mrf.mxu2  ;;  %v4807_v27 = vpop.f32.mrf.mxu3 }
 0x35b   : > { %6242 = vst [vmem:[#allocation11_spill] sm:$0xff] %v4805_v5  ;;  %1732 = vmatmul.f32.gmra.mxu0 %v1442_v55  ;;  %1845 = vmatmul.f32.gmra.mxu1 %v1442_v55 }
 0x35c   : > { %6243 = vst [vmem:[#allocation12_spill] sm:$0xff] %v4807_v27 }
 0x35f   : > { %1955 = vmatmul.f32.gmra.mxu2 %v1441_v53  ;;  %2068 = vmatmul.f32.gmra.mxu3 %v1441_v53  ;;  %v4865_v24 = vpop.permute.xlu2 %1518 }
 0x360   : > { %v4815_v11 = vpop.f32.mrf.mxu0  ;;  %v4817_v61 = vpop.f32.mrf.mxu1 }
 0x362   : > { %v4822_v63 = vpop.f32.mrf.mxu2  ;;  %v4824_v8 = vpop.f32.mrf.mxu3 }
 0x363   : > { %6247 = vst [vmem:[#allocation29_spill] sm:$0xff] %v4822_v63  ;;  %1735 = vmatmul.f32.gmra.mxu0 %v1443_v34  ;;  %1848 = vmatmul.f32.gmra.mxu1 %v1443_v34 }
 0x364   : > { %6248 = vst [vmem:[#allocation30_spill] sm:$0xff] %v4824_v8  ;;  %v4895_v8 = vpop.permute.xlu0 %1508 }
 0x367   : > { %1958 = vmatmul.f32.gmra.mxu2 %v1442_v55  ;;  %2071 = vmatmul.f32.gmra.mxu3 %v1442_v55  ;;  %v4878_v28 = vpop.permute.xlu2 %1598 }
 0x368   : > { %v4830_v19 = vpop.f32.mrf.mxu0  ;;  %v4832_v18 = vpop.f32.mrf.mxu1  ;;  %6253 = vst [vmem:[#allocation35_spill] sm:$0xff] %v4878_v28 }
 0x36a   : > { %v4839_v47 = vpop.f32.mrf.mxu2  ;;  %v4841_v1 = vpop.f32.mrf.mxu3 }
 0x36b   : > { %1738 = vmatmul.f32.gmra.mxu0 %v1444_v35  ;;  %1851 = vmatmul.f32.gmra.mxu1 %v1444_v35 }
 0x36f   : > { %1961 = vmatmul.f32.gmra.mxu2 %v1443_v34  ;;  %2074 = vmatmul.f32.gmra.mxu3 %v1443_v34  ;;  %v4899_v63 = vpop.permute.xlu2 %1503 }
 0x370   : > { %v1694_v62 = vpop.f32.mrf.mxu0  ;;  %v1807_v58 = vpop.f32.mrf.mxu1 }
 0x372   : > { %v4850_v53 = vpop.f32.mrf.mxu2  ;;  %v4852_v55 = vpop.f32.mrf.mxu3 }
 0x373   : > { %1741 = vmatmul.f32.gmra.mxu0 %v1445_v32  ;;  %1854 = vmatmul.f32.gmra.mxu1 %v1445_v32 }
 0x377   : > { %1964 = vmatmul.f32.gmra.mxu2 %v1444_v35  ;;  %2077 = vmatmul.f32.gmra.mxu3 %v1444_v35 }
 0x378   : > { %v1697_v45 = vpop.f32.mrf.mxu0  ;;  %v1810_v34 = vpop.f32.mrf.mxu1 }
 0x379   : > { %v1698_v27 = vadd.f32 %v1697_v45, %v4794_v13  ;;  %v1811_v5 = vadd.f32 %v1810_v34, %v4794_v13 }
 0x37a   : > { %v4861_v14 = vpop.f32.mrf.mxu2  ;;  %v4863_v16 = vpop.f32.mrf.mxu3 }
 0x37b   : > { %1744 = vmatmul.f32.gmra.mxu0 %v1446_v59  ;;  %1857 = vmatmul.f32.gmra.mxu1 %v1446_v59  ;;  %v2145_v45 = vmax.f32 %v1698_v27, 0.0  ;;  %v2146_v34 = vmax.f32 %v1811_v5, 0.0 }
 0x37f   : > { %1967 = vmatmul.f32.gmra.mxu2 %v1445_v32  ;;  %2080 = vmatmul.f32.gmra.mxu3 %v1445_v32 }
 0x380   : > { %v1700_v35 = vpop.f32.mrf.mxu0  ;;  %v1813_v44 = vpop.f32.mrf.mxu1 }
 0x381   : > { %v1701_v42 = vadd.f32 %v1700_v35, %v4788_v10  ;;  %v1814_v37 = vadd.f32 %v1813_v44, %v4788_v10  ;;  %v1808_v44 = vadd.f32 %v1807_v58, %v4796_v38 }
 0x382   : > { %v4872_v20 = vpop.f32.mrf.mxu2  ;;  %v4874_v46 = vpop.f32.mrf.mxu3 }
 0x383   : > { %1747 = vmatmul.f32.gmra.mxu0 %v1447_v23  ;;  %1860 = vmatmul.f32.gmra.mxu1 %v1447_v23  ;;  %v2149_v35 = vmax.f32 %v1701_v42, 0.0  ;;  %v4909_v42 = vpop.permute.xlu1 %1498  ;;  %v2142_v58 = vmax.f32 %v1808_v44, 0.0 }
 0x387   : > { %1970 = vmatmul.f32.gmra.mxu2 %v1446_v59  ;;  %2083 = vmatmul.f32.gmra.mxu3 %v1446_v59 }
 0x388   : > { %v1703_v32 = vpop.f32.mrf.mxu0  ;;  %v1816_v33 = vpop.f32.mrf.mxu1 }
 0x389   : > { %v1704_v57 = vadd.f32 %v1703_v32, %v4773_v29  ;;  %v1817_v56 = vadd.f32 %v1816_v33, %v4773_v29  ;;  %v1695_v33 = vadd.f32 %v1694_v62, %v4796_v38  ;;  %v2150_v32 = vmax.f32 %v1814_v37, 0.0 }
 0x38a   : > { %v4889_v50 = vpop.f32.mrf.mxu2  ;;  %v4891_v28 = vpop.f32.mrf.mxu3  ;;  %v1689_v37 = vadd.f32 %v4815_v11, %v4828_v21  ;;  %v1683_v11 = vadd.f32 %v4781_v51, %v4859_v39 }
 0x38b   : > { %v2153_v43 = vmax.f32 %v1704_v57, 0.0  ;;  %v2154_v59 = vmax.f32 %v1817_v56, 0.0  ;;  %1750 = vmatmul.f32.gmra.mxu0 %v1448_v15  ;;  %1863 = vmatmul.f32.gmra.mxu1 %v1448_v15  ;;  %v1692_v56 = vadd.f32 %v4830_v19, %v4826_v41  ;;  %v1805_v57 = vadd.f32 %v4832_v18, %v4826_v41 }
 0x38c   : > { %v2141_v19 = vmax.f32 %v1695_v33, 0.0  ;;  %v1686_v18 = vadd.f32 %v4798_v54, %v4837_v36  ;;  %v2133_v33 = vmax.f32 %v1689_v37, 0.0  ;;  %v1680_v54 = vadd.f32 %v4766_v48, %v4865_v24 }
 0x38d   : > { %2349 = vmatpush.msrb.mxu0 %v2153_v43  ;;  %2479 = vmatpush.msrb.mxu2 %v2154_v59  ;;  %v1799_v59 = vadd.f32 %v4800_v17, %v4837_v36  ;;  %v1793_v17 = vadd.f32 %v4768_v12, %v4865_v24  ;;  %v1677_v37 = vadd.f32 %v4755_v2, %v4867_v3  ;;  %v2125_v48 = vmax.f32 %v1683_v11, 0.0 }
 0x38e   : > { %v1671_v2 = vadd.f32 %v4733_v25, %v4899_v63 }
 0x38f   : > { %1973 = vmatmul.f32.gmra.mxu2 %v1447_v23  ;;  %2086 = vmatmul.f32.gmra.mxu3 %v1447_v23  ;;  %v1802_v23 = vadd.f32 %v4817_v61, %v4828_v21  ;;  %v1796_v61 = vadd.f32 %v4783_v9, %v4859_v39  ;;  %v2117_v11 = vmax.f32 %v1677_v37, 0.0 }
 0x390   : > { %2350 = vmatpush.msrb.mxu0 %v2149_v35  ;;  %2480 = vmatpush.msrb.mxu2 %v2150_v32  ;;  %v4905_v43 = vpop.f32.mrf.mxu0  ;;  %v4907_v62 = vpop.f32.mrf.mxu1  ;;  %v2137_v35 = vmax.f32 %v1692_v56, 0.0  ;;  %v2138_v32 = vmax.f32 %v1805_v57, 0.0  ;;  %v2129_v56 = vmax.f32 %v1686_v18, 0.0  ;;  %v2130_v57 = vmax.f32 %v1799_v59, 0.0 }
 0x391   : > { %v2134_v44 = vmax.f32 %v1802_v23, 0.0  ;;  %v2126_v23 = vmax.f32 %v1796_v61, 0.0  ;;  %v1674_v18 = vadd.f32 %v4744_v40, %v4895_v8  ;;  %v1787_v59 = vadd.f32 %v4746_v0, %v4895_v8 }
 0x392   : > { %2351 = vmatpush.msrb.mxu0 %v2145_v45  ;;  %2481 = vmatpush.msrb.mxu2 %v2146_v34  ;;  %v4915_v27 = vpop.f32.mrf.mxu2  ;;  %v4917_v5 = vpop.f32.mrf.mxu3  ;;  %v1668_v40 = vadd.f32 %v4722_v60, %v4909_v42  ;;  %v1781_v0 = vadd.f32 %v4724_v4, %v4909_v42  ;;  %v2109_v60 = vmax.f32 %v1671_v2, 0.0 }
 0x393   : > { %v4927_v45 = vpop.permute.xlu0 %1588  ;;  %v4937_v34 = vpop.permute.xlu2 %1583 }
 0x394   : > { %2352 = vmatpush.msrb.mxu0 %v2141_v19  ;;  %2482 = vmatpush.msrb.mxu2 %v2142_v58  ;;  %v4943_v58 = vpop.permute.xlu1 %1578 }
 0x396   : > { %2353 = vmatpush.msrb.mxu0 %v2137_v35  ;;  %2483 = vmatpush.msrb.mxu2 %v2138_v32  ;;  %v2121_v35 = vmax.f32 %v1680_v54, 0.0  ;;  %v2122_v32 = vmax.f32 %v1793_v17, 0.0 }
 0x397   : > { %1976 = vmatmul.f32.gmra.mxu2 %v1448_v15  ;;  %2089 = vmatmul.f32.gmra.mxu3 %v1448_v15  ;;  %v1790_v15 = vadd.f32 %v4757_v52, %v4867_v3  ;;  %v1784_v52 = vadd.f32 %v4735_v49, %v4899_v63 }
 0x398   : > { %2354 = vmatpush.msrb.mxu0 %v2133_v33  ;;  %2484 = vmatpush.msrb.mxu2 %v2134_v44  ;;  %v4933_v51 = vpop.f32.mrf.mxu0  ;;  %v4935_v9 = vpop.f32.mrf.mxu1  ;;  %v2113_v33 = vmax.f32 %v1674_v18, 0.0  ;;  %v2114_v44 = vmax.f32 %v1787_v59, 0.0  ;;  %v2106_v18 = vmax.f32 %v1781_v0, 0.0 }
 0x399   : > { %v2118_v61 = vmax.f32 %v1790_v15, 0.0 }
 0x39a   : > { %2355 = vmatpush.msrb.mxu0 %v2129_v56  ;;  %2485 = vmatpush.msrb.mxu2 %v2130_v57  ;;  %v1929_v12 = vpop.f32.mrf.mxu2  ;;  %v2042_v19 = vpop.f32.mrf.mxu3  ;;  %v2110_v57 = vmax.f32 %v1784_v52, 0.0 }
 0x39b   : > { %v4961_v17 = vpop.permute.xlu0 %1493  ;;  %v4971_v15 = vpop.permute.xlu2 %1488 }
 0x39c   : > { %2356 = vmatpush.msrb.mxu0 %v2125_v48  ;;  %2486 = vmatpush.msrb.mxu2 %v2126_v23  ;;  %v1665_v49 = vadd.f32 %v4711_v22, %v4961_v17  ;;  %v1778_v56 = vadd.f32 %v4713_v31, %v4961_v17  ;;  %v1662_v48 = vadd.f32 %v4704_v30, %v4971_v15  ;;  %v2105_v22 = vmax.f32 %v1668_v40, 0.0  ;;  %v4977_v31 = vpop.permute.xlu1 %1483 }
 0x39d   : > { %v1775_v23 = vadd.f32 %v4706_v7, %v4971_v15  ;;  %v1659_v59 = vadd.f32 %v4697_v26, %v4977_v31  ;;  %v1930_v7 = vadd.f32 %v1929_v12, %v4773_v29 }
 0x39e   : > { %2357 = vmatpush.msrb.mxu0 %v2121_v35  ;;  %2487 = vmatpush.msrb.mxu2 %v2122_v32  ;;  %v1772_v35 = vadd.f32 %v4699_v6, %v4977_v31  ;;  %v2101_v32 = vmax.f32 %v1665_v49, 0.0  ;;  %v2102_v2 = vmax.f32 %v1778_v56, 0.0  ;;  %v2097_v30 = vmax.f32 %v1662_v48, 0.0 }
 0x39f   : > { %v2098_v52 = vmax.f32 %v1775_v23, 0.0  ;;  %v2093_v26 = vmax.f32 %v1659_v59, 0.0  ;;  %v1927_v6 = vadd.f32 %v4915_v27, %v4788_v10  ;;  %v2037_v27 = vadd.f32 %v4891_v28, %v4794_v13 }
 0x3a0   : > { %2358 = vmatpush.msrb.mxu0 %v2117_v11  ;;  %2488 = vmatpush.msrb.mxu2 %v2118_v61  ;;  %v4957_v54 = vpop.f32.mrf.mxu0  ;;  %v4959_v25 = vpop.f32.mrf.mxu1  ;;  %v2043_v11 = vadd.f32 %v2042_v19, %v4773_v29  ;;  %v2094_v0 = vmax.f32 %v1772_v35, 0.0  ;;  %v5000_v29 = vld [vmem:[%s6114_s9] sm:$0xff]  ;;  %v1924_v19 = vadd.f32 %v4889_v50, %v4794_v13  ;;  %v2155_v49 = vmax.f32 %v1930_v7, 0.0  ;;  %v6261_v35 = vld [vmem:[#allocation29_spill] sm:$0xff] }
 0x3a1   : > { %v1918_v28 = vadd.f32 %v4861_v14, %v4826_v41  ;;  %v2031_v50 = vadd.f32 %v4863_v16, %v4826_v41  ;;  %v2148_v48 = vmax.f32 %v2037_v27, 0.0  ;;  %v5031_v16 = vld [vmem:[%s6114_s9 + $0x10] sm:$0xff]  ;;  %v1912_v59 = vadd.f32 %v4839_v47, %v4837_v36 }
 0x3a2   : > { %2359 = vmatpush.msrb.mxu0 %v2113_v33  ;;  %2489 = vmatpush.msrb.mxu2 %v2114_v44  ;;  %v4967_v4 = vpop.f32.mrf.mxu2  ;;  %v4969_v37 = vpop.f32.mrf.mxu3  ;;  %v2040_v33 = vadd.f32 %v4917_v5, %v4788_v10  ;;  %v2156_v56 = vmax.f32 %v2043_v11, 0.0  ;;  %v1921_v10 = vadd.f32 %v4872_v20, %v4796_v38  ;;  %v2034_v5 = vadd.f32 %v4874_v46, %v4796_v38  ;;  %v6266_v27 = vld [vmem:[#allocation14_spill] sm:$0xff] }
 0x3a3   : > { %6255 = vst [vmem:[#allocation37_spill] sm:$0xff] %v4967_v4  ;;  %v2147_v13 = vmax.f32 %v1924_v19, 0.0  ;;  %v1915_v46 = vadd.f32 %v4850_v53, %v4828_v21  ;;  %v2028_v38 = vadd.f32 %v4852_v55, %v4828_v21  ;;  %v2025_v53 = vadd.f32 %v4841_v1, %v4837_v36  ;;  %v6263_v36 = vld [vmem:[#allocation11_spill] sm:$0xff]  ;;  %v6264_v1 = vld [vmem:[#allocation12_spill] sm:$0xff] }
 0x3a4   : > { %6256 = vst [vmem:[#allocation38_spill] sm:$0xff] %v4969_v37  ;;  %2360 = vmatpush.msrb.mxu0 %v2109_v60  ;;  %2490 = vmatpush.msrb.mxu2 %v2110_v57  ;;  %v2151_v60 = vmax.f32 %v1927_v6, 0.0  ;;  %v2152_v57 = vmax.f32 %v2040_v33, 0.0  ;;  %v2139_v21 = vmax.f32 %v1918_v28, 0.0  ;;  %v2140_v55 = vmax.f32 %v2031_v50, 0.0  ;;  %v6271_v50 = vld [vmem:[#allocation15_spill] sm:$0xff] }
 0x3a5   : > { %v2136_v7 = vmax.f32 %v2028_v38, 0.0  ;;  %v1906_v47 = vadd.f32 %v6263_v36, %v4865_v24  ;;  %v2019_v11 = vadd.f32 %v6264_v1, %v4865_v24  ;;  %v6277_v36 = vld [vmem:[#allocation21_spill] sm:$0xff] }
 0x3a6   : > { %2361 = vmatpush.msrb.mxu0 %v2105_v22  ;;  %2491 = vmatpush.msrb.mxu2 %v2106_v18  ;;  %v2143_v22 = vmax.f32 %v1921_v10, 0.0  ;;  %v2144_v18 = vmax.f32 %v2034_v5, 0.0 }
 0x3a8   : > { %2362 = vmatpush.msrb.mxu0 %v2101_v32  ;;  %2492 = vmatpush.msrb.mxu2 %v2102_v2  ;;  %v4985_v61 = vpop.f32.mrf.mxu0  ;;  %v4987_v40 = vpop.f32.mrf.mxu1  ;;  %v1909_v32 = vadd.f32 %v6261_v35, %v4859_v39  ;;  %v6262_v2 = vld [vmem:[#allocation30_spill] sm:$0xff] }
 0x3aa   : > { %2363 = vmatpush.msrb.mxu0 %v2097_v30  ;;  %2493 = vmatpush.msrb.mxu2 %v2098_v52  ;;  %v4993_v44 = vpop.f32.mrf.mxu2  ;;  %v4995_v12 = vpop.f32.mrf.mxu3  ;;  %v2022_v30 = vadd.f32 %v6262_v2, %v4859_v39  ;;  %v2135_v52 = vmax.f32 %v1915_v46, 0.0  ;;  %v6265_v39 = vld [vmem:[#allocation13_spill] sm:$0xff]  ;;  %v6272_v46 = vld [vmem:[#allocation20_spill] sm:$0xff] }
 0x3ab   : > { %6257 = vst [vmem:[#allocation39_spill] sm:$0xff] %v4993_v44  ;;  %v1903_v19 = vadd.f32 %v6265_v39, %v4867_v3  ;;  %v1897_v38 = vadd.f32 %v6272_v46, %v4899_v63  ;;  %v6281_v39 = vld [vmem:[#allocation23_spill] sm:$0xff] }
 0x3ac   : > { %6258 = vst [vmem:[#allocation40_spill] sm:$0xff] %v4995_v12  ;;  %2364 = vmatpush.msrb.mxu0 %v2093_v26  ;;  %2494 = vmatpush.msrb.mxu2 %v2094_v0  ;;  %v2131_v26 = vmax.f32 %v1912_v59, 0.0  ;;  %v2132_v0 = vmax.f32 %v2025_v53, 0.0  ;;  %v2128_v10 = vmax.f32 %v2022_v30, 0.0  ;;  %v6299_v12 = vld [vmem:[#allocation16_spill] sm:$0xff] }
 0x3ad   : > { %2365 = vmatmul.f32.vlgmr.msrb.gmra.mxu0 %v5000_v29  ;;  %2495 = vmatmul.f32.vlgmr.msrb.gmra.mxu2 %v5000_v29  ;;  %v2119_v59 = vmax.f32 %v1903_v19, 0.0  ;;  %v2111_v1 = vmax.f32 %v1897_v38, 0.0  ;;  %v1888_v19 = vadd.f32 %v6281_v39, %v4971_v15 }
 0x3ae   : > { %2609 = vmatpush.msra.mxu0 %v2155_v49  ;;  %2739 = vmatpush.msra.mxu2 %v2156_v56  ;;  %v2016_v49 = vadd.f32 %v6266_v27, %v4867_v3  ;;  %v2127_v56 = vmax.f32 %v1909_v32, 0.0  ;;  %v2123_v3 = vmax.f32 %v1906_v47, 0.0  ;;  %v2004_v47 = vadd.f32 %v6277_v36, %v4961_v17  ;;  %v6282_v27 = vld [vmem:[#allocation10_spill] sm:$0xff] }
 0x3b0   : > { %2610 = vmatpush.msra.mxu0 %v2151_v60  ;;  %2740 = vmatpush.msra.mxu2 %v2152_v57  ;;  %v5016_v23 = vpop.f32.mrf.mxu0  ;;  %v5018_v20 = vpop.f32.mrf.mxu1  ;;  %v5062_v60 = vld [vmem:[%s6114_s9 + $0x20] sm:$0xff]  ;;  %v6270_v57 = vld [vmem:[#allocation18_spill] sm:$0xff]  ;;  %v2120_v53 = vmax.f32 %v2016_v49, 0.0  ;;  %v2001_v49 = vadd.f32 %v6282_v27, %v4971_v15 }
 0x3b1   : > { %6269 = vst [vmem:[#allocation11_spill] sm:$0xff] %v5062_v60  ;;  %v1900_v28 = vadd.f32 %v6270_v57, %v4895_v8  ;;  %v5157_v27 = vld [vmem:[%s6114_s9 + $0x70] sm:$0xff] }
 0x3b2   : > { %2611 = vmatpush.msra.mxu0 %v2147_v13  ;;  %2741 = vmatpush.msra.mxu2 %v2148_v48  ;;  %v5024_v14 = vpop.f32.mrf.mxu2  ;;  %v5026_v41 = vpop.f32.mrf.mxu3  ;;  %v2013_v13 = vadd.f32 %v6271_v50, %v4895_v8  ;;  %v2124_v48 = vmax.f32 %v2019_v11, 0.0  ;;  %v6274_v8 = vld [vmem:[#allocation22_spill] sm:$0xff]  ;;  %v2100_v15 = vmax.f32 %v2001_v49, 0.0  ;;  %6294 = vst [vmem:[#allocation10_spill] sm:$0xff] %v5157_v27 }
 0x3b3   : > { %6259 = vst [vmem:[#allocation41_spill] sm:$0xff] %v5024_v14  ;;  %v2115_v32 = vmax.f32 %v1900_v28, 0.0  ;;  %v6284_v28 = vld [vmem:[#allocation9_spill] sm:$0xff] }
 0x3b4   : > { %6260 = vst [vmem:[#allocation42_spill] sm:$0xff] %v5026_v41  ;;  %2612 = vmatpush.msra.mxu0 %v2143_v22  ;;  %2742 = vmatpush.msra.mxu2 %v2144_v18  ;;  %v6273_v22 = vld [vmem:[#allocation17_spill] sm:$0xff]  ;;  %v2116_v2 = vmax.f32 %v2013_v13, 0.0  ;;  %v1998_v50 = vadd.f32 %v6284_v28, %v4977_v31  ;;  %v6300_v41 = vld [vmem:[#allocation26_spill] sm:$0xff] }
 0x3b5   : > { %2368 = vmatmul.f32.gmra.mxu0 %v5031_v16  ;;  %2498 = vmatmul.f32.gmra.mxu2 %v5031_v16  ;;  %v2010_v18 = vadd.f32 %v6273_v22, %v4899_v63  ;;  %v6276_v63 = vld [vmem:[#allocation24_spill] sm:$0xff] }
 0x3b6   : > { %2613 = vmatpush.msra.mxu0 %v2139_v21  ;;  %2743 = vmatpush.msra.mxu2 %v2140_v55  ;;  %v1894_v21 = vadd.f32 %v6274_v8, %v4909_v42  ;;  %v6275_v55 = vld [vmem:[#allocation19_spill] sm:$0xff] }
 0x3b7   : > { %v2007_v35 = vadd.f32 %v6275_v55, %v4909_v42  ;;  %v2112_v11 = vmax.f32 %v2010_v18, 0.0  ;;  %v2096_v18 = vmax.f32 %v1998_v50, 0.0 }
 0x3b8   : > { %2614 = vmatpush.msra.mxu0 %v2135_v52  ;;  %2744 = vmatpush.msra.mxu2 %v2136_v7  ;;  %v5047_v6 = vpop.f32.mrf.mxu0  ;;  %v5049_v33 = vpop.f32.mrf.mxu1  ;;  %v1891_v7 = vadd.f32 %v6276_v63, %v4961_v17  ;;  %v2107_v17 = vmax.f32 %v1894_v21, 0.0 }
 0x3ba   : > { %2615 = vmatpush.msra.mxu0 %v2131_v26  ;;  %2745 = vmatpush.msra.mxu2 %v2132_v0  ;;  %v5055_v5 = vpop.f32.mrf.mxu2  ;;  %v5057_v24 = vpop.f32.mrf.mxu3  ;;  %v5093_v0 = vld [vmem:[%s6114_s9 + $0x30] sm:$0xff]  ;;  %v2103_v13 = vmax.f32 %v1891_v7, 0.0 }
 0x3bb   : > { %6267 = vst [vmem:[#allocation29_spill] sm:$0xff] %v5055_v5  ;;  %v5212_v5 = vld [vmem:[%s6114_s9 + $0xc0] sm:$0xff] }
 0x3bc   : > { %6268 = vst [vmem:[#allocation30_spill] sm:$0xff] %v5057_v24  ;;  %2616 = vmatpush.msra.mxu0 %v2127_v56  ;;  %2746 = vmatpush.msra.mxu2 %v2128_v10  ;;  %v2108_v56 = vmax.f32 %v2007_v35, 0.0  ;;  %v6283_v10 = vld [vmem:[#allocation25_spill] sm:$0xff] }
 0x3bd   : > { %2371 = vmatmul.f32.gmra.mxu0 %v5062_v60  ;;  %2501 = vmatmul.f32.gmra.mxu2 %v5062_v60  ;;  %6280 = vst [vmem:[#allocation14_spill] sm:$0xff] %v5093_v0  ;;  %v1885_v57 = vadd.f32 %v6283_v10, %v4977_v31  ;;  %v5116_v31 = vld [vmem:[%s6114_s9 + $0x40] sm:$0xff] }
 0x3be   : > { %2617 = vmatpush.msra.mxu0 %v2123_v3  ;;  %2747 = vmatpush.msra.mxu2 %v2124_v48  ;;  %v2104_v3 = vmax.f32 %v2004_v47, 0.0  ;;  %v2099_v48 = vmax.f32 %v1888_v19, 0.0  ;;  %6287 = vst [vmem:[#allocation20_spill] sm:$0xff] %v5116_v31  ;;  %v5146_v47 = vld [vmem:[%s6114_s9 + $0x60] sm:$0xff] }
 0x3bf   : > { %v2095_v22 = vmax.f32 %v1885_v57, 0.0  ;;  %6293 = vst [vmem:[#allocation23_spill] sm:$0xff] %v5146_v47  ;;  %v5168_v57 = vld [vmem:[%s6114_s9 + $0x80] sm:$0xff] }
 0x3c0   : > { %2618 = vmatpush.msra.mxu0 %v2119_v59  ;;  %2748 = vmatpush.msra.mxu2 %v2120_v53  ;;  %v5078_v30 = vpop.f32.mrf.mxu0  ;;  %v5080_v52 = vpop.f32.mrf.mxu1  ;;  %6295 = vst [vmem:[#allocation25_spill] sm:$0xff] %v5168_v57 }
 0x3c1   : > { %6301 = vst [vmem:[#allocation16_spill] sm:$0xff] %v5212_v5 }
 0x3c2   : > { %2619 = vmatpush.msra.mxu0 %v2115_v32  ;;  %2749 = vmatpush.msra.mxu2 %v2116_v2  ;;  %v5086_v26 = vpop.f32.mrf.mxu2  ;;  %v5088_v42 = vpop.f32.mrf.mxu3  ;;  %v5131_v32 = vld [vmem:[%s6114_s9 + $0x50] sm:$0xff] }
 0x3c3   : > { %6278 = vst [vmem:[#allocation12_spill] sm:$0xff] %v5086_v26  ;;  %v6302_v26 = vld [vmem:[#allocation27_spill] sm:$0xff] }
 0x3c4   : > { %6279 = vst [vmem:[#allocation13_spill] sm:$0xff] %v5088_v42  ;;  %2620 = vmatpush.msra.mxu0 %v2111_v1  ;;  %2750 = vmatpush.msra.mxu2 %v2112_v11 }
 0x3c5   : > { %2374 = vmatmul.f32.gmra.mxu0 %v5093_v0  ;;  %2504 = vmatmul.f32.gmra.mxu2 %v5093_v0  ;;  %6290 = vst [vmem:[#allocation19_spill] sm:$0xff] %v5131_v32 }
 0x3c6   : > { %2621 = vmatpush.msra.mxu0 %v2107_v17  ;;  %2751 = vmatpush.msra.mxu2 %v2108_v56 }
 0x3c8   : > { %2622 = vmatpush.msra.mxu0 %v2103_v13  ;;  %2752 = vmatpush.msra.mxu2 %v2104_v3  ;;  %v5105_v46 = vpop.f32.mrf.mxu0  ;;  %v5107_v38 = vpop.f32.mrf.mxu1  ;;  %v5175_v13 = vld [vmem:[%s6114_s9 + $0x90] sm:$0xff] }
 0x3c9   : > { %6296 = vst [vmem:[#allocation9_spill] sm:$0xff] %v5175_v13 }
 0x3ca   : > { %2623 = vmatpush.msra.mxu0 %v2099_v48  ;;  %2753 = vmatpush.msra.mxu2 %v2100_v15  ;;  %v5109_v59 = vpop.f32.mrf.mxu2  ;;  %v5111_v53 = vpop.f32.mrf.mxu3 }
 0x3cb   : > { %6285 = vst [vmem:[#allocation18_spill] sm:$0xff] %v5109_v59 }
 0x3cc   : > { %6286 = vst [vmem:[#allocation15_spill] sm:$0xff] %v5111_v53  ;;  %2624 = vmatpush.msra.mxu0 %v2095_v22  ;;  %2754 = vmatpush.msra.mxu2 %v2096_v18  ;;  %v5186_v18 = vld [vmem:[%s6114_s9 + $0xa0] sm:$0xff] }
 0x3cd   : > { %2377 = vmatmul.f32.gmra.mxu0 %v5116_v31  ;;  %2507 = vmatmul.f32.gmra.mxu2 %v5116_v31  ;;  %6297 = vst [vmem:[#allocation43_spill] sm:$0xff] %v5186_v18 }
 0x3d0   : > { %v5120_v8 = vpop.f32.mrf.mxu0  ;;  %v5122_v21 = vpop.f32.mrf.mxu1 }
 0x3d2   : > { %v5124_v55 = vpop.f32.mrf.mxu2  ;;  %v5126_v35 = vpop.f32.mrf.mxu3 }
 0x3d3   : > { %6288 = vst [vmem:[#allocation17_spill] sm:$0xff] %v5124_v55 }
 0x3d4   : > { %6289 = vst [vmem:[#allocation22_spill] sm:$0xff] %v5126_v35  ;;  %v6304_v35 = vld [vmem:[#allocation31_spill] sm:$0xff] }
 0x3d5   : > { %2380 = vmatmul.f32.gmra.mxu0 %v5131_v32  ;;  %2510 = vmatmul.f32.gmra.mxu2 %v5131_v32 }
 0x3d8   : > { %v5135_v2 = vpop.f32.mrf.mxu0  ;;  %v5137_v63 = vpop.f32.mrf.mxu1 }
 0x3da   : > { %v5139_v7 = vpop.f32.mrf.mxu2  ;;  %v5141_v36 = vpop.f32.mrf.mxu3 }
 0x3db   : > { %6291 = vst [vmem:[#allocation24_spill] sm:$0xff] %v5139_v7 }
 0x3dc   : > { %6292 = vst [vmem:[#allocation21_spill] sm:$0xff] %v5141_v36  ;;  %v6305_v36 = vld [vmem:[#allocation32_spill] sm:$0xff] }
 0x3dd   : > { %2383 = vmatmul.f32.gmra.mxu0 %v5146_v47  ;;  %2513 = vmatmul.f32.gmra.mxu2 %v5146_v47 }
 0x3e0   : > { %v1736_v1 = vpop.f32.mrf.mxu0  ;;  %v1849_v11 = vpop.f32.mrf.mxu1 }
 0x3e2   : > { %v5150_v39 = vpop.f32.mrf.mxu2  ;;  %v5152_v19 = vpop.f32.mrf.mxu3 }
 0x3e5   : > { %2386 = vmatmul.f32.gmra.mxu0 %v5157_v27  ;;  %2516 = vmatmul.f32.gmra.mxu2 %v5157_v27 }
 0x3e8   : > { %v1739_v49 = vpop.f32.mrf.mxu0  ;;  %v1852_v17 = vpop.f32.mrf.mxu1 }
 0x3e9   : > { %v1740_v55 = vadd.f32 %v1739_v49, %v6304_v35 }
 0x3ea   : > { %v5161_v56 = vpop.f32.mrf.mxu2  ;;  %v5163_v10 = vpop.f32.mrf.mxu3 }
 0x3ed   : > { %2389 = vmatmul.f32.gmra.mxu0 %v5168_v57  ;;  %2519 = vmatmul.f32.gmra.mxu2 %v5168_v57 }
 0x3f0   : > { %v1742_v28 = vpop.f32.mrf.mxu0  ;;  %v1855_v50 = vpop.f32.mrf.mxu1 }
 0x3f2   : > { %v5177_v3 = vpop.f32.mrf.mxu2  ;;  %v5179_v48 = vpop.f32.mrf.mxu3 }
 0x3f5   : > { %2392 = vmatmul.f32.gmra.mxu0 %v5175_v13  ;;  %2522 = vmatmul.f32.gmra.mxu2 %v5175_v13  ;;  %v5197_v13 = vld [vmem:[%s6114_s9 + $0xb0] sm:$0xff] }
 0x3f6   : > { %6298 = vst [vmem:[#allocation44_spill] sm:$0xff] %v5197_v13 }
 0x3f8   : > { %v1745_v15 = vpop.f32.mrf.mxu0  ;;  %v1858_v22 = vpop.f32.mrf.mxu1 }
 0x3f9   : > { %v1746_v60 = vadd.f32 %v1745_v15, %v6302_v26  ;;  %v1859_v53 = vadd.f32 %v1858_v22, %v6302_v26 }
 0x3fa   : > { %v5188_v57 = vpop.f32.mrf.mxu2  ;;  %v5190_v27 = vpop.f32.mrf.mxu3 }
 0x3fb   : > { %v2210_v15 = vmax.f32 %v1859_v53, 0.0  ;;  %v2201_v53 = vmax.f32 %v1740_v55, 0.0 }
 0x3fd   : > { %2395 = vmatmul.f32.gmra.mxu0 %v5186_v18  ;;  %2525 = vmatmul.f32.gmra.mxu2 %v5186_v18 }
 0x400   : > { %v1748_v47 = vpop.f32.mrf.mxu0  ;;  %v1861_v32 = vpop.f32.mrf.mxu1 }
 0x401   : > { %v1749_v14 = vadd.f32 %v1748_v47, %v6300_v41  ;;  %v1862_v24 = vadd.f32 %v1861_v32, %v6300_v41 }
 0x402   : > { %v5201_v31 = vpop.f32.mrf.mxu2  ;;  %v5203_v37 = vpop.f32.mrf.mxu3 }
 0x403   : > { %v2213_v32 = vmax.f32 %v1749_v14, 0.0  ;;  %v2214_v59 = vmax.f32 %v1862_v24, 0.0  ;;  %v5231_v24 = vld [vmem:[%s6114_s9 + $0xd0] sm:$0xff] }
 0x405   : > { %2398 = vmatmul.f32.gmra.mxu0 %v5197_v13  ;;  %2528 = vmatmul.f32.gmra.mxu2 %v5197_v13 }
 0x408   : > { %v1751_v4 = vpop.f32.mrf.mxu0  ;;  %v1864_v0 = vpop.f32.mrf.mxu1 }
 0x409   : > { %v1752_v44 = vadd.f32 %v1751_v4, %v6299_v12  ;;  %v1865_v18 = vadd.f32 %v1864_v0, %v6299_v12  ;;  %v6303_v4 = vld [vmem:[#allocation28_spill] sm:$0xff] }
 0x40a   : > { %v1743_v0 = vadd.f32 %v1742_v28, %v6303_v4  ;;  %v1856_v47 = vadd.f32 %v1855_v50, %v6303_v4  ;;  %v5222_v22 = vpop.f32.mrf.mxu2  ;;  %v1850_v28 = vadd.f32 %v1849_v11, %v6305_v36  ;;  %v5226_v14 = vpop.f32.mrf.mxu3  ;;  %v6307_v11 = vld [vmem:[#allocation34_spill] sm:$0xff] }
 0x40b   : > { %v2217_v13 = vmax.f32 %v1752_v44, 0.0  ;;  %v2218_v42 = vmax.f32 %v1865_v18, 0.0  ;;  %v1853_v44 = vadd.f32 %v1852_v17, %v6304_v35  ;;  %v2209_v18 = vmax.f32 %v1746_v60, 0.0  ;;  %v6306_v60 = vld [vmem:[#allocation33_spill] sm:$0xff] }
 0x40c   : > { %v2205_v7 = vmax.f32 %v1743_v0, 0.0  ;;  %v2206_v50 = vmax.f32 %v1856_v47, 0.0  ;;  %v1731_v49 = vadd.f32 %v5120_v8, %v6307_v11  ;;  %v1844_v17 = vadd.f32 %v5122_v21, %v6307_v11 }
 0x40d   : > { %2401 = vmatmul.f32.gmra.mxu0 %v5212_v5  ;;  %2531 = vmatmul.f32.gmra.mxu2 %v5212_v5  ;;  %v1737_v5 = vadd.f32 %v1736_v1, %v6305_v36  ;;  %v2202_v1 = vmax.f32 %v1853_v44, 0.0  ;;  %v2198_v0 = vmax.f32 %v1850_v28, 0.0 }
 0x40e   : > { %2414 = vmatpush.msrb.mxu1 %v2217_v13  ;;  %2544 = vmatpush.msrb.mxu3 %v2218_v42  ;;  %v1734_v42 = vadd.f32 %v5135_v2, %v6306_v60  ;;  %v6308_v2 = vld [vmem:[#allocation35_spill] sm:$0xff]  ;;  %v2190_v44 = vmax.f32 %v1844_v17, 0.0 }
 0x40f   : > { %v2197_v13 = vmax.f32 %v1737_v5, 0.0  ;;  %v1728_v55 = vadd.f32 %v5105_v46, %v6308_v2  ;;  %v2189_v5 = vmax.f32 %v1731_v49, 0.0  ;;  %v5254_v46 = vld [vmem:[%s6114_s9 + $0xe0] sm:$0xff] }
 0x410   : > { %2415 = vmatpush.msrb.mxu1 %v2213_v32  ;;  %2545 = vmatpush.msrb.mxu3 %v2214_v59  ;;  %v1847_v59 = vadd.f32 %v5137_v63, %v6306_v60  ;;  %v1841_v63 = vadd.f32 %v5107_v38, %v6308_v2  ;;  %v6309_v32 = vld [vmem:[#allocation36_spill] sm:$0xff]  ;;  %v5256_v38 = vpop.permute.xlu0 %1573 }
 0x411   : > { %v1725_v8 = vadd.f32 %v5078_v30, %v6309_v32  ;;  %v1838_v21 = vadd.f32 %v5080_v52, %v6309_v32  ;;  %v1835_v30 = vadd.f32 %v5049_v33, %v4927_v45  ;;  %v2185_v28 = vmax.f32 %v1728_v55, 0.0 }
 0x412   : > { %2416 = vmatpush.msrb.mxu1 %v2209_v18  ;;  %2546 = vmatpush.msrb.mxu3 %v2210_v15  ;;  %v2194_v47 = vmax.f32 %v1847_v59, 0.0  ;;  %v1974_v18 = vpop.f32.mrf.mxu2  ;;  %v1722_v15 = vadd.f32 %v5047_v6, %v4927_v45  ;;  %v2186_v52 = vmax.f32 %v1841_v63, 0.0  ;;  %v1832_v59 = vadd.f32 %v5018_v20, %v4937_v34 }
 0x413   : > { %v2182_v6 = vmax.f32 %v1838_v21, 0.0  ;;  %v1716_v33 = vadd.f32 %v4985_v61, %v4943_v58  ;;  %v2178_v17 = vmax.f32 %v1835_v30, 0.0  ;;  %v1826_v20 = vadd.f32 %v4959_v25, %v5256_v38  ;;  %v5279_v61 = vld [vmem:[%s6114_s9 + $0xf0] sm:$0xff] }
 0x414   : > { %2417 = vmatpush.msrb.mxu1 %v2205_v7  ;;  %2547 = vmatpush.msrb.mxu3 %v2206_v50  ;;  %v2193_v7 = vmax.f32 %v1734_v42, 0.0  ;;  %v2087_v50 = vpop.f32.mrf.mxu3  ;;  %v1719_v42 = vadd.f32 %v5016_v23, %v4937_v34  ;;  %v2177_v49 = vmax.f32 %v1722_v15, 0.0  ;;  %v1713_v23 = vadd.f32 %v4957_v54, %v5256_v38 }
 0x415   : > { %2404 = vmatmul.f32.gmra.mxu0 %v5231_v24  ;;  %2534 = vmatmul.f32.gmra.mxu2 %v5231_v24  ;;  %v2169_v63 = vmax.f32 %v1716_v33, 0.0 }
 0x416   : > { %2418 = vmatpush.msrb.mxu1 %v2201_v53  ;;  %2548 = vmatpush.msrb.mxu3 %v2202_v1  ;;  %v2181_v53 = vmax.f32 %v1725_v8, 0.0  ;;  %v1829_v1 = vadd.f32 %v4987_v40, %v4943_v58  ;;  %v5281_v40 = vpop.permute.xlu2 %1568  ;;  %v2165_v21 = vmax.f32 %v1713_v23, 0.0 }
 0x417   : > { %v1710_v55 = vadd.f32 %v4933_v51, %v5281_v40  ;;  %v1823_v54 = vadd.f32 %v4935_v9, %v5281_v40 }
 0x418   : > { %2419 = vmatpush.msrb.mxu1 %v2197_v13  ;;  %2549 = vmatpush.msrb.mxu3 %v2198_v0  ;;  %v2173_v13 = vmax.f32 %v1719_v42, 0.0  ;;  %v2174_v0 = vmax.f32 %v1832_v59, 0.0  ;;  %v5287_v25 = vpop.permute.xlu0 %1563  ;;  %v2088_v59 = vadd.f32 %v2087_v50, %v6300_v41 }
 0x419   : > { %v1707_v8 = vadd.f32 %v4905_v43, %v5287_v25  ;;  %v1820_v51 = vadd.f32 %v4907_v62, %v5287_v25  ;;  %v2162_v15 = vmax.f32 %v1823_v54, 0.0  ;;  %v1975_v43 = vadd.f32 %v1974_v18, %v6300_v41  ;;  %v5301_v62 = vld [vmem:[%s6114_s9 + $0x8] sm:$0xff] }
 0x41a   : > { %2420 = vmatpush.msrb.mxu1 %v2193_v7  ;;  %2550 = vmatpush.msrb.mxu3 %v2194_v47  ;;  %v2170_v7 = vmax.f32 %v1829_v1, 0.0  ;;  %v1977_v47 = vpop.f32.mrf.mxu2  ;;  %v1969_v18 = vadd.f32 %v5201_v31, %v6303_v4  ;;  %v2082_v41 = vadd.f32 %v5203_v37, %v6303_v4  ;;  %v2079_v31 = vadd.f32 %v5190_v27, %v6304_v35  ;;  %v5323_v37 = vld [vmem:[%s6114_s9 + $0x18] sm:$0xff] }
 0x41b   : > { %v1978_v30 = vadd.f32 %v1977_v47, %v6299_v12  ;;  %v2158_v42 = vmax.f32 %v1820_v51, 0.0  ;;  %v2215_v1 = vmax.f32 %v1975_v43, 0.0  ;;  %v2073_v27 = vadd.f32 %v5163_v10, %v6306_v60  ;;  %v6310_v10 = vld [vmem:[#allocation24_spill] sm:$0xff]  ;;  %v6314_v47 = vld [vmem:[#allocation18_spill] sm:$0xff]  ;;  %v6315_v51 = vld [vmem:[#allocation15_spill] sm:$0xff] }
 0x41c   : > { %2421 = vmatpush.msrb.mxu1 %v2189_v5  ;;  %2551 = vmatpush.msrb.mxu3 %v2190_v44  ;;  %v2166_v5 = vmax.f32 %v1826_v20, 0.0  ;;  %v2090_v9 = vpop.f32.mrf.mxu3  ;;  %v2161_v44 = vmax.f32 %v1710_v55, 0.0  ;;  %v2208_v4 = vmax.f32 %v2082_v41, 0.0  ;;  %v2204_v23 = vmax.f32 %v2079_v31, 0.0  ;;  %v6322_v41 = vld [vmem:[#allocation42_spill] sm:$0xff] }
 0x41d   : > { %2407 = vmatmul.f32.gmra.mxu0 %v5254_v46  ;;  %2537 = vmatmul.f32.gmra.mxu2 %v5254_v46 }
 0x41e   : > { %2422 = vmatpush.msrb.mxu1 %v2185_v28  ;;  %2552 = vmatpush.msrb.mxu3 %v2186_v52  ;;  %v2091_v28 = vadd.f32 %v2090_v9, %v6299_v12  ;;  %v2157_v52 = vmax.f32 %v1707_v8, 0.0  ;;  %v2085_v12 = vadd.f32 %v5226_v14, %v6302_v26  ;;  %v1966_v14 = vadd.f32 %v5188_v57, %v6304_v35  ;;  %v6316_v9 = vld [vmem:[#allocation11_spill] sm:$0xff] }
 0x41f   : > { %v2076_v57 = vadd.f32 %v5179_v48, %v6305_v36  ;;  %v1948_v8 = vadd.f32 %v6314_v47, %v4927_v45 }
 0x420   : > { %2423 = vmatpush.msrb.mxu1 %v2181_v53  ;;  %2553 = vmatpush.msrb.mxu3 %v2182_v6  ;;  %v1972_v53 = vadd.f32 %v5222_v22, %v6302_v26  ;;  %v2219_v6 = vmax.f32 %v1978_v30, 0.0  ;;  %v2220_v33 = vmax.f32 %v2091_v28, 0.0  ;;  %v2216_v22 = vmax.f32 %v2088_v59, 0.0  ;;  %v6318_v30 = vld [vmem:[#allocation13_spill] sm:$0xff] }
 0x421   : > { %v2212_v50 = vmax.f32 %v2085_v12, 0.0  ;;  %v2203_v35 = vmax.f32 %v1966_v14, 0.0  ;;  %v2200_v48 = vmax.f32 %v2076_v57, 0.0  ;;  %v2058_v28 = vadd.f32 %v6318_v30, %v4937_v34 }
 0x422   : > { %2424 = vmatpush.msrb.mxu1 %v2177_v49  ;;  %2554 = vmatpush.msrb.mxu3 %v2178_v17  ;;  %v2211_v26 = vmax.f32 %v1972_v53, 0.0  ;;  %v2207_v49 = vmax.f32 %v1969_v18, 0.0  ;;  %v1960_v17 = vadd.f32 %v5161_v56, %v6306_v60  ;;  %v2070_v56 = vadd.f32 %v5152_v19, %v6307_v11  ;;  %v6312_v19 = vld [vmem:[#allocation17_spill] sm:$0xff]  ;;  %v6320_v53 = vld [vmem:[#allocation30_spill] sm:$0xff] }
 0x423   : > { %v1954_v60 = vadd.f32 %v6310_v10, %v6308_v2  ;;  %v5412_v10 = vld [vmem:[%s6114_s9 + $0x68] sm:$0xff] }
 0x424   : > { %2425 = vmatpush.msrb.mxu1 %v2173_v13  ;;  %2555 = vmatpush.msrb.mxu3 %v2174_v0  ;;  %v2195_v20 = vmax.f32 %v1960_v17, 0.0  ;;  %v2196_v13 = vmax.f32 %v2073_v27, 0.0  ;;  %v6311_v0 = vld [vmem:[#allocation21_spill] sm:$0xff]  ;;  %v2192_v54 = vmax.f32 %v2070_v56, 0.0  ;;  %v6327_v17 = vld [vmem:[#allocation38_spill] sm:$0xff] }
 0x425   : > { %2410 = vmatmul.f32.gmra.mxu0 %v5279_v61  ;;  %2540 = vmatmul.f32.gmra.mxu2 %v5279_v61  ;;  %v2067_v55 = vadd.f32 %v6311_v0, %v6308_v2  ;;  %v2187_v2 = vmax.f32 %v1954_v60, 0.0  ;;  %v6330_v60 = vld [vmem:[#allocation23_spill] sm:$0xff] }
 0x426   : > { %2426 = vmatpush.msrb.mxu1 %v2169_v63  ;;  %2556 = vmatpush.msrb.mxu3 %v2170_v7  ;;  %v6313_v63 = vld [vmem:[#allocation22_spill] sm:$0xff] }
 0x427   : > { %v2064_v7 = vadd.f32 %v6313_v63, %v6309_v32  ;;  %v6336_v63 = vld [vmem:[#allocation25_spill] sm:$0xff] }
 0x428   : > { %2427 = vmatpush.msrb.mxu1 %v2165_v21  ;;  %2557 = vmatpush.msrb.mxu3 %v2166_v5  ;;  %v2061_v21 = vadd.f32 %v6315_v51, %v4927_v45  ;;  %v2188_v5 = vmax.f32 %v2067_v55, 0.0  ;;  %v6319_v45 = vld [vmem:[#allocation29_spill] sm:$0xff]  ;;  %v5425_v55 = vld [vmem:[%s6114_s9 + $0x78] sm:$0xff] }
 0x429   : > { %v1942_v43 = vadd.f32 %v6319_v45, %v4943_v58  ;;  %v5460_v51 = vld [vmem:[%s6114_s9 + $0xa8] sm:$0xff]  ;;  %v5497_v45 = vld [vmem:[%s6114_s9 + $0xd8] sm:$0xff] }
 0x42a   : > { %2428 = vmatpush.msrb.mxu1 %v2161_v44  ;;  %2558 = vmatpush.msrb.mxu3 %v2162_v15  ;;  %v6317_v44 = vld [vmem:[#allocation12_spill] sm:$0xff]  ;;  %v2180_v59 = vmax.f32 %v2061_v21, 0.0 }
 0x42b   : > { %v1945_v15 = vadd.f32 %v6317_v44, %v4937_v34  ;;  %v6321_v34 = vld [vmem:[#allocation41_spill] sm:$0xff]  ;;  %v5473_v44 = vld [vmem:[%s6114_s9 + $0xb8] sm:$0xff] }
 0x42c   : > { %2429 = vmatpush.msrb.mxu1 %v2157_v52  ;;  %2559 = vmatpush.msrb.mxu3 %v2158_v42  ;;  %v2184_v52 = vmax.f32 %v2064_v7, 0.0  ;;  %v2179_v42 = vmax.f32 %v1948_v8, 0.0  ;;  %v1939_v18 = vadd.f32 %v6321_v34, %v5256_v38  ;;  %v5447_v7 = vld [vmem:[%s6114_s9 + $0x98] sm:$0xff] }
 0x42d   : > { %2430 = vmatmul.f32.vlgmr.msrb.gmra.mxu1 %v5301_v62  ;;  %2560 = vmatmul.f32.vlgmr.msrb.gmra.mxu3 %v5301_v62  ;;  %v2175_v12 = vmax.f32 %v1945_v15, 0.0  ;;  %v6341_v15 = vld [vmem:[#allocation44_spill] sm:$0xff] }
 0x42e   : > { %2625 = vmatmul.f32.vlgmr.msra.gmra.mxu0 %v5000_v29  ;;  %2674 = vmatpush.msra.mxu1 %v2219_v6  ;;  %v2055_v6 = vadd.f32 %v6320_v53, %v4943_v58  ;;  %v2171_v58 = vmax.f32 %v1942_v43, 0.0 }
 0x42f   : > { %2755 = vmatmul.f32.vlgmr.msra.gmra.mxu2 %v5000_v29  ;;  %2804 = vmatpush.msra.mxu3 %v2220_v33  ;;  %v1963_v29 = vadd.f32 %v5177_v3, %v6305_v36  ;;  %v1957_v3 = vadd.f32 %v5150_v39, %v6307_v11  ;;  %v1951_v11 = vadd.f32 %v6312_v19, %v6309_v32  ;;  %v5373_v33 = vld [vmem:[%s6114_s9 + $0x38] sm:$0xff] }
 0x430   : > { %2675 = vmatpush.msra.mxu1 %v2215_v1  ;;  %v2176_v1 = vmax.f32 %v2058_v28, 0.0  ;;  %v5420_v0 = vpop.f32.mrf.mxu2  ;;  %v5486_v28 = vld [vmem:[%s6114_s9 + $0xc8] sm:$0xff] }
 0x431   : > { %2805 = vmatpush.msra.mxu3 %v2216_v22  ;;  %v2199_v36 = vmax.f32 %v1963_v29, 0.0  ;;  %v2191_v39 = vmax.f32 %v1957_v3, 0.0  ;;  %v2183_v32 = vmax.f32 %v1951_v11, 0.0  ;;  %v2052_v22 = vadd.f32 %v6322_v41, %v5256_v38  ;;  %v6325_v29 = vld [vmem:[#allocation14_spill] sm:$0xff]  ;;  %6332 = vst [vmem:[#allocation27_spill] sm:$0xff] %v5420_v0  ;;  %v5436_v11 = vld [vmem:[%s6114_s9 + $0x88] sm:$0xff]  ;;  %v5631_v0 = vpop.permute.xlu0 %2336 }
 0x432   : > { %2676 = vmatpush.msra.mxu1 %v2211_v26  ;;  %v6323_v26 = vld [vmem:[#allocation39_spill] sm:$0xff]  ;;  %v2167_v38 = vmax.f32 %v1939_v18, 0.0 }
 0x433   : > { %2806 = vmatpush.msra.mxu3 %v2212_v50  ;;  %v1936_v14 = vadd.f32 %v6323_v26, %v5281_v40  ;;  %v6324_v50 = vld [vmem:[#allocation40_spill] sm:$0xff]  ;;  %v2168_v27 = vmax.f32 %v2052_v22, 0.0 }
 0x434   : > { %2677 = vmatpush.msra.mxu1 %v2207_v49  ;;  %v2049_v31 = vadd.f32 %v6324_v50, %v5281_v40  ;;  %v2172_v49 = vmax.f32 %v2055_v6, 0.0 }
 0x435   : > { %2807 = vmatpush.msra.mxu3 %v2208_v4  ;;  %2433 = vmatmul.f32.gmra.mxu1 %v5323_v37  ;;  %v6326_v4 = vld [vmem:[#allocation37_spill] sm:$0xff] }
 0x436   : > { %2563 = vmatmul.f32.gmra.mxu3 %v5323_v37  ;;  %2628 = vmatmul.f32.gmra.mxu0 %v5031_v16  ;;  %v1933_v57 = vadd.f32 %v6326_v4, %v5287_v25  ;;  %v2164_v40 = vmax.f32 %v2049_v31, 0.0 }
 0x437   : > { %2678 = vmatpush.msra.mxu1 %v2203_v35  ;;  %2758 = vmatmul.f32.gmra.mxu2 %v5031_v16  ;;  %v5348_v16 = vld [vmem:[%s6114_s9 + $0x28] sm:$0xff]  ;;  %v2046_v35 = vadd.f32 %v6327_v17, %v5287_v25 }
 0x438   : > { %2808 = vmatpush.msra.mxu3 %v2204_v23  ;;  %v2163_v23 = vmax.f32 %v1936_v14, 0.0  ;;  %v2159_v3 = vmax.f32 %v1933_v57, 0.0  ;;  %v6328_v25 = vld [vmem:[#allocation20_spill] sm:$0xff] }
 0x439   : > { %2679 = vmatpush.msra.mxu1 %v2199_v36  ;;  %v5394_v36 = vld [vmem:[%s6114_s9 + $0x48] sm:$0xff]  ;;  %v2160_v56 = vmax.f32 %v2046_v35, 0.0 }
 0x43a   : > { %2809 = vmatpush.msra.mxu3 %v2200_v48  ;;  %v5403_v48 = vld [vmem:[%s6114_s9 + $0x58] sm:$0xff] }
 0x43b   : > { %2680 = vmatpush.msra.mxu1 %v2195_v20  ;;  %v6329_v20 = vld [vmem:[#allocation19_spill] sm:$0xff] }
 0x43c   : > { %2810 = vmatpush.msra.mxu3 %v2196_v13  ;;  %v5418_v13 = vpop.f32.mrf.mxu0 }
 0x43d   : > { %2681 = vmatpush.msra.mxu1 %v2191_v39  ;;  %6331 = vst [vmem:[#allocation26_spill] sm:$0xff] %v5418_v13  ;;  %v6333_v39 = vld [vmem:[#allocation10_spill] sm:$0xff] }
 0x43e   : > { %2811 = vmatpush.msra.mxu3 %v2192_v54  ;;  %2436 = vmatmul.f32.gmra.mxu1 %v5348_v16  ;;  %v5438_v54 = vpop.f32.mrf.mxu2 }
 0x43f   : > { %2566 = vmatmul.f32.gmra.mxu3 %v5348_v16  ;;  %2631 = vmatmul.f32.gmra.mxu0 %v6316_v9  ;;  %6335 = vst [vmem:[#allocation31_spill] sm:$0xff] %v5438_v54 }
 0x440   : > { %2682 = vmatpush.msra.mxu1 %v2187_v2  ;;  %2761 = vmatmul.f32.gmra.mxu2 %v6316_v9  ;;  %v6338_v2 = vld [vmem:[#allocation9_spill] sm:$0xff] }
 0x441   : > { %2812 = vmatpush.msra.mxu3 %v2188_v5  ;;  %v6339_v5 = vld [vmem:[#allocation43_spill] sm:$0xff] }
 0x442   : > { %2683 = vmatpush.msra.mxu1 %v2183_v32 }
 0x443   : > { %2813 = vmatpush.msra.mxu3 %v2184_v52  ;;  %v6343_v52 = vld [vmem:[#allocation16_spill] sm:$0xff] }
 0x444   : > { %2684 = vmatpush.msra.mxu1 %v2179_v42  ;;  %v5431_v19 = vpop.f32.mrf.mxu0 }
 0x445   : > { %2814 = vmatpush.msra.mxu3 %v2180_v59  ;;  %6334 = vst [vmem:[#allocation28_spill] sm:$0xff] %v5431_v19  ;;  %v5508_v59 = vld [vmem:[%s6114_s9 + $0xe8] sm:$0xff] }
 0x446   : > { %2685 = vmatpush.msra.mxu1 %v2175_v12  ;;  %v5451_v8 = vpop.f32.mrf.mxu2 }
 0x447   : > { %2815 = vmatpush.msra.mxu3 %v2176_v1  ;;  %2439 = vmatmul.f32.gmra.mxu1 %v5373_v33  ;;  %6337 = vst [vmem:[#allocation32_spill] sm:$0xff] %v5451_v8 }
 0x448   : > { %2569 = vmatmul.f32.gmra.mxu3 %v5373_v33  ;;  %2634 = vmatmul.f32.gmra.mxu0 %v6325_v29 }
 0x449   : > { %2686 = vmatpush.msra.mxu1 %v2171_v58  ;;  %2764 = vmatmul.f32.gmra.mxu2 %v6325_v29 }
 0x44a   : > { %2816 = vmatpush.msra.mxu3 %v2172_v49 }
 0x44b   : > { %2687 = vmatpush.msra.mxu1 %v2167_v38 }
 0x44c   : > { %2817 = vmatpush.msra.mxu3 %v2168_v27  ;;  %v5449_v47 = vpop.f32.mrf.mxu0 }
 0x44d   : > { %2688 = vmatpush.msra.mxu1 %v2163_v23 }
 0x44e   : > { %2818 = vmatpush.msra.mxu3 %v2164_v40  ;;  %v5467_v9 = vpop.f32.mrf.mxu2 }
 0x44f   : > { %2689 = vmatpush.msra.mxu1 %v2159_v3  ;;  %6340 = vst [vmem:[#allocation33_spill] sm:$0xff] %v5467_v9 }
 0x450   : > { %2819 = vmatpush.msra.mxu3 %v2160_v56  ;;  %2442 = vmatmul.f32.gmra.mxu1 %v5394_v36 }
 0x451   : > { %2572 = vmatmul.f32.gmra.mxu3 %v5394_v36  ;;  %2637 = vmatmul.f32.gmra.mxu0 %v6328_v25 }
 0x452   : > { %2767 = vmatmul.f32.gmra.mxu2 %v6328_v25 }
 0x454   : > { %v5463_v21 = vpop.f32.mrf.mxu0 }
 0x456   : > { %v5481_v30 = vpop.f32.mrf.mxu2 }
 0x457   : > { %6342 = vst [vmem:[#allocation34_spill] sm:$0xff] %v5481_v30 }
 0x458   : > { %2445 = vmatmul.f32.gmra.mxu1 %v5403_v48 }
 0x459   : > { %2575 = vmatmul.f32.gmra.mxu3 %v5403_v48  ;;  %2640 = vmatmul.f32.gmra.mxu0 %v6329_v20 }
 0x45a   : > { %2770 = vmatmul.f32.gmra.mxu2 %v6329_v20 }
 0x45c   : > { %v5479_v32 = vpop.f32.mrf.mxu0 }
 0x45e   : > { %v5499_v43 = vpop.f32.mrf.mxu2 }
 0x45f   : > { %6344 = vst [vmem:[#allocation35_spill] sm:$0xff] %v5499_v43 }
 0x460   : > { %2448 = vmatmul.f32.gmra.mxu1 %v5412_v10 }
 0x461   : > { %2578 = vmatmul.f32.gmra.mxu3 %v5412_v10  ;;  %2643 = vmatmul.f32.gmra.mxu0 %v6330_v60 }
 0x462   : > { %2773 = vmatmul.f32.gmra.mxu2 %v6330_v60 }
 0x464   : > { %v5492_v42 = vpop.f32.mrf.mxu0 }
 0x466   : > { %v5512_v6 = vpop.f32.mrf.mxu2 }
 0x468   : > { %2451 = vmatmul.f32.gmra.mxu1 %v5425_v55 }
 0x469   : > { %2581 = vmatmul.f32.gmra.mxu3 %v5425_v55  ;;  %2646 = vmatmul.f32.gmra.mxu0 %v6333_v39 }
 0x46a   : > { %2776 = vmatmul.f32.gmra.mxu2 %v6333_v39 }
 0x46c   : > { %v5510_v53 = vpop.f32.mrf.mxu0 }
 0x46e   : > { %v5528_v34 = vpop.f32.mrf.mxu2 }
 0x470   : > { %2454 = vmatmul.f32.gmra.mxu1 %v5436_v11 }
 0x471   : > { %2584 = vmatmul.f32.gmra.mxu3 %v5436_v11  ;;  %2649 = vmatmul.f32.gmra.mxu0 %v6336_v63 }
 0x472   : > { %2779 = vmatmul.f32.gmra.mxu2 %v6336_v63 }
 0x474   : > { %v5524_v12 = vpop.f32.mrf.mxu0 }
 0x478   : > { %2457 = vmatmul.f32.gmra.mxu1 %v5447_v7 }
 0x479   : > { %2587 = vmatmul.f32.gmra.mxu3 %v5447_v7  ;;  %2652 = vmatmul.f32.gmra.mxu0 %v6338_v2 }
 0x47a   : > { %2782 = vmatmul.f32.gmra.mxu2 %v6338_v2 }
 0x47c   : > { %v5543_v22 = vpop.f32.mrf.mxu0 }
 0x480   : > { %2460 = vmatmul.f32.gmra.mxu1 %v5460_v51 }
 0x481   : > { %2590 = vmatmul.f32.gmra.mxu3 %v5460_v51  ;;  %2655 = vmatmul.f32.gmra.mxu0 %v6339_v5 }
 0x482   : > { %2785 = vmatmul.f32.gmra.mxu2 %v6339_v5 }
 0x484   : > { %v5555_v58 = vpop.f32.mrf.mxu0 }
 0x488   : > { %2463 = vmatmul.f32.gmra.mxu1 %v5473_v44 }
 0x489   : > { %2593 = vmatmul.f32.gmra.mxu3 %v5473_v44  ;;  %2658 = vmatmul.f32.gmra.mxu0 %v6341_v15 }
 0x48a   : > { %2788 = vmatmul.f32.gmra.mxu2 %v6341_v15 }
 0x48c   : > { %v5565_v49 = vpop.f32.mrf.mxu0 }
 0x490   : > { %2466 = vmatmul.f32.gmra.mxu1 %v5486_v28 }
 0x491   : > { %2596 = vmatmul.f32.gmra.mxu3 %v5486_v28  ;;  %2661 = vmatmul.f32.gmra.mxu0 %v6343_v52 }
 0x492   : > { %2791 = vmatmul.f32.gmra.mxu2 %v6343_v52  ;;  %v5623_v52 = vpop.permute.xlu1 %2346 }
 0x498   : > { %2469 = vmatmul.f32.gmra.mxu1 %v5497_v45 }
 0x499   : > { %2599 = vmatmul.f32.gmra.mxu3 %v5497_v45  ;;  %2664 = vmatmul.f32.gmra.mxu0 %v5231_v24 }
 0x49a   : > { %2794 = vmatmul.f32.gmra.mxu2 %v5231_v24  ;;  %v5521_v24 = vld [vmem:[%s6114_s9 + $0xf8] sm:$0xff] }
 0x4a0   : > { %2472 = vmatmul.f32.gmra.mxu1 %v5508_v59 }
 0x4a1   : > { %2602 = vmatmul.f32.gmra.mxu3 %v5508_v59  ;;  %2667 = vmatmul.f32.gmra.mxu0 %v5254_v46 }
 0x4a2   : > { %2797 = vmatmul.f32.gmra.mxu2 %v5254_v46 }
 0x4a8   : > { %2475 = vmatmul.f32.gmra.mxu1 %v5521_v24 }
 0x4a9   : > { %2605 = vmatmul.f32.gmra.mxu3 %v5521_v24  ;;  %2670 = vmatmul.f32.gmra.mxu0 %v5279_v61 }
 0x4aa   : > { %2800 = vmatmul.f32.gmra.mxu2 %v5279_v61  ;;  %v5531_v18 = vpop.f32.mrf.mxu1  ;;  %v5549_v61 = vpop.f32.mrf.mxu2 }
 0x4ab   : > { %6345 = vst [vmem:[#allocation36_spill] sm:$0xff] %v5531_v18  ;;  %v5643_v18 = vpop.permute.xlu0 %2321 }
 0x4b0   : > { %2690 = vmatmul.f32.vlgmr.msra.gmra.mxu1 %v5301_v62  ;;  %v5534_v46 = vpop.f32.mrf.mxu3 }
 0x4b1   : > { %6346 = vst [vmem:[#allocation24_spill] sm:$0xff] %v5534_v46  ;;  %2820 = vmatmul.f32.vlgmr.msra.gmra.mxu3 %v5301_v62 }
 0x4b2   : > { %v5537_v1 = vpop.f32.mrf.mxu1  ;;  %v5561_v50 = vpop.f32.mrf.mxu2 }
 0x4b3   : > { %6347 = vst [vmem:[#allocation21_spill] sm:$0xff] %v5537_v1 }
 0x4b8   : > { %2693 = vmatmul.f32.gmra.mxu1 %v5323_v37 }
 0x4b9   : > { %2823 = vmatmul.f32.gmra.mxu3 %v5323_v37  ;;  %v5541_v41 = vpop.f32.mrf.mxu3 }
 0x4ba   : > { %6348 = vst [vmem:[#allocation17_spill] sm:$0xff] %v5541_v41  ;;  %v5573_v4 = vpop.f32.mrf.mxu2  ;;  %v5629_v41 = vpop.permute.xlu2 %2341 }
 0x4bb   : > { %v5545_v26 = vpop.f32.mrf.mxu1 }
 0x4bc   : > { %6349 = vst [vmem:[#allocation22_spill] sm:$0xff] %v5545_v26 }
 0x4c0   : > { %2696 = vmatmul.f32.gmra.mxu1 %v5348_v16 }
 0x4c1   : > { %2826 = vmatmul.f32.gmra.mxu3 %v5348_v16 }
 0x4c2   : > { %v5551_v14 = vpop.f32.mrf.mxu3  ;;  %v5583_v17 = vpop.f32.mrf.mxu2 }
 0x4c3   : > { %6350 = vst [vmem:[#allocation18_spill] sm:$0xff] %v5551_v14 }
 0x4c4   : > { %v5553_v62 = vpop.f32.mrf.mxu1 }
 0x4c8   : > { %2699 = vmatmul.f32.gmra.mxu1 %v5373_v33 }
 0x4c9   : > { %2829 = vmatmul.f32.gmra.mxu3 %v5373_v33  ;;  %v5576_v33 = vpop.f32.mrf.mxu0 }
 0x4ca   : > { %v5593_v40 = vpop.f32.mrf.mxu2 }
 0x4cb   : > { %v5559_v37 = vpop.f32.mrf.mxu3 }
 0x4cc   : > { %6351 = vst [vmem:[#allocation15_spill] sm:$0xff] %v5559_v37 }
 0x4cd   : > { %v5563_v31 = vpop.f32.mrf.mxu1 }
 0x4d0   : > { %2702 = vmatmul.f32.gmra.mxu1 %v5394_v36 }
 0x4d1   : > { %2832 = vmatmul.f32.gmra.mxu3 %v5394_v36  ;;  %v2402_v35 = vpop.f32.mrf.mxu0 }
 0x4d2   : > { %v5601_v25 = vpop.f32.mrf.mxu2 }
 0x4d4   : > { %v5569_v16 = vpop.f32.mrf.mxu3 }
 0x4d5   : > { %6352 = vst [vmem:[#allocation11_spill] sm:$0xff] %v5569_v16  ;;  %v5571_v29 = vpop.f32.mrf.mxu1 }
 0x4d8   : > { %2705 = vmatmul.f32.gmra.mxu1 %v5403_v48 }
 0x4d9   : > { %2835 = vmatmul.f32.gmra.mxu3 %v5403_v48  ;;  %v2405_v36 = vpop.f32.mrf.mxu0 }
 0x4da   : > { %v2538_v39 = vpop.f32.mrf.mxu2  ;;  %v2406_v13 = vadd.f32 %v2405_v36, %v5631_v0 }
 0x4dc   : > { %v5579_v57 = vpop.f32.mrf.mxu3 }
 0x4dd   : > { %6353 = vst [vmem:[#allocation12_spill] sm:$0xff] %v5579_v57  ;;  %v5581_v38 = vpop.f32.mrf.mxu1 }
 0x4e0   : > { %2708 = vmatmul.f32.gmra.mxu1 %v5412_v10 }
 0x4e1   : > { %2838 = vmatmul.f32.gmra.mxu3 %v5412_v10  ;;  %v2408_v10 = vpop.f32.mrf.mxu0 }
 0x4e2   : > { %v2541_v5 = vpop.f32.mrf.mxu2  ;;  %v2409_v9 = vadd.f32 %v2408_v10, %v5629_v41 }
 0x4e4   : > { %v5587_v27 = vpop.f32.mrf.mxu3 }
 0x4e5   : > { %6354 = vst [vmem:[#allocation13_spill] sm:$0xff] %v5587_v27  ;;  %v5589_v23 = vpop.f32.mrf.mxu1 }
 0x4e8   : > { %2711 = vmatmul.f32.gmra.mxu1 %v5425_v55 }
 0x4e9   : > { %2841 = vmatmul.f32.gmra.mxu3 %v5425_v55  ;;  %v2411_v63 = vpop.f32.mrf.mxu0 }
 0x4ec   : > { %v5595_v3 = vpop.f32.mrf.mxu3 }
 0x4ed   : > { %v5597_v56 = vpop.f32.mrf.mxu1 }
 0x4f0   : > { %2714 = vmatmul.f32.gmra.mxu1 %v5436_v11 }
 0x4f1   : > { %2844 = vmatmul.f32.gmra.mxu3 %v5436_v11  ;;  %v5619_v15 = vpop.f32.mrf.mxu0 }
 0x4f2   : > { %6355 = vst [vmem:[#allocation29_spill] sm:$0xff] %v5619_v15  ;;  %v5635_v15 = vpop.permute.xlu1 %2331 }
 0x4f3   : > { %v2403_v27 = vadd.f32 %v2402_v35, %v5635_v15  ;;  %v2542_v35 = vadd.f32 %v2541_v5, %v5623_v52 }
 0x4f4   : > { %v5603_v48 = vpop.f32.mrf.mxu3 }
 0x4f5   : > { %v5605_v20 = vpop.f32.mrf.mxu1 }
 0x4f8   : > { %2717 = vmatmul.f32.gmra.mxu1 %v5447_v7 }
 0x4f9   : > { %2847 = vmatmul.f32.gmra.mxu3 %v5447_v7  ;;  %v5633_v54 = vpop.f32.mrf.mxu0 }
 0x4fa   : > { %6357 = vst [vmem:[#allocation41_spill] sm:$0xff] %v5633_v54  ;;  %v5648_v54 = vpop.permute.xlu1 %2316 }
 0x4fc   : > { %v5609_v60 = vpop.f32.mrf.mxu3 }
 0x4fd   : > { %v5611_v55 = vpop.f32.mrf.mxu1 }
 0x500   : > { %2720 = vmatmul.f32.gmra.mxu1 %v5460_v51 }
 0x501   : > { %2850 = vmatmul.f32.gmra.mxu3 %v5460_v51  ;;  %v5627_v51 = vpop.f32.mrf.mxu2  ;;  %v5645_v16 = vpop.f32.mrf.mxu0 }
 0x502   : > { %6356 = vst [vmem:[#allocation30_spill] sm:$0xff] %v5627_v51 }
 0x503   : > { %6359 = vst [vmem:[#allocation39_spill] sm:$0xff] %v5645_v16  ;;  %v5658_v16 = vpop.permute.xlu0 %2306 }
 0x504   : > { %v5615_v11 = vpop.f32.mrf.mxu3 }
 0x505   : > { %v2464_v2 = vpop.f32.mrf.mxu1 }
 0x508   : > { %2723 = vmatmul.f32.gmra.mxu1 %v5473_v44 }
 0x509   : > { %2853 = vmatmul.f32.gmra.mxu3 %v5473_v44  ;;  %v5639_v37 = vpop.f32.mrf.mxu2  ;;  %v5662_v10 = vpop.f32.mrf.mxu0 }
 0x50a   : > { %6358 = vst [vmem:[#allocation42_spill] sm:$0xff] %v5639_v37 }
 0x50c   : > { %v5621_v7 = vpop.f32.mrf.mxu3 }
 0x50d   : > { %v2467_v46 = vpop.f32.mrf.mxu1 }
 0x510   : > { %2726 = vmatmul.f32.gmra.mxu1 %v5486_v28 }
 0x511   : > { %2856 = vmatmul.f32.gmra.mxu3 %v5486_v28  ;;  %v5641_v28 = vpop.permute.xlu2 %2326  ;;  %v5654_v57 = vpop.f32.mrf.mxu2 }
 0x512   : > { %6360 = vst [vmem:[#allocation40_spill] sm:$0xff] %v5654_v57  ;;  %v2400_v36 = vadd.f32 %v5576_v33, %v5641_v28 }
 0x514   : > { %v2597_v14 = vpop.f32.mrf.mxu3 }
 0x515   : > { %v2470_v44 = vpop.f32.mrf.mxu1 }
 0x516   : > { %v2471_v43 = vadd.f32 %v2470_v44, %v2406_v13  ;;  %v2397_v13 = vadd.f32 %v5565_v49, %v5643_v18  ;;  %v2533_v49 = vadd.f32 %v5593_v40, %v5635_v15  ;;  %v5691_v40 = vpop.permute.xlu0 %2291 }
 0x518   : > { %2729 = vmatmul.f32.gmra.mxu1 %v5497_v45  ;;  %v2921_v44 = vmax.f32 %v2471_v43, 0.0 }
 0x519   : > { %2859 = vmatmul.f32.gmra.mxu3 %v5497_v45  ;;  %v2412_v45 = vadd.f32 %v2411_v63, %v5623_v52  ;;  %v5656_v19 = vpop.permute.xlu2 %2311  ;;  %v2468_v63 = vadd.f32 %v2467_v46, %v2403_v27  ;;  %v2394_v27 = vadd.f32 %v5555_v58, %v5648_v54  ;;  %v2530_v58 = vadd.f32 %v5583_v17, %v5641_v28 }
 0x51b   : > { %v2917_v5 = vmax.f32 %v2468_v63, 0.0 }
 0x51c   : > { %v2600_v8 = vpop.f32.mrf.mxu3 }
 0x51d   : > { %v2473_v51 = vpop.f32.mrf.mxu1 }
 0x51e   : > { %v2474_v30 = vadd.f32 %v2473_v51, %v2409_v9  ;;  %v2539_v51 = vadd.f32 %v2538_v39, %v5629_v41  ;;  %v2462_v39 = vadd.f32 %v5611_v55, %v2397_v13  ;;  %v2598_v55 = vadd.f32 %v2597_v14, %v2533_v49 }
 0x51f   : > { %v2595_v13 = vadd.f32 %v5621_v7, %v2530_v58  ;;  %v6364_v58 = vld [vmem:[#allocation35_spill] sm:$0xff] }
 0x520   : > { %2732 = vmatmul.f32.gmra.mxu1 %v5508_v59  ;;  %v2925_v9 = vmax.f32 %v2474_v30, 0.0 }
 0x521   : > { %2862 = vmatmul.f32.gmra.mxu3 %v5508_v59 }
 0x524   : > { %v2603_v1 = vpop.f32.mrf.mxu3 }
 0x525   : > { %v2476_v37 = vpop.f32.mrf.mxu1  ;;  %v2604_v33 = vadd.f32 %v2603_v1, %v2539_v51  ;;  %v2459_v1 = vadd.f32 %v5605_v20, %v2394_v27  ;;  %v2909_v51 = vmax.f32 %v2462_v39, 0.0  ;;  %v2527_v20 = vadd.f32 %v5573_v4, %v5643_v18 }
 0x526   : > { %v2477_v26 = vadd.f32 %v2476_v37, %v2412_v45  ;;  %v5667_v37 = vpop.permute.xlu1 %2301  ;;  %v2524_v4 = vadd.f32 %v5561_v50, %v5648_v54  ;;  %v2914_v39 = vmax.f32 %v2595_v13, 0.0  ;;  %v2379_v50 = vadd.f32 %v5479_v32, %v5691_v40 }
 0x527   : > { %v2926_v63 = vmax.f32 %v2604_v33, 0.0  ;;  %v2385_v14 = vadd.f32 %v5510_v53, %v5667_v37 }
 0x528   : > { %v2929_v59 = vmax.f32 %v2477_v26, 0.0  ;;  %2735 = vmatmul.f32.gmra.mxu1 %v5521_v24  ;;  %v2465_v26 = vadd.f32 %v2464_v2, %v2400_v36  ;;  %v2589_v27 = vadd.f32 %v5609_v60, %v2524_v4  ;;  %v2444_v60 = vadd.f32 %v5563_v31, %v2379_v50  ;;  %v6373_v50 = vld [vmem:[#allocation11_spill] sm:$0xff] }
 0x529   : > { %2865 = vmatmul.f32.gmra.mxu3 %v5521_v24  ;;  %v2536_v24 = vadd.f32 %v5601_v25, %v5631_v0  ;;  %v5684_v25 = vpop.f32.mrf.mxu2 }
 0x52a   : > { %2989 = vmatpush.msrb.mxu0 %v2929_v59  ;;  %v2391_v59 = vadd.f32 %v5543_v22, %v5656_v19  ;;  %v2913_v36 = vmax.f32 %v2465_v26, 0.0  ;;  %v2885_v13 = vmax.f32 %v2444_v60, 0.0 }
 0x52b   : > { %v2601_v43 = vadd.f32 %v2600_v8, %v2536_v24  ;;  %v2388_v8 = vadd.f32 %v5524_v12, %v5658_v16  ;;  %v2918_v24 = vmax.f32 %v2598_v55, 0.0 }
 0x52c   : > { %v2606_v45 = vpop.f32.mrf.mxu3  ;;  %2990 = vmatpush.msrb.mxu0 %v2925_v9  ;;  %v5687_v9 = vpop.permute.xlu2 %2296  ;;  %v2456_v22 = vadd.f32 %v5597_v56, %v2391_v59  ;;  %v2906_v59 = vmax.f32 %v2589_v27, 0.0  ;;  %v6372_v27 = vld [vmem:[#allocation33_spill] sm:$0xff] }
 0x52d   : > { %v2607_v46 = vadd.f32 %v2606_v45, %v2542_v35  ;;  %v5675_v30 = vpop.f32.mrf.mxu1  ;;  %v5698_v35 = vpop.f32.mrf.mxu0  ;;  %v2922_v17 = vmax.f32 %v2601_v43, 0.0  ;;  %v2453_v26 = vadd.f32 %v5589_v23, %v2388_v8  ;;  %v2592_v45 = vadd.f32 %v5615_v11, %v2527_v20  ;;  %v6367_v20 = vld [vmem:[#allocation22_spill] sm:$0xff] }
 0x52e   : > { %6361 = vst [vmem:[#allocation14_spill] sm:$0xff] %v5675_v30  ;;  %2991 = vmatpush.msrb.mxu0 %v2921_v44  ;;  %v2905_v44 = vmax.f32 %v2459_v1, 0.0  ;;  %v5706_v56 = vpop.permute.xlu1 %2286  ;;  %v2382_v53 = vadd.f32 %v5492_v42, %v5687_v9  ;;  %v2450_v23 = vadd.f32 %v5581_v38, %v2385_v14  ;;  %v2901_v33 = vmax.f32 %v2456_v22, 0.0  ;;  %v6368_v14 = vld [vmem:[#allocation34_spill] sm:$0xff] }
 0x52f   : > { %v2930_v2 = vmax.f32 %v2607_v46, 0.0  ;;  %v2521_v46 = vadd.f32 %v5549_v61, %v5656_v19  ;;  %v2518_v42 = vadd.f32 %v5528_v34, %v5658_v16  ;;  %v2910_v49 = vmax.f32 %v2592_v45, 0.0 }
 0x530   : > { %2992 = vmatpush.msrb.mxu0 %v2917_v5  ;;  %v2447_v11 = vadd.f32 %v5571_v29, %v2382_v53  ;;  %v2897_v5 = vmax.f32 %v2453_v26, 0.0  ;;  %v2376_v61 = vadd.f32 %v5463_v21, %v5706_v56  ;;  %v2515_v29 = vadd.f32 %v5512_v6, %v5667_v37  ;;  %v6365_v6 = vld [vmem:[#allocation13_spill] sm:$0xff] }
 0x531   : > { %3030 = vmatpush.msrb.mxu1 %v2930_v2  ;;  %v2586_v38 = vadd.f32 %v5603_v48, %v2521_v46  ;;  %v5728_v43 = vpop.f32.mrf.mxu2  ;;  %v2893_v2 = vmax.f32 %v2450_v23, 0.0  ;;  %v2583_v34 = vadd.f32 %v5595_v3, %v2518_v42  ;;  %v5735_v48 = vpop.permute.xlu0 %2276  ;;  %v2512_v55 = vadd.f32 %v6364_v58, %v5687_v9  ;;  %v6371_v23 = vld [vmem:[#allocation21_spill] sm:$0xff]  ;;  %v6374_v42 = vld [vmem:[#allocation36_spill] sm:$0xff] }
 0x532   : > { %2993 = vmatpush.msrb.mxu0 %v2913_v36  ;;  %v2441_v31 = vadd.f32 %v5553_v62, %v2376_v61  ;;  %v2889_v1 = vmax.f32 %v2447_v11, 0.0  ;;  %v2580_v3 = vadd.f32 %v6365_v6, %v2515_v29  ;;  %v2509_v26 = vadd.f32 %v6368_v14, %v5691_v40  ;;  %v6375_v61 = vld [vmem:[#allocation32_spill] sm:$0xff] }
 0x533   : > { %3031 = vmatpush.msrb.mxu1 %v2926_v63  ;;  %v2902_v8 = vmax.f32 %v2586_v38, 0.0  ;;  %v2898_v45 = vmax.f32 %v2583_v34, 0.0 }
 0x534   : > { %v5704_v12 = vpop.f32.mrf.mxu3  ;;  %2994 = vmatpush.msrb.mxu0 %v2909_v51  ;;  %v5730_v32 = vpop.permute.xlu2 %2281  ;;  %v6366_v51 = vld [vmem:[#allocation28_spill] sm:$0xff]  ;;  %v2881_v46 = vmax.f32 %v2441_v31, 0.0  ;;  %v2574_v11 = vadd.f32 %v6373_v50, %v2509_v26 }
 0x535   : > { %6362 = vst [vmem:[#allocation37_spill] sm:$0xff] %v5704_v12  ;;  %3032 = vmatpush.msrb.mxu1 %v2922_v17  ;;  %v5711_v7 = vpop.f32.mrf.mxu1  ;;  %v2373_v21 = vadd.f32 %v5449_v47, %v5730_v32  ;;  %v5744_v63 = vpop.f32.mrf.mxu0  ;;  %v2370_v47 = vadd.f32 %v6366_v51, %v5735_v48  ;;  %v2503_v60 = vadd.f32 %v6375_v61, %v5730_v32 }
 0x536   : > { %2995 = vmatpush.msrb.mxu0 %v2905_v44  ;;  %v5752_v17 = vpop.permute.xlu1 %2271  ;;  %v6369_v44 = vld [vmem:[#allocation12_spill] sm:$0xff] }
 0x537   : > { %3033 = vmatpush.msrb.mxu1 %v2918_v24  ;;  %v2438_v62 = vadd.f32 %v6367_v20, %v2373_v21  ;;  %v2577_v4 = vadd.f32 %v6369_v44, %v2512_v55  ;;  %v6370_v24 = vld [vmem:[#allocation26_spill] sm:$0xff]  ;;  %v6381_v20 = vld [vmem:[#allocation27_spill] sm:$0xff] }
 0x538   : > { %2996 = vmatpush.msrb.mxu0 %v2901_v33  ;;  %v2367_v53 = vadd.f32 %v6370_v24, %v5752_v17  ;;  %v2435_v33 = vadd.f32 %v6371_v23, %v2370_v47  ;;  %v6379_v55 = vld [vmem:[#allocation18_spill] sm:$0xff]  ;;  %v5777_v47 = vld [vmem:[%s6116_s11] sm:$0xff]  ;;  %v2639_v23 = vadd.f32 %v5698_v35, %v5691_v40  ;;  %v2769_v35 = vadd.f32 %v5728_v43, %v5691_v40 }
 0x539   : > { %3034 = vmatpush.msrb.mxu1 %v2914_v39  ;;  %v2506_v39 = vadd.f32 %v6372_v27, %v5706_v56  ;;  %v2890_v34 = vmax.f32 %v2577_v4, 0.0  ;;  %v2771_v21 = vpop.f32.mrf.mxu2  ;;  %v2568_v6 = vadd.f32 %v6379_v55, %v2503_v60  ;;  %6380 = vst [vmem:[#allocation19_spill] sm:$0xff] %v5777_v47  ;;  %v6383_v4 = vld [vmem:[#allocation24_spill] sm:$0xff]  ;;  %v5821_v55 = vld [vmem:[%s6116_s11 + $0x18] sm:$0xff] }
 0x53a   : > { %2997 = vmatpush.msrb.mxu0 %v2897_v5  ;;  %v2894_v5 = vmax.f32 %v2580_v3, 0.0  ;;  %v2432_v38 = vadd.f32 %v6374_v42, %v2367_v53  ;;  %v2886_v3 = vmax.f32 %v2574_v11, 0.0  ;;  %v5793_v11 = vld [vmem:[%s6116_s11 + $0x8] sm:$0xff]  ;;  %v2642_v42 = vadd.f32 %v5744_v63, %v5687_v9  ;;  %6389 = vst [vmem:[#allocation44_spill] sm:$0xff] %v5821_v55 }
 0x53b   : > { %3035 = vmatpush.msrb.mxu1 %v2910_v49  ;;  %v2877_v49 = vmax.f32 %v2438_v62, 0.0  ;;  %v2497_v62 = vadd.f32 %v6381_v20, %v5752_v17  ;;  %v2878_v24 = vmax.f32 %v2568_v6, 0.0  ;;  %6385 = vst [vmem:[#allocation10_spill] sm:$0xff] %v5793_v11  ;;  %v2772_v40 = vadd.f32 %v2771_v21, %v5687_v9 }
 0x53c   : > { %v5740_v36 = vpop.f32.mrf.mxu3  ;;  %2998 = vmatpush.msrb.mxu0 %v2893_v2  ;;  %v6376_v2 = vld [vmem:[#allocation15_spill] sm:$0xff]  ;;  %v2869_v51 = vmax.f32 %v2432_v38, 0.0 }
 0x53d   : > { %6363 = vst [vmem:[#allocation38_spill] sm:$0xff] %v5740_v36  ;;  %3036 = vmatpush.msrb.mxu1 %v2906_v59  ;;  %v5747_v22 = vpop.f32.mrf.mxu1  ;;  %v2571_v29 = vadd.f32 %v6376_v2, %v2506_v39  ;;  %v2873_v59 = vmax.f32 %v2435_v33, 0.0  ;;  %v2644_v44 = vpop.f32.mrf.mxu0  ;;  %v5808_v2 = vld [vmem:[%s6116_s11 + $0x10] sm:$0xff] }
 0x53e   : > { %2999 = vmatpush.msrb.mxu0 %v2889_v1  ;;  %v6378_v1 = vld [vmem:[#allocation31_spill] sm:$0xff]  ;;  %6387 = vst [vmem:[#allocation9_spill] sm:$0xff] %v5808_v2  ;;  %v2645_v63 = vadd.f32 %v2644_v44, %v5667_v37 }
 0x53f   : > { %3037 = vmatpush.msrb.mxu1 %v2902_v8  ;;  %v2500_v58 = vadd.f32 %v6378_v1, %v5735_v48  ;;  %v2882_v26 = vmax.f32 %v2571_v29, 0.0 }
 0x540   : > { %3000 = vmatpush.msrb.mxu0 %v2885_v13  ;;  %v6382_v13 = vld [vmem:[#allocation17_spill] sm:$0xff] }
 0x541   : > { %3038 = vmatpush.msrb.mxu1 %v2898_v45  ;;  %v2565_v14 = vadd.f32 %v6382_v13, %v2500_v58  ;;  %v2562_v45 = vadd.f32 %v6383_v4, %v2497_v62  ;;  %v2774_v39 = vpop.f32.mrf.mxu2 }
 0x542   : > { %3001 = vmatpush.msrb.mxu0 %v2881_v46  ;;  %v2775_v9 = vadd.f32 %v2774_v39, %v5667_v37 }
 0x543   : > { %3039 = vmatpush.msrb.mxu1 %v2894_v5  ;;  %v2874_v53 = vmax.f32 %v2565_v14, 0.0  ;;  %v2870_v46 = vmax.f32 %v2562_v45, 0.0  ;;  %v5836_v14 = vld [vmem:[%s6116_s11 + $0x20] sm:$0xff] }
 0x544   : > { %v5767_v31 = vpop.f32.mrf.mxu3  ;;  %3002 = vmatpush.msrb.mxu0 %v2877_v49  ;;  %6390 = vst [vmem:[#allocation16_spill] sm:$0xff] %v5836_v14 }
 0x545   : > { %6377 = vst [vmem:[#allocation20_spill] sm:$0xff] %v5767_v31  ;;  %3040 = vmatpush.msrb.mxu1 %v2890_v34  ;;  %v5772_v8 = vpop.f32.mrf.mxu1  ;;  %v2647_v5 = vpop.f32.mrf.mxu0 }
 0x546   : > { %3003 = vmatpush.msrb.mxu0 %v2873_v59  ;;  %v2648_v21 = vadd.f32 %v2647_v5, %v5658_v16 }
 0x547   : > { %3041 = vmatpush.msrb.mxu1 %v2886_v3 }
 0x548   : > { %3004 = vmatpush.msrb.mxu0 %v2869_v51 }
 0x549   : > { %3042 = vmatpush.msrb.mxu1 %v2882_v26  ;;  %3005 = vmatmul.f32.vlgmr.msrb.gmra.mxu0 %v5777_v47  ;;  %v2777_v29 = vpop.f32.mrf.mxu2 }
 0x54a   : > { %v2778_v37 = vadd.f32 %v2777_v29, %v5658_v16 }
 0x54b   : > { %3043 = vmatpush.msrb.mxu1 %v2878_v24 }
 0x54c   : > { %v5786_v33 = vpop.f32.mrf.mxu3 }
 0x54d   : > { %6384 = vst [vmem:[#allocation23_spill] sm:$0xff] %v5786_v33  ;;  %3044 = vmatpush.msrb.mxu1 %v2874_v53  ;;  %v2703_v27 = vpop.f32.mrf.mxu1  ;;  %v2650_v43 = vpop.f32.mrf.mxu0 }
 0x54e   : > { %v5788_v50 = vadd.f32 %v2703_v27, %v2639_v23  ;;  %v2651_v26 = vadd.f32 %v2650_v43, %v5656_v19  ;;  %v5851_v23 = vld [vmem:[%s6116_s11 + $0x28] sm:$0xff] }
 0x54f   : > { %3045 = vmatpush.msrb.mxu1 %v2870_v46  ;;  %6391 = vst [vmem:[#allocation35_spill] sm:$0xff] %v5851_v23 }
 0x550   : > { %3046 = vmatmul.f32.vlgmr.msrb.gmra.mxu1 %v5777_v47 }
 0x551   : > { %3008 = vmatmul.f32.gmra.mxu0 %v5793_v11  ;;  %v2780_v6 = vpop.f32.mrf.mxu2 }
 0x552   : > { %v2781_v16 = vadd.f32 %v2780_v6, %v5656_v19  ;;  %v5872_v19 = vld [vmem:[%s6116_s11 + $0x38] sm:$0xff] }
 0x553   : > { %6393 = vst [vmem:[#allocation28_spill] sm:$0xff] %v5872_v19 }
 0x554   : > { %v2833_v38 = vpop.f32.mrf.mxu3 }
 0x555   : > { %v5801_v49 = vadd.f32 %v2833_v38, %v2769_v35  ;;  %v2706_v61 = vpop.f32.mrf.mxu1  ;;  %v5827_v51 = vpop.f32.mrf.mxu0 }
 0x556   : > { %v5803_v60 = vadd.f32 %v2706_v61, %v2642_v42  ;;  %v5863_v42 = vld [vmem:[%s6116_s11 + $0x30] sm:$0xff] }
 0x557   : > { %6386 = vst [vmem:[#allocation25_spill] sm:$0xff] %v5801_v49 }
 0x558   : > { %3049 = vmatmul.f32.gmra.mxu1 %v5793_v11  ;;  %6392 = vst [vmem:[#allocation13_spill] sm:$0xff] %v5863_v42 }
 0x559   : > { %3011 = vmatmul.f32.gmra.mxu0 %v5808_v2  ;;  %v5842_v44 = vpop.f32.mrf.mxu2 }
 0x55c   : > { %v2836_v34 = vpop.f32.mrf.mxu3 }
 0x55d   : > { %v5814_v59 = vadd.f32 %v2836_v34, %v2772_v40  ;;  %v2709_v1 = vpop.f32.mrf.mxu1  ;;  %v2656_v46 = vpop.f32.mrf.mxu0 }
 0x55e   : > { %v5816_v58 = vadd.f32 %v2709_v1, %v2645_v63  ;;  %v2657_v57 = vadd.f32 %v2656_v46, %v5643_v18 }
 0x55f   : > { %6388 = vst [vmem:[#allocation43_spill] sm:$0xff] %v5814_v59 }
 0x560   : > { %3052 = vmatmul.f32.gmra.mxu1 %v5808_v2 }
 0x561   : > { %3014 = vmatmul.f32.gmra.mxu0 %v5821_v55  ;;  %v5858_v35 = vpop.f32.mrf.mxu2 }
 0x564   : > { %v2839_v3 = vpop.f32.mrf.mxu3 }
 0x565   : > { %v5829_v20 = vadd.f32 %v2839_v3, %v2775_v9  ;;  %v2712_v62 = vpop.f32.mrf.mxu1  ;;  %v2659_v38 = vpop.f32.mrf.mxu0 }
 0x566   : > { %v5831_v13 = vadd.f32 %v2712_v62, %v2648_v21  ;;  %v2660_v31 = vadd.f32 %v2659_v38, %v5641_v28 }
 0x568   : > { %3055 = vmatmul.f32.gmra.mxu1 %v5821_v55 }
 0x569   : > { %3017 = vmatmul.f32.gmra.mxu0 %v5836_v14  ;;  %v2789_v40 = vpop.f32.mrf.mxu2 }
 0x56c   : > { %v2842_v4 = vpop.f32.mrf.mxu3 }
 0x56d   : > { %v5844_v45 = vadd.f32 %v2842_v4, %v2778_v37  ;;  %v2715_v24 = vpop.f32.mrf.mxu1  ;;  %v2662_v43 = vpop.f32.mrf.mxu0 }
 0x56e   : > { %v5846_v53 = vadd.f32 %v2715_v24, %v2651_v26  ;;  %v2663_v47 = vadd.f32 %v2662_v43, %v5635_v15 }
 0x570   : > { %3058 = vmatmul.f32.gmra.mxu1 %v5836_v14 }
 0x571   : > { %3020 = vmatmul.f32.gmra.mxu0 %v5851_v23  ;;  %v2792_v1 = vpop.f32.mrf.mxu2 }
 0x574   : > { %v2845_v27 = vpop.f32.mrf.mxu3 }
 0x575   : > { %v5856_v39 = vadd.f32 %v2845_v27, %v2781_v16  ;;  %v2718_v5 = vpop.f32.mrf.mxu1  ;;  %v2665_v9 = vpop.f32.mrf.mxu0 }
 0x578   : > { %3061 = vmatmul.f32.gmra.mxu1 %v5851_v23 }
 0x579   : > { %3023 = vmatmul.f32.gmra.mxu0 %v5863_v42  ;;  %v2795_v3 = vpop.f32.mrf.mxu2 }
 0x57c   : > { %v5867_v61 = vpop.f32.mrf.mxu3 }
 0x57d   : > { %v2721_v29 = vpop.f32.mrf.mxu1  ;;  %v2668_v26 = vpop.f32.mrf.mxu0 }
 0x580   : > { %3064 = vmatmul.f32.gmra.mxu1 %v5863_v42  ;;  %v2669_v42 = vadd.f32 %v2668_v26, %v5629_v41 }
 0x581   : > { %3026 = vmatmul.f32.gmra.mxu0 %v5872_v19  ;;  %v2798_v16 = vpop.f32.mrf.mxu2 }
 0x582   : > { %v2799_v26 = vadd.f32 %v2798_v16, %v5629_v41  ;;  %v2793_v41 = vadd.f32 %v2792_v1, %v5635_v15  ;;  %v2784_v15 = vadd.f32 %v5842_v44, %v5648_v54 }
 0x584   : > { %v5876_v63 = vpop.f32.mrf.mxu3  ;;  %v2849_v38 = vadd.f32 %v5867_v61, %v2784_v15  ;;  %v6410_v15 = vld [vmem:[#allocation44_spill] sm:$0xff] }
 0x585   : > { %v2724_v34 = vpop.f32.mrf.mxu1  ;;  %v2671_v27 = vpop.f32.mrf.mxu0 }
 0x586   : > { %v2672_v23 = vadd.f32 %v2671_v27, %v5623_v52  ;;  %v2725_v30 = vadd.f32 %v2724_v34, %v2660_v31  ;;  %v2908_v44 = vmax.f32 %v2849_v38, 0.0  ;;  %v6395_v34 = vld [vmem:[#allocation41_spill] sm:$0xff] }
 0x587   : > { %v2630_v1 = vadd.f32 %v6395_v34, %v5735_v48 }
 0x588   : > { %3067 = vmatmul.f32.gmra.mxu1 %v5872_v19  ;;  %v2666_v19 = vadd.f32 %v2665_v9, %v5631_v0  ;;  %v2915_v46 = vmax.f32 %v2725_v30, 0.0 }
 0x589   : > { %v2801_v12 = vpop.f32.mrf.mxu2 }
 0x58a   : > { %v2802_v27 = vadd.f32 %v2801_v12, %v5623_v52 }
 0x58c   : > { %v2854_v6 = vpop.f32.mrf.mxu3 }
 0x58d   : > { %v2727_v21 = vpop.f32.mrf.mxu1 }
 0x58e   : > { %v2728_v59 = vadd.f32 %v2727_v21, %v2663_v47  ;;  %v2722_v47 = vadd.f32 %v2721_v29, %v2657_v57  ;;  %v6396_v21 = vld [vmem:[#allocation29_spill] sm:$0xff] }
 0x594   : > { %v2857_v62 = vpop.f32.mrf.mxu3 }
 0x595   : > { %v2730_v37 = vpop.f32.mrf.mxu1  ;;  %v2858_v31 = vadd.f32 %v2857_v62, %v2793_v41  ;;  %v2896_v62 = vmax.f32 %v5829_v20, 0.0 }
 0x596   : > { %v2731_v36 = vadd.f32 %v2730_v37, %v2666_v19 }
 0x598   : > { %v2923_v9 = vmax.f32 %v2731_v36, 0.0  ;;  %v2790_v36 = vadd.f32 %v2789_v40, %v5641_v28  ;;  %v2903_v28 = vmax.f32 %v5846_v53, 0.0  ;;  %v2636_v40 = vadd.f32 %v5662_v10, %v5706_v56  ;;  %v6394_v53 = vld [vmem:[#allocation39_spill] sm:$0xff] }
 0x599   : > { %v2633_v43 = vadd.f32 %v6394_v53, %v5730_v32  ;;  %v6413_v53 = vld [vmem:[#allocation13_spill] sm:$0xff] }
 0x59a   : > { %v2855_v57 = vadd.f32 %v2854_v6, %v2790_v36  ;;  %v2701_v61 = vadd.f32 %v5772_v8, %v2636_v40  ;;  %v2900_v6 = vmax.f32 %v5844_v45, 0.0  ;;  %v2627_v8 = vadd.f32 %v6396_v21, %v5752_v17  ;;  %v6398_v45 = vld [vmem:[#allocation40_spill] sm:$0xff] }
 0x59b   : > { %v2698_v10 = vadd.f32 %v5747_v22, %v2633_v43  ;;  %v6397_v22 = vld [vmem:[#allocation14_spill] sm:$0xff]  ;;  %v5955_v43 = vpop.permute.xlu1 %2976  ;;  %v6414_v21 = vld [vmem:[#allocation28_spill] sm:$0xff] }
 0x59c   : > { %v2860_v4 = vpop.f32.mrf.mxu3  ;;  %v2916_v29 = vmax.f32 %v2855_v57, 0.0  ;;  %v2692_v37 = vadd.f32 %v6397_v22, %v2627_v8  ;;  %v6409_v57 = vld [vmem:[#allocation9_spill] sm:$0xff] }
 0x59d   : > { %v2733_v24 = vpop.f32.mrf.mxu1 }
 0x59e   : > { %v2734_v2 = vadd.f32 %v2733_v24, %v2669_v42  ;;  %v6399_v24 = vld [vmem:[#allocation23_spill] sm:$0xff] }
 0x5a0   : > { %v2927_v33 = vmax.f32 %v2734_v2, 0.0  ;;  %v2919_v2 = vmax.f32 %v2728_v59, 0.0 }
 0x5a3   : > { %v5968_v22 = vpop.permute.xlu1 %2961 }
 0x5a4   : > { %v2863_v14 = vpop.f32.mrf.mxu3 }
 0x5a5   : > { %v2736_v55 = vpop.f32.mrf.mxu1 }
 0x5a6   : > { %v2737_v11 = vadd.f32 %v2736_v55, %v2672_v23  ;;  %v2796_v55 = vadd.f32 %v2795_v3, %v5631_v0  ;;  %v2864_v23 = vadd.f32 %v2863_v14, %v2799_v26  ;;  %v2911_v0 = vmax.f32 %v2722_v47, 0.0  ;;  %v6400_v26 = vld [vmem:[#allocation43_spill] sm:$0xff]  ;;  %v6405_v47 = vld [vmem:[#allocation38_spill] sm:$0xff] }
 0x5a7   : > { %v2883_v3 = vmax.f32 %v2701_v61, 0.0 }
 0x5a8   : > { %v2931_v49 = vmax.f32 %v2737_v11, 0.0  ;;  %v2654_v11 = vadd.f32 %v5827_v51, %v5648_v54  ;;  %v2787_v51 = vadd.f32 %v5858_v35, %v5643_v18  ;;  %v2899_v18 = vmax.f32 %v5831_v13, 0.0 }
 0x5a9   : > { %v2895_v54 = vmax.f32 %v5816_v58, 0.0  ;;  %v2904_v13 = vmax.f32 %v5856_v39, 0.0  ;;  %v2887_v58 = vmax.f32 %v5788_v50, 0.0  ;;  %v2766_v39 = vadd.f32 %v5684_v25, %v5706_v56  ;;  %v6402_v56 = vld [vmem:[#allocation20_spill] sm:$0xff] }
 0x5aa   : > { %3071 = vmatpush.msrb.mxu2 %v2931_v49  ;;  %v2861_v49 = vadd.f32 %v2860_v4, %v2796_v55  ;;  %v2719_v12 = vadd.f32 %v2718_v5, %v2654_v11  ;;  %v2852_v30 = vadd.f32 %v5876_v63, %v2787_v51  ;;  %v2920_v5 = vmax.f32 %v2858_v31, 0.0 }
 0x5ab   : > { %v2891_v63 = vmax.f32 %v5803_v60, 0.0  ;;  %v2695_v60 = vadd.f32 %v5711_v7, %v2630_v1  ;;  %v2879_v50 = vmax.f32 %v2698_v10, 0.0  ;;  %v2763_v4 = vadd.f32 %v6398_v45, %v5730_v32  ;;  %v6404_v32 = vld [vmem:[#allocation30_spill] sm:$0xff] }
 0x5ac   : > { %v2866_v42 = vpop.f32.mrf.mxu3  ;;  %3072 = vmatpush.msrb.mxu2 %v2927_v33  ;;  %v2928_v33 = vmax.f32 %v2864_v23, 0.0  ;;  %v2924_v59 = vmax.f32 %v2861_v49, 0.0  ;;  %v2907_v14 = vmax.f32 %v2719_v12, 0.0  ;;  %v2912_v35 = vmax.f32 %v2852_v30, 0.0  ;;  %v6406_v49 = vld [vmem:[#allocation37_spill] sm:$0xff]  ;;  %v6407_v12 = vld [vmem:[#allocation19_spill] sm:$0xff] }
 0x5ad   : > { %v2867_v19 = vadd.f32 %v2866_v42, %v2802_v27  ;;  %v2831_v16 = vadd.f32 %v6399_v24, %v2766_v39  ;;  %v2892_v27 = vmax.f32 %v6400_v26, 0.0  ;;  %v2875_v7 = vmax.f32 %v2695_v60, 0.0  ;;  %v6403_v42 = vld [vmem:[#allocation25_spill] sm:$0xff] }
 0x5ae   : > { %3073 = vmatpush.msrb.mxu2 %v2923_v9  ;;  %v6401_v9 = vld [vmem:[#allocation42_spill] sm:$0xff]  ;;  %v2828_v20 = vadd.f32 %v6402_v56, %v2763_v4  ;;  %v2888_v55 = vmax.f32 %v6403_v42, 0.0  ;;  %v2871_v23 = vmax.f32 %v2692_v37, 0.0  ;;  %v2757_v11 = vadd.f32 %v6404_v32, %v5752_v17 }
 0x5af   : > { %v2932_v52 = vmax.f32 %v2867_v19, 0.0  ;;  %v2760_v25 = vadd.f32 %v6401_v9, %v5735_v48  ;;  %v2884_v41 = vmax.f32 %v2831_v16, 0.0  ;;  %v6408_v17 = vld [vmem:[#allocation10_spill] sm:$0xff] }
 0x5b0   : > { %3074 = vmatpush.msrb.mxu2 %v2919_v2  ;;  %v2880_v48 = vmax.f32 %v2828_v20, 0.0 }
 0x5b1   : > { %3112 = vmatpush.msrb.mxu3 %v2932_v52  ;;  %v2825_v2 = vadd.f32 %v6405_v47, %v2760_v25  ;;  %v2822_v52 = vadd.f32 %v6406_v49, %v2757_v11 }
 0x5b2   : > { %3075 = vmatpush.msrb.mxu2 %v2915_v46 }
 0x5b3   : > { %3113 = vmatpush.msrb.mxu3 %v2928_v33  ;;  %v2876_v46 = vmax.f32 %v2825_v2, 0.0  ;;  %v2872_v36 = vmax.f32 %v2822_v52, 0.0 }
 0x5b4   : > { %3076 = vmatpush.msrb.mxu2 %v2911_v0 }
 0x5b5   : > { %3114 = vmatpush.msrb.mxu3 %v2924_v59 }
 0x5b6   : > { %3077 = vmatpush.msrb.mxu2 %v2907_v14 }
 0x5b7   : > { %3115 = vmatpush.msrb.mxu3 %v2920_v5 }
 0x5b8   : > { %3078 = vmatpush.msrb.mxu2 %v2903_v28  ;;  %v6411_v28 = vld [vmem:[#allocation16_spill] sm:$0xff] }
 0x5b9   : > { %3116 = vmatpush.msrb.mxu3 %v2916_v29 }
 0x5ba   : > { %3079 = vmatpush.msrb.mxu2 %v2899_v18  ;;  %v6412_v18 = vld [vmem:[#allocation35_spill] sm:$0xff] }
 0x5bb   : > { %3117 = vmatpush.msrb.mxu3 %v2912_v35  ;;  %v5949_v35 = vpop.permute.xlu2 %2986 }
 0x5bc   : > { %3080 = vmatpush.msrb.mxu2 %v2895_v54  ;;  %v5951_v54 = vpop.permute.xlu0 %2981 }
 0x5bd   : > { %3118 = vmatpush.msrb.mxu3 %v2908_v44 }
 0x5be   : > { %3081 = vmatpush.msrb.mxu2 %v2891_v63 }
 0x5bf   : > { %3119 = vmatpush.msrb.mxu3 %v2904_v13 }
 0x5c0   : > { %3082 = vmatpush.msrb.mxu2 %v2887_v58 }
 0x5c1   : > { %3120 = vmatpush.msrb.mxu3 %v2900_v6 }
 0x5c2   : > { %3083 = vmatpush.msrb.mxu2 %v2883_v3 }
 0x5c3   : > { %3121 = vmatpush.msrb.mxu3 %v2896_v62  ;;  %v5957_v63 = vpop.permute.xlu2 %2971 }
 0x5c4   : > { %3084 = vmatpush.msrb.mxu2 %v2879_v50  ;;  %v5961_v10 = vpop.permute.xlu0 %2966 }
 0x5c5   : > { %3122 = vmatpush.msrb.mxu3 %v2892_v27 }
 0x5c6   : > { %v5928_v19 = vpop.f32.mrf.mxu0  ;;  %3085 = vmatpush.msrb.mxu2 %v2875_v7 }
 0x5c7   : > { %3123 = vmatpush.msrb.mxu3 %v2888_v55 }
 0x5c8   : > { %3086 = vmatpush.msrb.mxu2 %v2871_v23 }
 0x5c9   : > { %3124 = vmatpush.msrb.mxu3 %v2884_v41  ;;  %3087 = vmatmul.f32.vlgmr.msrb.gmra.mxu2 %v6407_v12  ;;  %v5988_v41 = vld [vmem:[%s6118_s13] sm:$0xff] }
 0x5cb   : > { %3125 = vmatpush.msrb.mxu3 %v2880_v48  ;;  %v5973_v24 = vpop.permute.xlu2 %2956 }
 0x5cc   : > { %v5978_v9 = vpop.permute.xlu0 %2951 }
 0x5cd   : > { %v5935_v31 = vpop.f32.mrf.mxu1  ;;  %3126 = vmatpush.msrb.mxu3 %v2876_v46  ;;  %v3007_v20 = vadd.f32 %v5928_v19, %v5978_v9 }
 0x5ce   : > { %v3009_v33 = vpop.f32.mrf.mxu0  ;;  %v3048_v52 = vadd.f32 %v5935_v31, %v5978_v9  ;;  %v6008_v31 = vld [vmem:[%s6118_s13 + $0x10] sm:$0xff] }
 0x5cf   : > { %3127 = vmatpush.msrb.mxu3 %v2872_v36  ;;  %v3010_v27 = vadd.f32 %v3009_v33, %v5973_v24  ;;  %v3153_v2 = vmax.f32 %v3007_v20, 0.0  ;;  %v5999_v36 = vld [vmem:[%s6118_s13 + $0x8] sm:$0xff]  ;;  %v6017_v33 = vld [vmem:[%s6118_s13 + $0x18] sm:$0xff] }
 0x5d0   : > { %3128 = vmatmul.f32.vlgmr.msrb.gmra.mxu3 %v6407_v12  ;;  %v3154_v46 = vmax.f32 %v3048_v52, 0.0 }
 0x5d1   : > { %3090 = vmatmul.f32.gmra.mxu2 %v6408_v17  ;;  %v3157_v32 = vmax.f32 %v3010_v27, 0.0 }
 0x5d5   : > { %v5939_v0 = vpop.f32.mrf.mxu1 }
 0x5d6   : > { %v3012_v51 = vpop.f32.mrf.mxu0  ;;  %v3051_v19 = vadd.f32 %v5939_v0, %v5973_v24 }
 0x5d7   : > { %v3013_v45 = vadd.f32 %v3012_v51, %v5968_v22 }
 0x5d8   : > { %3131 = vmatmul.f32.gmra.mxu3 %v6408_v17  ;;  %v3158_v12 = vmax.f32 %v3051_v19, 0.0 }
 0x5d9   : > { %3093 = vmatmul.f32.gmra.mxu2 %v6409_v57  ;;  %v3161_v42 = vmax.f32 %v3013_v45, 0.0 }
 0x5dd   : > { %v3053_v59 = vpop.f32.mrf.mxu1 }
 0x5de   : > { %v3015_v14 = vpop.f32.mrf.mxu0  ;;  %v3054_v11 = vadd.f32 %v3053_v59, %v5968_v22 }
 0x5df   : > { %v3016_v3 = vadd.f32 %v3015_v14, %v5961_v10 }
 0x5e0   : > { %3134 = vmatmul.f32.gmra.mxu3 %v6409_v57  ;;  %v3162_v48 = vmax.f32 %v3054_v11, 0.0 }
 0x5e1   : > { %3096 = vmatmul.f32.gmra.mxu2 %v6410_v15  ;;  %v3165_v7 = vmax.f32 %v3016_v3, 0.0 }
 0x5e5   : > { %v3056_v30 = vpop.f32.mrf.mxu1 }
 0x5e6   : > { %v3018_v5 = vpop.f32.mrf.mxu0  ;;  %v3057_v55 = vadd.f32 %v3056_v30, %v5961_v10 }
 0x5e7   : > { %v3019_v8 = vadd.f32 %v3018_v5, %v5957_v63 }
 0x5e8   : > { %3137 = vmatmul.f32.gmra.mxu3 %v6410_v15  ;;  %v3166_v49 = vmax.f32 %v3057_v55, 0.0 }
 0x5e9   : > { %3099 = vmatmul.f32.gmra.mxu2 %v6411_v28  ;;  %v3169_v4 = vmax.f32 %v3019_v8, 0.0 }
 0x5ed   : > { %v3059_v38 = vpop.f32.mrf.mxu1 }
 0x5ee   : > { %v3021_v29 = vpop.f32.mrf.mxu0  ;;  %v3060_v25 = vadd.f32 %v3059_v38, %v5957_v63 }
 0x5ef   : > { %v3022_v58 = vadd.f32 %v3021_v29, %v5955_v43 }
 0x5f0   : > { %3140 = vmatmul.f32.gmra.mxu3 %v6411_v28  ;;  %v3170_v47 = vmax.f32 %v3060_v25, 0.0 }
 0x5f1   : > { %3102 = vmatmul.f32.gmra.mxu2 %v6412_v18  ;;  %v3173_v39 = vmax.f32 %v3022_v58, 0.0 }
 0x5f5   : > { %v3062_v40 = vpop.f32.mrf.mxu1 }
 0x5f6   : > { %v3024_v44 = vpop.f32.mrf.mxu0  ;;  %v3063_v16 = vadd.f32 %v3062_v40, %v5955_v43 }
 0x5f7   : > { %v3025_v34 = vadd.f32 %v3024_v44, %v5951_v54 }
 0x5f8   : > { %3143 = vmatmul.f32.gmra.mxu3 %v6412_v18  ;;  %v3174_v23 = vmax.f32 %v3063_v16, 0.0 }
 0x5f9   : > { %3105 = vmatmul.f32.gmra.mxu2 %v6413_v53  ;;  %v3177_v60 = vmax.f32 %v3025_v34, 0.0 }
 0x5fd   : > { %v3065_v61 = vpop.f32.mrf.mxu1 }
 0x5fe   : > { %v3027_v13 = vpop.f32.mrf.mxu0  ;;  %v3066_v37 = vadd.f32 %v3065_v61, %v5951_v54 }
 0x5ff   : > { %v3028_v1 = vadd.f32 %v3027_v13, %v5949_v35 }
 0x600   : > { %3146 = vmatmul.f32.gmra.mxu3 %v6413_v53  ;;  %v3178_v56 = vmax.f32 %v3066_v37, 0.0 }
 0x601   : > { %v3181_v6 = vmax.f32 %v3028_v1, 0.0  ;;  %3108 = vmatmul.f32.gmra.mxu2 %v6414_v21 }
 0x603   : > { %3233 = vmatpush.msra.mxu0 %v3181_v6 }
 0x605   : > { %v3068_v62 = vpop.f32.mrf.mxu1  ;;  %3234 = vmatpush.msra.mxu0 %v3177_v60 }
 0x606   : > { %v3069_v50 = vadd.f32 %v3068_v62, %v5949_v35 }
 0x607   : > { %3235 = vmatpush.msra.mxu0 %v3173_v39 }
 0x608   : > { %v3182_v26 = vmax.f32 %v3069_v50, 0.0  ;;  %3149 = vmatmul.f32.gmra.mxu3 %v6414_v21 }
 0x609   : > { %3236 = vmatpush.msra.mxu0 %v3169_v4 }
 0x60a   : > { %3262 = vmatpush.msra.mxu1 %v3182_v26 }
 0x60b   : > { %3237 = vmatpush.msra.mxu0 %v3165_v7 }
 0x60c   : > { %3263 = vmatpush.msra.mxu1 %v3178_v56 }
 0x60d   : > { %3238 = vmatpush.msra.mxu0 %v3161_v42 }
 0x60e   : > { %3264 = vmatpush.msra.mxu1 %v3174_v23 }
 0x60f   : > { %3239 = vmatpush.msra.mxu0 %v3157_v32 }
 0x610   : > { %3265 = vmatpush.msra.mxu1 %v3170_v47  ;;  %v3196_v47 = vpop.permute.xlu1 %3195 }
 0x611   : > { %3240 = vmatpush.msra.mxu0 %v3153_v2  ;;  %v3201_v2 = vpop.permute.xlu2 %3200 }
 0x612   : > { %3266 = vmatpush.msra.mxu1 %v3166_v49  ;;  %3637 = vmatmul.msk.f32.vlgmr.msra.gmra.mxu0 %vm1044_vm1, %v5988_v41  ;;  %v3206_v49 = vpop.permute.xlu0 %3205 }
 0x614   : > { %3267 = vmatpush.msra.mxu1 %v3162_v48 }
 0x616   : > { %3268 = vmatpush.msra.mxu1 %v3158_v12 }
 0x618   : > { %3269 = vmatpush.msra.mxu1 %v3154_v46  ;;  %v6057_v48 = vpop.permute.xlu1 %3210 }
 0x619   : > { %3641 = vmatmul.msk.f32.vlgmr.msra.gmra.mxu1 %vm1044_vm1, %v5988_v41  ;;  %v6059_v46 = vpop.permute.xlu2 %3364 }
 0x61a   : > { %3638 = vmatmul.msk.f32.gmra.mxu0 %vm1044_vm1, %v5999_v36 }
 0x621   : > { %3642 = vmatmul.msk.f32.gmra.mxu1 %vm1044_vm1, %v5999_v36 }
 0x622   : > { %3639 = vmatmul.msk.f32.gmra.mxu0 %vm1044_vm1, %v6008_v31 }
 0x629   : > { %3643 = vmatmul.msk.f32.gmra.mxu1 %vm1044_vm1, %v6008_v31 }
 0x62a   : > { %3640 = vmatmul.msk.f32.gmra.mxu0 %vm1044_vm1, %v6017_v33 }
 0x631   : > { %3644 = vmatmul.msk.f32.gmra.mxu1 %vm1044_vm1, %v6017_v33 }
 0x64c   : > { %v3088_v17 = vpop.f32.mrf.mxu2 }
 0x64d   : > { %v3089_v27 = vadd.f32 %v3088_v17, %v5978_v9 }
 0x64f   : > { %v3155_v20 = vmax.f32 %v3089_v27, 0.0 }
 0x653   : > { %v3129_v0 = vpop.f32.mrf.mxu3 }
 0x654   : > { %v3091_v51 = vpop.f32.mrf.mxu2  ;;  %v3130_v55 = vadd.f32 %v3129_v0, %v5978_v9 }
 0x655   : > { %v3092_v45 = vadd.f32 %v3091_v51, %v5973_v24 }
 0x656   : > { %v3156_v32 = vmax.f32 %v3130_v55, 0.0 }
 0x657   : > { %v3159_v25 = vmax.f32 %v3092_v45, 0.0 }
 0x65b   : > { %v3132_v57 = vpop.f32.mrf.mxu3 }
 0x65c   : > { %v3094_v59 = vpop.f32.mrf.mxu2 }
 0x65d   : > { %v3095_v39 = vadd.f32 %v3094_v59, %v5968_v22 }
 0x663   : > { %v3135_v14 = vpop.f32.mrf.mxu3 }
 0x664   : > { %v3097_v15 = vpop.f32.mrf.mxu2 }
 0x665   : > { %v3098_v6 = vadd.f32 %v3097_v15, %v5961_v10 }
 0x667   : > { %v3167_v4 = vmax.f32 %v3098_v6, 0.0 }
 0x66b   : > { %v3138_v30 = vpop.f32.mrf.mxu3 }
 0x66c   : > { %v3100_v5 = vpop.f32.mrf.mxu2 }
 0x66d   : > { %v3101_v1 = vadd.f32 %v3100_v5, %v5957_v63 }
 0x66f   : > { %v3171_v62 = vmax.f32 %v3101_v1, 0.0 }
 0x673   : > { %v3141_v28 = vpop.f32.mrf.mxu3 }
 0x674   : > { %v3103_v38 = vpop.f32.mrf.mxu2  ;;  %v3142_v16 = vadd.f32 %v3141_v28, %v5957_v63  ;;  %v3133_v63 = vadd.f32 %v3132_v57, %v5973_v24 }
 0x675   : > { %v3104_v13 = vadd.f32 %v3103_v38, %v5955_v43 }
 0x676   : > { %v3172_v56 = vmax.f32 %v3142_v16, 0.0 }
 0x677   : > { %v3175_v21 = vmax.f32 %v3104_v13, 0.0 }
 0x67b   : > { %v3144_v29 = vpop.f32.mrf.mxu3 }
 0x67c   : > { %v3106_v18 = vpop.f32.mrf.mxu2  ;;  %v3145_v37 = vadd.f32 %v3144_v29, %v5955_v43  ;;  %v3136_v43 = vadd.f32 %v3135_v14, %v5968_v22 }
 0x67d   : > { %v3107_v53 = vadd.f32 %v3106_v18, %v5951_v54 }
 0x67e   : > { %v3176_v7 = vmax.f32 %v3145_v37, 0.0  ;;  %v3164_v23 = vmax.f32 %v3136_v43, 0.0 }
 0x67f   : > { %v3179_v58 = vmax.f32 %v3107_v53, 0.0 }
 0x683   : > { %v3147_v40 = vpop.f32.mrf.mxu3 }
 0x684   : > { %v3109_v44 = vpop.f32.mrf.mxu2  ;;  %v3148_v60 = vadd.f32 %v3147_v40, %v5951_v54  ;;  %v3163_v54 = vmax.f32 %v3095_v39, 0.0  ;;  %v3375_v40 = vpop.permute.xlu1 %3374 }
 0x685   : > { %v3110_v61 = vadd.f32 %v3109_v44, %v5949_v35 }
 0x686   : > { %v3180_v26 = vmax.f32 %v3148_v60, 0.0 }
 0x687   : > { %v3183_v34 = vmax.f32 %v3110_v61, 0.0 }
 0x689   : > { %3291 = vmatpush.msra.mxu2 %v3183_v34  ;;  %v3380_v34 = vpop.permute.xlu2 %3379 }
 0x68b   : > { %v3150_v8 = vpop.f32.mrf.mxu3  ;;  %3292 = vmatpush.msra.mxu2 %v3179_v58 }
 0x68c   : > { %v3151_v3 = vadd.f32 %v3150_v8, %v5949_v35  ;;  %v3139_v35 = vadd.f32 %v3138_v30, %v5961_v10  ;;  %v3160_v10 = vmax.f32 %v3133_v63, 0.0  ;;  %v3370_v30 = vpop.permute.xlu0 %3369 }
 0x68d   : > { %3293 = vmatpush.msra.mxu2 %v3175_v21 }
 0x68e   : > { %v3184_v50 = vmax.f32 %v3151_v3, 0.0  ;;  %v3168_v42 = vmax.f32 %v3139_v35, 0.0 }
 0x68f   : > { %3294 = vmatpush.msra.mxu2 %v3171_v62  ;;  %v3242_v24 = vpop.f32.mrf.mxu0 }
 0x690   : > { %3320 = vmatpush.msra.mxu3 %v3184_v50  ;;  %v3243_v28 = vadd.f32 %v3242_v24, %v3196_v47 }
 0x691   : > { %3295 = vmatpush.msra.mxu2 %v3167_v4 }
 0x692   : > { %3321 = vmatpush.msra.mxu3 %v3180_v26  ;;  %v3341_v6 = vmax.f32 %v3243_v28, 0.0 }
 0x693   : > { %3296 = vmatpush.msra.mxu2 %v3163_v54 }
 0x694   : > { %3322 = vmatpush.msra.mxu3 %v3176_v7  ;;  %v3382_v16 = vmul.f32 %v6059_v46, %v3341_v6  ;;  %v3437_v6 = vpop.permute.xlu0 %3436 }
 0x695   : > { %3297 = vmatpush.msra.mxu2 %v3159_v25 }
 0x696   : > { %3323 = vmatpush.msra.mxu3 %v3172_v56  ;;  %v3271_v22 = vpop.f32.mrf.mxu1 }
 0x697   : > { %3298 = vmatpush.msra.mxu2 %v3155_v20  ;;  %v3245_v11 = vpop.f32.mrf.mxu0 }
 0x698   : > { %3324 = vmatpush.msra.mxu3 %v3168_v42  ;;  %3645 = vmatmul.msk.f32.vlgmr.msra.gmra.mxu2 %vm1044_vm1, %v5988_v41  ;;  %v3246_v14 = vadd.f32 %v3245_v11, %v3201_v2 }
 0x69a   : > { %3325 = vmatpush.msra.mxu3 %v3164_v23  ;;  %v3345_v53 = vmax.f32 %v3246_v14, 0.0 }
 0x69c   : > { %3326 = vmatpush.msra.mxu3 %v3160_v10  ;;  %v3386_v37 = vmul.f32 %v3370_v30, %v3345_v53 }
 0x69e   : > { %3327 = vmatpush.msra.mxu3 %v3156_v32  ;;  %v3274_v9 = vpop.f32.mrf.mxu1  ;;  %v3398_v7 = vadd.f32 %v3386_v37, %v3382_v16  ;;  %v3458_v16 = vlaneseq }
 0x69f   : > { %3649 = vmatmul.msk.f32.vlgmr.msra.gmra.mxu3 %vm1044_vm1, %v5988_v41  ;;  %v3248_v52 = vpop.f32.mrf.mxu0  ;;  %v3275_v12 = vadd.f32 %v3274_v9, %v3201_v2 }
 0x6a0   : > { %3646 = vmatmul.msk.f32.gmra.mxu2 %vm1044_vm1, %v5999_v36  ;;  %v3249_v29 = vadd.f32 %v3248_v52, %v3206_v49  ;;  %vm3460_vm5 = vcmp.lt.s32.totalorder %v3458_v16, 512 }
 0x6a2   : > { %v3349_v8 = vmax.f32 %v3249_v29, 0.0 }
 0x6a4   : > { %v3390_v26 = vmul.f32 %v3375_v40, %v3349_v8 }
 0x6a6   : > { %v3277_v41 = vpop.f32.mrf.mxu1  ;;  %v3399_v63 = vadd.f32 %v3398_v7, %v3390_v26 }
 0x6a7   : > { %3650 = vmatmul.msk.f32.gmra.mxu3 %vm1044_vm1, %v5999_v36  ;;  %v3278_v17 = vadd.f32 %v3277_v41, %v3206_v49  ;;  %v3251_v5 = vpop.f32.mrf.mxu0 }
 0x6a8   : > { %3647 = vmatmul.msk.f32.gmra.mxu2 %vm1044_vm1, %v6008_v31  ;;  %v3252_v13 = vadd.f32 %v3251_v5, %v6057_v48 }
 0x6a9   : > { %v3350_v15 = vmax.f32 %v3278_v17, 0.0 }
 0x6aa   : > { %v3353_v45 = vmax.f32 %v3252_v13, 0.0 }
 0x6ab   : > { %v3391_v61 = vmul.f32 %v3375_v40, %v3350_v15 }
 0x6ac   : > { %v3394_v25 = vmul.f32 %v3380_v34, %v3353_v45 }
 0x6ae   : > { %v3280_v36 = vpop.f32.mrf.mxu1  ;;  %v3400_v9 = vadd.f32 %v3399_v63, %v3394_v25 }
 0x6af   : > { %3651 = vmatmul.msk.f32.gmra.mxu3 %vm1044_vm1, %v6008_v31  ;;  %v3272_v31 = vadd.f32 %v3271_v22, %v3196_v47  ;;  %v3281_v51 = vadd.f32 %v3280_v36, %v6057_v48 }
 0x6b0   : > { %3648 = vmatmul.msk.f32.gmra.mxu2 %vm1044_vm1, %v6017_v33  ;;  %v3401_v17 = vrot.slane %v3400_v9, 4 }
 0x6b1   : > { %v3342_v59 = vmax.f32 %v3272_v31, 0.0  ;;  %v3354_v18 = vmax.f32 %v3281_v51, 0.0 }
 0x6b2   : > { %v3402_v15 = vadd.f32 %v3401_v17, %v3400_v9 }
 0x6b3   : > { %v3383_v44 = vmul.f32 %v6059_v46, %v3342_v59  ;;  %v3395_v60 = vmul.f32 %v3380_v34, %v3354_v18 }
 0x6b7   : > { %3652 = vmatmul.msk.f32.gmra.mxu3 %vm1044_vm1, %v6017_v33  ;;  %v3346_v33 = vmax.f32 %v3275_v12, 0.0 }
 0x6b9   : > { %v3387_v38 = vmul.f32 %v3370_v30, %v3346_v33 }
 0x6bb   : > { %v3407_v21 = vadd.f32 %v3387_v38, %v3383_v44 }
 0x6bd   : > { %v3408_v50 = vadd.f32 %v3407_v21, %v3391_v61  ;;  %v3403_v61 = vrot.slane %v3402_v15, 2 }
 0x6bf   : > { %v3409_v27 = vadd.f32 %v3408_v50, %v3395_v60  ;;  %v3439_v60 = vperm.slane %v3437_v6, 0 }
 0x6c1   : > { %v3410_v42 = vrot.slane %v3409_v27, 4 }
 0x6c3   : > { %v3411_v52 = vadd.f32 %v3410_v42, %v3409_v27 }
 0x71b   : > { %v3300_v19 = vpop.f32.mrf.mxu2 }
 0x71c   : > { %v3301_v39 = vadd.f32 %v3300_v19, %v3196_v47 }
 0x71e   : > { %v3343_v54 = vmax.f32 %v3301_v39, 0.0 }
 0x720   : > { %v3384_v32 = vmul.f32 %v6059_v46, %v3343_v54 }
 0x722   : > { %v3329_v0 = vpop.f32.mrf.mxu3 }
 0x723   : > { %v3303_v57 = vpop.f32.mrf.mxu2  ;;  %v3330_v55 = vadd.f32 %v3329_v0, %v3196_v47 }
 0x724   : > { %v3304_v1 = vadd.f32 %v3303_v57, %v3201_v2 }
 0x725   : > { %v3344_v12 = vmax.f32 %v3330_v55, 0.0 }
 0x726   : > { %v3347_v4 = vmax.f32 %v3304_v1, 0.0 }
 0x727   : > { %v3385_v0 = vmul.f32 %v6059_v46, %v3344_v12  ;;  %v3404_v46 = vadd.f32 %v3403_v61, %v3402_v15 }
 0x728   : > { %v3388_v56 = vmul.f32 %v3370_v30, %v3347_v4 }
 0x72a   : > { %v3332_v58 = vpop.f32.mrf.mxu3  ;;  %v3416_v41 = vadd.f32 %v3388_v56, %v3384_v32 }
 0x72b   : > { %v3306_v3 = vpop.f32.mrf.mxu2  ;;  %v3333_v43 = vadd.f32 %v3332_v58, %v3201_v2 }
 0x72c   : > { %v3307_v62 = vadd.f32 %v3306_v3, %v3206_v49  ;;  %v3405_v3 = vrot.slane %v3404_v46, 1 }
 0x72d   : > { %v3348_v11 = vmax.f32 %v3333_v43, 0.0 }
 0x72e   : > { %v3351_v35 = vmax.f32 %v3307_v62, 0.0  ;;  %v3406_v50 = vadd.f32 %v3405_v3, %v3404_v46 }
 0x72f   : > { %v3389_v33 = vmul.f32 %v3370_v30, %v3348_v11 }
 0x730   : > { %v3392_v22 = vmul.f32 %v3375_v40, %v3351_v35  ;;  %v3440_v54 = vadd.f32 %v3439_v60, %v3406_v50 }
 0x731   : > { %v3425_v5 = vadd.f32 %v3389_v33, %v3385_v0 }
 0x732   : > { %v3335_v20 = vpop.f32.mrf.mxu3  ;;  %v3417_v2 = vadd.f32 %v3416_v41, %v3392_v22 }
 0x733   : > { %v3336_v23 = vadd.f32 %v3335_v20, %v3206_v49  ;;  %v3309_v10 = vpop.f32.mrf.mxu2  ;;  %v3412_v49 = vrot.slane %v3411_v52, 2 }
 0x734   : > { %v3310_v24 = vadd.f32 %v3309_v10, %v6057_v48 }
 0x735   : > { %v3352_v36 = vmax.f32 %v3336_v23, 0.0  ;;  %v3413_v29 = vadd.f32 %v3412_v49, %v3411_v52 }
 0x736   : > { %v3355_v19 = vmax.f32 %v3310_v24, 0.0 }
 0x737   : > { %v3393_v57 = vmul.f32 %v3375_v40, %v3352_v36  ;;  %v3414_v1 = vrot.slane %v3413_v29, 1 }
 0x738   : > { %v3396_v31 = vmul.f32 %v3380_v34, %v3355_v19 }
 0x739   : > { %v3426_v18 = vadd.f32 %v3425_v5, %v3393_v57  ;;  %v3415_v21 = vadd.f32 %v3414_v1, %v3413_v29 }
 0x73a   : > { %v3418_v51 = vadd.f32 %v3417_v2, %v3396_v31  ;;  %v3338_v47 = vpop.f32.mrf.mxu3 }
 0x73b   : > { %v3339_v59 = vadd.f32 %v3338_v47, %v6057_v48  ;;  %v3441_v37 = vadd.f32 %v3439_v60, %v3415_v21 }
 0x73c   : > { %v3419_v14 = vrot.slane %v3418_v51, 4 }
 0x73d   : > { %v3356_v28 = vmax.f32 %v3339_v59, 0.0  ;;  %v3448_v27 = vrot.slane %v3441_v37, 7 }
 0x73e   : > { %v3420_v38 = vadd.f32 %v3419_v14, %v3418_v51 }
 0x73f   : > { %v3397_v44 = vmul.f32 %v3380_v34, %v3356_v28  ;;  %v3452_v25 = vsel %vm3451_vm2, %v3440_v54, %v3448_v27 }
 0x740   : > { %v3421_v53 = vrot.slane %v3420_v38, 2 }
 0x741   : > { %v3427_v30 = vadd.f32 %v3426_v18, %v3397_v44 }
 0x742   : > { %v3422_v13 = vadd.f32 %v3421_v53, %v3420_v38 }
 0x743   : > { %v3428_v58 = vrot.slane %v3427_v30, 4 }
 0x744   : > { %v3423_v40 = vrot.slane %v3422_v13, 1 }
 0x745   : > { %v3429_v48 = vadd.f32 %v3428_v58, %v3427_v30 }
 0x746   : > { %v3424_v39 = vadd.f32 %v3423_v40, %v3422_v13 }
 0x747   : > { %v3430_v8 = vrot.slane %v3429_v48, 2 }
 0x748   : > { %v3442_v4 = vadd.f32 %v3439_v60, %v3424_v39 }
 0x749   : > { %v3431_v62 = vadd.f32 %v3430_v8, %v3429_v48 }
 0x74a   : > { %v3449_v35 = vrot.slane %v3442_v4, 6 }
 0x74b   : > { %v3432_v34 = vrot.slane %v3431_v62, 1 }
 0x74d   : > { %v3433_v45 = vadd.f32 %v3432_v34, %v3431_v62 }
 0x74f   : > { %v3443_v26 = vadd.f32 %v3439_v60, %v3433_v45 }
 0x751   : > { %v3450_v7 = vrot.slane %v3443_v26, 5 }
 0x753   : > { %v3454_v43 = vsel %vm3453_vm3, %v3449_v35, %v3450_v7 }
 0x754   : > { %v3456_v56 = vsel %vm3455_vm4, %v3452_v25, %v3454_v43 }
 0x755   : > { %3462 = vst.msk [vmem:[%s542_s22] sm:$0xf] %vm3460_vm5, %v3456_v56 }
 0x756   : > { %3727 = shalt.err (!%p3724_p3)
}
 0x757   : > { %3657 = dma.vmem_to_hbm [thread:$0]  (%p3895_p5), %s3477_s24, 64, %s3479_s25, %s3464_s23  }
 0x758 PF: > { %p3663_p4 = scmp.ge.s32.totalorder %s3762_s29, 2  ;;  %s3490_s19 = sand.u32 1, %s3750_s26  }
 0x759   : > { %s3491_s16 = scalar_lea.sflag [#allocation4], %s3490_s19 }
 0x75a   : > { %p3660_p7 = pnand %p3663_p4, %p3899_p6 }
 0x75c   : > { %p3661_p8 = pneg %p3660_p7 }
 0x75e   : > { %3745 = dma.done.wait (%p3661_p8), %s3491_s16, 64  }
 0x75f   : > { %3747 = vsyncadd (%p3661_p8), %s3491_s16, 4294967232  ;;  %s6415_s29 = sld [smem:[#allocation7_spill]]  ;;  %s6418_s26 = smov %s3754_s27 }
 0x760   : > { %s6416_s1 = sld [smem:[#allocation6_spill]] }
 0x761   : > { %s6417_s28 = sld [smem:[#allocation8_spill]] }
 0x765   : > { %p29_p9 = scmp.ge.s32.totalorder %s6415_s29, 4  }
 0x766   : > { %s6419_s27 = smov %s6416_s1 }
 0x767   :  { %31 = sbr.rel (!%p29_p9) target bundleno = 9 (0x9), region = 123 }
 0x76c   :  { %3497 = vsyncpa [#allocation4], 1 }
 0x76d   :  { %3499 = vsyncpa [#allocation4 + $0x1], 1 }

</bundles_post_ra>
